<compile_context>
chip_gen: v5e
topology: v5e:2x2
jax: 0.10.0
libtpu: 0.0.40
codegen_flags: <defaults>
</compile_context>

<pallas_src>
import math

import jax
import jax.numpy as jnp
from jax.experimental import pallas as pl
from jax.experimental.pallas import tpu as pltpu

HIDDEN = 64
W_DIM = 512
LRELU_SLOPE = 0.2
ACT_GAIN = math.sqrt(2.0)     # bias_act def_gain for 'lrelu' (folded into weights/bias)


# ---------------- kernel 1: fused style affine + weight (de)modulation ---------------- #
def _modulate_kernel(w_ref,
                     a1_ref, ab1_ref, cw1_ref,
                     a2_ref, ab2_ref, cw2_ref,
                     a3_ref, ab3_ref, cw3_ref,
                     wd1_ref, wd2_ref, wd3_ref):
    # w_ref: (B, 512) latent codes; per layer: a (C,512), ab (1,C), cw (H,C) -> wd (B,H,C)
    gain = 1.0 / math.sqrt(W_DIM)

    def one_layer(a_ref, ab_ref, cw_ref, out_ref):
        styles = jax.lax.dot_general(
            w_ref[...], a_ref[...], (((1,), (1,)), ((), ())),
            preferred_element_type=jnp.float32) * gain + ab_ref[...]        # (B, C)
        wm = cw_ref[...][None, :, :] * styles[:, None, :]                   # (B, H, C)
        dcoef = jax.lax.rsqrt(jnp.sum(wm * wm, axis=-1, keepdims=True) + 1e-8)
        # sqrt(2) lrelu gain folded here (exact: positive gain commutes with leaky_relu)
        out_ref[...] = (wm * dcoef) * ACT_GAIN

    one_layer(a1_ref, ab1_ref, cw1_ref, wd1_ref)
    one_layer(a2_ref, ab2_ref, cw2_ref, wd2_ref)
    one_layer(a3_ref, ab3_ref, cw3_ref, wd3_ref)


def modulated_weights(w, params):
    B = w.shape[0]
    H = HIDDEN
    C1 = params["cw1"].shape[1]
    return pl.pallas_call(
        _modulate_kernel,
        out_shape=(jax.ShapeDtypeStruct((B, H, C1), jnp.float32),
                   jax.ShapeDtypeStruct((B, H, H), jnp.float32),
                   jax.ShapeDtypeStruct((B, H, H), jnp.float32)),
    )(w,
      params["a1"], params["ab1"].reshape(1, -1), params["cw1"],
      params["a2"], params["ab2"].reshape(1, -1), params["cw2"],
      params["a3"], params["ab3"].reshape(1, -1), params["cw3"])


# ---------------- kernel 2: fused per-point modulated MLP ----------------------------- #
def _act(h):
    # bias_act(..., act='lrelu') followed by nn.Tanh(); the sqrt(2) gain is already
    # folded into the (de)modulated weights and biases, so no extra multiply here.
    return jnp.tanh(jnp.where(h >= 0.0, h, LRELU_SLOPE * h))


def _mlp_kernel(x_ref, w1_ref, b1_ref, w2_ref, b2_ref, w3_ref, b3_ref,
                wf_ref, bf_ref, o_ref):
    # x is read in its native (1, TP, C_in) layout; layer 1 contracts the last dims of
    # both operands (trans_b matmul), so no wrapper transpose / extra HBM pass is needed.
    # All activations are channels-first (C, TP): lane-dense loads/stores, MXU-friendly.
    x = x_ref[0]                                                           # (TP, C_in)
    h = jax.lax.dot_general(w1_ref[0], x, (((1,), (1,)), ((), ())),
                            preferred_element_type=jnp.float32) + b1_ref[...]
    h = _act(h)                                                            # (H, TP)
    h = jnp.dot(w2_ref[0], h, preferred_element_type=jnp.float32) + b2_ref[...]
    h = _act(h)
    h = jnp.dot(w3_ref[0], h, preferred_element_type=jnp.float32) + b3_ref[...]
    h = _act(h)
    o_ref[0] = (jnp.dot(wf_ref[...], h, preferred_element_type=jnp.float32)
                + bf_ref[...])                                             # (n_out, TP)


def _choose_tile(B, P):
    """Largest point tile (<=1024, >=128) that fits P and keeps >=2 grid steps
    so both v7x TensorCores get work (when P allows it)."""
    tp = 1024
    while tp > 128:
        if P >= tp and B * (-(-P // tp)) >= 2:
            break
        tp //= 2
    return tp


# ------------------------------- JAX wrapper ------------------------------------------ #
@jax.jit
def style_residual_forward(x, w, params):
    """x: (B, P, n_features), w: (B, 512) -> (B, P, 3). Matches style_residual.forward."""
    B, P, C_in = x.shape
    H = HIDDEN
    n_out = params["fw"].shape[0]

    # Single fused launch: per-batch demodulated 1x1-conv weights for all three layers.
    wd1, wd2, wd3 = modulated_weights(w, params)                           # (B,H,C_in),(B,H,H),(B,H,H)

    # Fold the sqrt(2) lrelu gain into the conv biases as well (exact).
    b1 = (params["cb1"] * ACT_GAIN).reshape(H, 1)
    b2 = (params["cb2"] * ACT_GAIN).reshape(H, 1)
    b3 = (params["cb3"] * ACT_GAIN).reshape(H, 1)
    wf = params["fw"]                                                      # (n_out, H)
    bf = params["fb"].reshape(n_out, 1)

    TP = _choose_tile(B, P)
    P_pad = -(-P // TP) * TP
    if P_pad != P:
        x = jnp.pad(x, ((0, 0), (0, P_pad - P), (0, 0)))                   # ragged-tail handling

    flops = 2 * B * P_pad * (H * C_in + 2 * H * H + n_out * H)
    transcendentals = 3 * B * P_pad * H                                    # tanh per hidden unit
    bytes_accessed = 4 * (B * P_pad * C_in + B * H * C_in + 2 * B * H * H
                          + 3 * H + n_out * H + n_out + B * n_out * P_pad)

    out_cf = pl.pallas_call(
        _mlp_kernel,
        out_shape=jax.ShapeDtypeStruct((B, n_out, P_pad), jnp.float32),
        grid=(B, P_pad // TP),                     # P innermost: weight blocks stay resident
        in_specs=[
            pl.BlockSpec((1, TP, C_in), lambda b, p: (b, p, 0)),           # x, native layout
            pl.BlockSpec((1, H, C_in), lambda b, p: (b, 0, 0)),
            pl.BlockSpec((H, 1), lambda b, p: (0, 0)),
            pl.BlockSpec((1, H, H), lambda b, p: (b, 0, 0)),
            pl.BlockSpec((H, 1), lambda b, p: (0, 0)),
            pl.BlockSpec((1, H, H), lambda b, p: (b, 0, 0)),
            pl.BlockSpec((H, 1), lambda b, p: (0, 0)),
            pl.BlockSpec((n_out, H), lambda b, p: (0, 0)),
            pl.BlockSpec((n_out, 1), lambda b, p: (0, 0)),
        ],
        out_specs=pl.BlockSpec((1, n_out, TP), lambda b, p: (b, 0, p)),    # lane-dense output
        compiler_params=pltpu.CompilerParams(
            dimension_semantics=("parallel", "parallel"),
            vmem_limit_bytes=32 * 1024 * 1024),
        cost_estimate=pl.CostEstimate(flops=flops,
                                      transcendentals=transcendentals,
                                      bytes_accessed=bytes_accessed),
    )(x, wd1, b1, wd2, b2, wd3, b3, wf, bf)

    return jnp.transpose(out_cf[:, :, :P], (0, 2, 1))                      # (B, P, 3)


# ------------------------------- pure-JAX reference ----------------------------------- #
def reference_forward(x, w, params):
    gain = 1.0 / math.sqrt(W_DIM)

    def style_layer(h, A, ab, cw, cb):
        styles = jnp.dot(w, A.T, precision="highest") * gain + ab[None, :]      # (B, C)
        wm = cw[None, :, :] * styles[:, None, :]                                # (B, H, C)
        dcoef = jax.lax.rsqrt(jnp.sum(wm * wm, axis=-1) + 1e-8)                 # (B, H)
        wdem = wm * dcoef[:, :, None]
        y = jnp.einsum("bpc,bhc->bph", h, wdem, precision="highest") + cb[None, None, :]
        y = jnp.where(y >= 0.0, y, LRELU_SLOPE * y) * ACT_GAIN                  # lrelu * sqrt(2)
        return jnp.tanh(y)

    h = style_layer(x, params["a1"], params["ab1"], params["cw1"], params["cb1"])
    h = style_layer(h, params["a2"], params["ab2"], params["cw2"], params["cb2"])
    h = style_layer(h, params["a3"], params["ab3"], params["cw3"], params["cb3"])
    return (jnp.einsum("bph,oh->bpo", h, params["fw"], precision="highest")
            + params["fb"][None, None, :])


if __name__ == "__main__":
    key = jax.random.PRNGKey(0)
    keys = jax.random.split(key, 14)

    # P not a tile multiple on purpose: exercises the ragged-tail padding path.
    B, P, n_features = 2, 384, 16
    H = HIDDEN

    x = jax.random.normal(keys[0], (B, P, n_features), dtype=jnp.float32)
    w = jax.random.normal(keys[1], (B, W_DIM), dtype=jnp.float32)

    def mk_style(kA, kB, kW, kC, c_in):
        A = jax.random.normal(kA, (c_in, W_DIM), jnp.float32)          # affine weight
        ab = 1.0 + 0.1 * jax.random.normal(kB, (c_in,), jnp.float32)   # affine bias (init 1)
        cw = jax.random.normal(kW, (H, c_in), jnp.float32)             # 1x1 conv weight
        cb = 0.1 * jax.random.normal(kC, (H,), jnp.float32)            # conv bias
        return A, ab, cw, cb

    a1, ab1, cw1, cb1 = mk_style(keys[2], keys[3], keys[4], keys[5], n_features)
    a2, ab2, cw2, cb2 = mk_style(keys[6], keys[7], keys[8], keys[9], H)
    a3, ab3, cw3, cb3 = mk_style(keys[10], keys[11], keys[12], keys[13], H)
    # NOTE: the module zero-initializes the final Linear (output would be exactly 0 at init);
    # small random values are used here so the correctness check exercises the full kernel.
    kf1, kf2 = jax.random.split(keys[0])
    fw = 0.1 * jax.random.normal(kf1, (3, H), jnp.float32)
    fb = 0.1 * jax.random.normal(kf2, (3,), jnp.float32)

    params = dict(a1=a1, ab1=ab1, cw1=cw1, cb1=cb1,
                  a2=a2, ab2=ab2, cw2=cw2, cb2=cb2,
                  a3=a3, ab3=ab3, cw3=cw3, cb3=cb3,
                  fw=fw, fb=fb)

    out = style_residual_forward(x, w, params)
    jax.block_until_ready(out)

    ref = reference_forward(x, w, params)
    err = float(jnp.max(jnp.abs(out - ref)))
    assert out.shape == (B, P, 3), out.shape
    assert err < 1e-3, err
    print("KERNEL_OK")
</pallas_src>

<mosaic_0001>
module attributes {stable_mosaic.version = 11 : i64} {
  func.func @_modulate_kernel(%arg0: memref<2x512xf32, #tpu.memory_space<vmem>>, %arg1: memref<16x512xf32, #tpu.memory_space<vmem>>, %arg2: memref<1x16xf32, #tpu.memory_space<vmem>>, %arg3: memref<64x16xf32, #tpu.memory_space<vmem>>, %arg4: memref<64x512xf32, #tpu.memory_space<vmem>>, %arg5: memref<1x64xf32, #tpu.memory_space<vmem>>, %arg6: memref<64x64xf32, #tpu.memory_space<vmem>>, %arg7: memref<64x512xf32, #tpu.memory_space<vmem>>, %arg8: memref<1x64xf32, #tpu.memory_space<vmem>>, %arg9: memref<64x64xf32, #tpu.memory_space<vmem>>, %arg10: memref<2x64x16xf32, #tpu.memory_space<vmem>>, %arg11: memref<2x64x64xf32, #tpu.memory_space<vmem>>, %arg12: memref<2x64x64xf32, #tpu.memory_space<vmem>>) attributes {dimension_semantics = [], scalar_prefetch = 0 : i64, scratch_operands = 0 : i64, tpu.core_type = #tpu.core_type<tc>} {
    %c0 = arith.constant 0 : index
    %c0_0 = arith.constant 0 : index
    %0 = vector.load %arg0[%c0, %c0_0] : memref<2x512xf32, #tpu.memory_space<vmem>>, vector<2x512xf32>
    %c0_1 = arith.constant 0 : index
    %c0_2 = arith.constant 0 : index
    %1 = vector.load %arg1[%c0_1, %c0_2] : memref<16x512xf32, #tpu.memory_space<vmem>>, vector<16x512xf32>
    %cst = arith.constant dense<0.000000e+00> : vector<2x16xf32>
    %2 = tpu.matmul %0, %1, %cst {dimension_numbers = #tpu.dot_dimension_numbers<[1], [1], [0], [0], [0, 0, 1, 0], [], []>} : vector<2x512xf32>, vector<16x512xf32>, vector<2x16xf32> -> vector<2x16xf32>
    %cst_3 = arith.constant 0.0441941731 : f32
    %3 = vector.broadcast %cst_3 : f32 to vector<2x16xf32>
    %4 = arith.mulf %2, %3 : vector<2x16xf32>
    %c0_4 = arith.constant 0 : index
    %c0_5 = arith.constant 0 : index
    %5 = vector.load %arg2[%c0_4, %c0_5] : memref<1x16xf32, #tpu.memory_space<vmem>>, vector<1x16xf32>
    %6 = vector.broadcast %5 : vector<1x16xf32> to vector<2x16xf32>
    %7 = arith.addf %4, %6 : vector<2x16xf32>
    %c0_6 = arith.constant 0 : index
    %c0_7 = arith.constant 0 : index
    %8 = vector.load %arg3[%c0_6, %c0_7] : memref<64x16xf32, #tpu.memory_space<vmem>>, vector<64x16xf32>
    %9 = vector.shape_cast %8 : vector<64x16xf32> to vector<1x64x16xf32>
    %10 = vector.shape_cast %7 : vector<2x16xf32> to vector<2x1x16xf32>
    %11 = vector.broadcast %9 : vector<1x64x16xf32> to vector<2x64x16xf32>
    %12 = vector.broadcast %10 : vector<2x1x16xf32> to vector<2x64x16xf32>
    %13 = arith.mulf %11, %12 : vector<2x64x16xf32>
    %14 = arith.mulf %13, %13 : vector<2x64x16xf32>
    %cst_8 = arith.constant dense<0.000000e+00> : vector<2x64xf32>
    %15 = vector.multi_reduction <add>, %14, %cst_8 [2] : vector<2x64x16xf32> to vector<2x64xf32>
    %16 = vector.shape_cast %15 : vector<2x64xf32> to vector<2x64x1xf32>
    %cst_9 = arith.constant 9.99999993E-9 : f32
    %17 = vector.broadcast %cst_9 : f32 to vector<2x64x1xf32>
    %18 = arith.addf %16, %17 : vector<2x64x1xf32>
    %19 = math.rsqrt %18 : vector<2x64x1xf32>
    %20 = vector.broadcast %19 : vector<2x64x1xf32> to vector<2x64x16xf32>
    %21 = arith.mulf %13, %20 : vector<2x64x16xf32>
    %cst_10 = arith.constant 1.41421354 : f32
    %22 = vector.broadcast %cst_10 : f32 to vector<2x64x16xf32>
    %23 = arith.mulf %21, %22 : vector<2x64x16xf32>
    %c0_11 = arith.constant 0 : index
    %c0_12 = arith.constant 0 : index
    %c0_13 = arith.constant 0 : index
    %24 = vector.load %arg10[%c0_11, %c0_12, %c0_13] : memref<2x64x16xf32, #tpu.memory_space<vmem>>, vector<2x64x16xf32>
    tpu.vector_store %arg10[%c0_11, %c0_12, %c0_13], %23 {strides = array<i32>} : memref<2x64x16xf32, #tpu.memory_space<vmem>>, vector<2x64x16xf32>,
    %c0_14 = arith.constant 0 : index
    %c0_15 = arith.constant 0 : index
    %25 = vector.load %arg0[%c0_14, %c0_15] : memref<2x512xf32, #tpu.memory_space<vmem>>, vector<2x512xf32>
    %c0_16 = arith.constant 0 : index
    %c0_17 = arith.constant 0 : index
    %26 = vector.load %arg4[%c0_16, %c0_17] : memref<64x512xf32, #tpu.memory_space<vmem>>, vector<64x512xf32>
    %cst_18 = arith.constant dense<0.000000e+00> : vector<2x64xf32>
    %27 = tpu.matmul %25, %26, %cst_18 {dimension_numbers = #tpu.dot_dimension_numbers<[1], [1], [0], [0], [0, 0, 1, 0], [], []>} : vector<2x512xf32>, vector<64x512xf32>, vector<2x64xf32> -> vector<2x64xf32>
    %cst_19 = arith.constant 0.0441941731 : f32
    %28 = vector.broadcast %cst_19 : f32 to vector<2x64xf32>
    %29 = arith.mulf %27, %28 : vector<2x64xf32>
    %c0_20 = arith.constant 0 : index
    %c0_21 = arith.constant 0 : index
    %30 = vector.load %arg5[%c0_20, %c0_21] : memref<1x64xf32, #tpu.memory_space<vmem>>, vector<1x64xf32>
    %31 = vector.broadcast %30 : vector<1x64xf32> to vector<2x64xf32>
    %32 = arith.addf %29, %31 : vector<2x64xf32>
    %c0_22 = arith.constant 0 : index
    %c0_23 = arith.constant 0 : index
    %33 = vector.load %arg6[%c0_22, %c0_23] : memref<64x64xf32, #tpu.memory_space<vmem>>, vector<64x64xf32>
    %34 = vector.shape_cast %33 : vector<64x64xf32> to vector<1x64x64xf32>
    %35 = vector.shape_cast %32 : vector<2x64xf32> to vector<2x1x64xf32>
    %36 = vector.broadcast %34 : vector<1x64x64xf32> to vector<2x64x64xf32>
    %37 = vector.broadcast %35 : vector<2x1x64xf32> to vector<2x64x64xf32>
    %38 = arith.mulf %36, %37 : vector<2x64x64xf32>
    %39 = arith.mulf %38, %38 : vector<2x64x64xf32>
    %cst_24 = arith.constant dense<0.000000e+00> : vector<2x64xf32>
    %40 = vector.multi_reduction <add>, %39, %cst_24 [2] : vector<2x64x64xf32> to vector<2x64xf32>
    %41 = vector.shape_cast %40 : vector<2x64xf32> to vector<2x64x1xf32>
    %cst_25 = arith.constant 9.99999993E-9 : f32
    %42 = vector.broadcast %cst_25 : f32 to vector<2x64x1xf32>
    %43 = arith.addf %41, %42 : vector<2x64x1xf32>
    %44 = math.rsqrt %43 : vector<2x64x1xf32>
    %45 = vector.broadcast %44 : vector<2x64x1xf32> to vector<2x64x64xf32>
    %46 = arith.mulf %38, %45 : vector<2x64x64xf32>
    %cst_26 = arith.constant 1.41421354 : f32
    %47 = vector.broadcast %cst_26 : f32 to vector<2x64x64xf32>
    %48 = arith.mulf %46, %47 : vector<2x64x64xf32>
    %c0_27 = arith.constant 0 : index
    %c0_28 = arith.constant 0 : index
    %c0_29 = arith.constant 0 : index
    %49 = vector.load %arg11[%c0_27, %c0_28, %c0_29] : memref<2x64x64xf32, #tpu.memory_space<vmem>>, vector<2x64x64xf32>
    tpu.vector_store %arg11[%c0_27, %c0_28, %c0_29], %48 {strides = array<i32>} : memref<2x64x64xf32, #tpu.memory_space<vmem>>, vector<2x64x64xf32>,
    %c0_30 = arith.constant 0 : index
    %c0_31 = arith.constant 0 : index
    %50 = vector.load %arg0[%c0_30, %c0_31] : memref<2x512xf32, #tpu.memory_space<vmem>>, vector<2x512xf32>
    %c0_32 = arith.constant 0 : index
    %c0_33 = arith.constant 0 : index
    %51 = vector.load %arg7[%c0_32, %c0_33] : memref<64x512xf32, #tpu.memory_space<vmem>>, vector<64x512xf32>
    %cst_34 = arith.constant dense<0.000000e+00> : vector<2x64xf32>
    %52 = tpu.matmul %50, %51, %cst_34 {dimension_numbers = #tpu.dot_dimension_numbers<[1], [1], [0], [0], [0, 0, 1, 0], [], []>} : vector<2x512xf32>, vector<64x512xf32>, vector<2x64xf32> -> vector<2x64xf32>
    %cst_35 = arith.constant 0.0441941731 : f32
    %53 = vector.broadcast %cst_35 : f32 to vector<2x64xf32>
    %54 = arith.mulf %52, %53 : vector<2x64xf32>
    %c0_36 = arith.constant 0 : index
    %c0_37 = arith.constant 0 : index
    %55 = vector.load %arg8[%c0_36, %c0_37] : memref<1x64xf32, #tpu.memory_space<vmem>>, vector<1x64xf32>
    %56 = vector.broadcast %55 : vector<1x64xf32> to vector<2x64xf32>
    %57 = arith.addf %54, %56 : vector<2x64xf32>
    %c0_38 = arith.constant 0 : index
    %c0_39 = arith.constant 0 : index
    %58 = vector.load %arg9[%c0_38, %c0_39] : memref<64x64xf32, #tpu.memory_space<vmem>>, vector<64x64xf32>
    %59 = vector.shape_cast %58 : vector<64x64xf32> to vector<1x64x64xf32>
    %60 = vector.shape_cast %57 : vector<2x64xf32> to vector<2x1x64xf32>
    %61 = vector.broadcast %59 : vector<1x64x64xf32> to vector<2x64x64xf32>
    %62 = vector.broadcast %60 : vector<2x1x64xf32> to vector<2x64x64xf32>
    %63 = arith.mulf %61, %62 : vector<2x64x64xf32>
    %64 = arith.mulf %63, %63 : vector<2x64x64xf32>
    %cst_40 = arith.constant dense<0.000000e+00> : vector<2x64xf32>
    %65 = vector.multi_reduction <add>, %64, %cst_40 [2] : vector<2x64x64xf32> to vector<2x64xf32>
    %66 = vector.shape_cast %65 : vector<2x64xf32> to vector<2x64x1xf32>
    %cst_41 = arith.constant 9.99999993E-9 : f32
    %67 = vector.broadcast %cst_41 : f32 to vector<2x64x1xf32>
    %68 = arith.addf %66, %67 : vector<2x64x1xf32>
    %69 = math.rsqrt %68 : vector<2x64x1xf32>
    %70 = vector.broadcast %69 : vector<2x64x1xf32> to vector<2x64x64xf32>
    %71 = arith.mulf %63, %70 : vector<2x64x64xf32>
    %cst_42 = arith.constant 1.41421354 : f32
    %72 = vector.broadcast %cst_42 : f32 to vector<2x64x64xf32>
    %73 = arith.mulf %71, %72 : vector<2x64x64xf32>
    %c0_43 = arith.constant 0 : index
    %c0_44 = arith.constant 0 : index
    %c0_45 = arith.constant 0 : index
    %74 = vector.load %arg12[%c0_43, %c0_44, %c0_45] : memref<2x64x64xf32, #tpu.memory_space<vmem>>, vector<2x64x64xf32>
    tpu.vector_store %arg12[%c0_43, %c0_44, %c0_45], %73 {strides = array<i32>} : memref<2x64x64xf32, #tpu.memory_space<vmem>>, vector<2x64x64xf32>,
    return
  }
}

module attributes {stable_mosaic.version = 11 : i64} {
  func.func @_mlp_kernel(%arg0: i32, %arg1: i32, %arg2: memref<1x256x16xf32, #tpu.memory_space<vmem>>, %arg3: memref<1x64x16xf32, #tpu.memory_space<vmem>>, %arg4: memref<64x1xf32, #tpu.memory_space<vmem>>, %arg5: memref<1x64x64xf32, #tpu.memory_space<vmem>>, %arg6: memref<64x1xf32, #tpu.memory_space<vmem>>, %arg7: memref<1x64x64xf32, #tpu.memory_space<vmem>>, %arg8: memref<64x1xf32, #tpu.memory_space<vmem>>, %arg9: memref<3x64xf32, #tpu.memory_space<vmem>>, %arg10: memref<3x1xf32, #tpu.memory_space<vmem>>, %arg11: memref<1x3x256xf32, #tpu.memory_space<vmem>>) attributes {dimension_semantics = [#tpu.dimension_semantics<parallel>, #tpu.dimension_semantics<parallel>], iteration_bounds = array<i64: 2, 2>, scalar_prefetch = 0 : i64, scratch_operands = 0 : i64, tpu.core_type = #tpu.core_type<tc>, window_params = [{transform_indices = @transform_0, window_bounds = array<i64: 1, 256, 16>}, {transform_indices = @transform_1, window_bounds = array<i64: 1, 64, 16>}, {pipeline_mode = #tpu.pipeline_mode<synchronous>, transform_indices = @transform_2, window_bounds = array<i64: 64, 1>}, {transform_indices = @transform_3, window_bounds = array<i64: 1, 64, 64>}, {pipeline_mode = #tpu.pipeline_mode<synchronous>, transform_indices = @transform_4, window_bounds = array<i64: 64, 1>}, {transform_indices = @transform_5, window_bounds = array<i64: 1, 64, 64>}, {pipeline_mode = #tpu.pipeline_mode<synchronous>, transform_indices = @transform_6, window_bounds = array<i64: 64, 1>}, {pipeline_mode = #tpu.pipeline_mode<synchronous>, transform_indices = @transform_7, window_bounds = array<i64: 3, 64>}, {pipeline_mode = #tpu.pipeline_mode<synchronous>, transform_indices = @transform_8, window_bounds = array<i64: 3, 1>}, {transform_indices = @transform_9, window_bounds = array<i64: 1, 3, 256>}]} {
    %c0 = arith.constant 0 : index
    %c0_0 = arith.constant 0 : index
    %c0_1 = arith.constant 0 : index
    %0 = vector.load %arg2[%c0, %c0_0, %c0_1] : memref<1x256x16xf32, #tpu.memory_space<vmem>>, vector<1x256x16xf32>
    %1 = vector.shape_cast %0 : vector<1x256x16xf32> to vector<256x16xf32>
    %c0_2 = arith.constant 0 : index
    %c0_3 = arith.constant 0 : index
    %c0_4 = arith.constant 0 : index
    %2 = vector.load %arg3[%c0_2, %c0_3, %c0_4] : memref<1x64x16xf32, #tpu.memory_space<vmem>>, vector<1x64x16xf32>
    %3 = vector.shape_cast %2 : vector<1x64x16xf32> to vector<64x16xf32>
    %cst = arith.constant dense<0.000000e+00> : vector<64x256xf32>
    %4 = tpu.matmul %3, %1, %cst {dimension_numbers = #tpu.dot_dimension_numbers<[1], [1], [0], [0], [0, 0, 1, 0], [], []>} : vector<64x16xf32>, vector<256x16xf32>, vector<64x256xf32> -> vector<64x256xf32>
    %c0_5 = arith.constant 0 : index
    %c0_6 = arith.constant 0 : index
    %5 = vector.load %arg4[%c0_5, %c0_6] : memref<64x1xf32, #tpu.memory_space<vmem>>, vector<64x1xf32>
    %6 = vector.broadcast %5 : vector<64x1xf32> to vector<64x256xf32>
    %7 = arith.addf %4, %6 : vector<64x256xf32>
    %cst_7 = arith.constant 0.000000e+00 : f32
    %8 = vector.broadcast %cst_7 : f32 to vector<64x256xf32>
    %9 = arith.cmpf oge, %7, %8 : vector<64x256xf32>
    %cst_8 = arith.constant 2.000000e-01 : f32
    %10 = vector.broadcast %cst_8 : f32 to vector<64x256xf32>
    %11 = arith.mulf %10, %7 : vector<64x256xf32>
    %12 = arith.select %9, %7, %11 : vector<64x256xi1>, vector<64x256xf32>
    %13 = math.tanh %12 : vector<64x256xf32>
    %c0_9 = arith.constant 0 : index
    %c0_10 = arith.constant 0 : index
    %c0_11 = arith.constant 0 : index
    %14 = vector.load %arg5[%c0_9, %c0_10, %c0_11] : memref<1x64x64xf32, #tpu.memory_space<vmem>>, vector<1x64x64xf32>
    %15 = vector.shape_cast %14 : vector<1x64x64xf32> to vector<64x64xf32>
    %cst_12 = arith.constant dense<0.000000e+00> : vector<64x256xf32>
    %16 = tpu.matmul %15, %13, %cst_12 {dimension_numbers = #tpu.dot_dimension_numbers<[1], [0], [0], [1], [0, 0, 1, 1], [], []>} : vector<64x64xf32>, vector<64x256xf32>, vector<64x256xf32> -> vector<64x256xf32>
    %c0_13 = arith.constant 0 : index
    %c0_14 = arith.constant 0 : index
    %17 = vector.load %arg6[%c0_13, %c0_14] : memref<64x1xf32, #tpu.memory_space<vmem>>, vector<64x1xf32>
    %18 = vector.broadcast %17 : vector<64x1xf32> to vector<64x256xf32>
    %19 = arith.addf %16, %18 : vector<64x256xf32>
    %cst_15 = arith.constant 0.000000e+00 : f32
    %20 = vector.broadcast %cst_15 : f32 to vector<64x256xf32>
    %21 = arith.cmpf oge, %19, %20 : vector<64x256xf32>
    %cst_16 = arith.constant 2.000000e-01 : f32
    %22 = vector.broadcast %cst_16 : f32 to vector<64x256xf32>
    %23 = arith.mulf %22, %19 : vector<64x256xf32>
    %24 = arith.select %21, %19, %23 : vector<64x256xi1>, vector<64x256xf32>
    %25 = math.tanh %24 : vector<64x256xf32>
    %c0_17 = arith.constant 0 : index
    %c0_18 = arith.constant 0 : index
    %c0_19 = arith.constant 0 : index
    %26 = vector.load %arg7[%c0_17, %c0_18, %c0_19] : memref<1x64x64xf32, #tpu.memory_space<vmem>>, vector<1x64x64xf32>
    %27 = vector.shape_cast %26 : vector<1x64x64xf32> to vector<64x64xf32>
    %cst_20 = arith.constant dense<0.000000e+00> : vector<64x256xf32>
    %28 = tpu.matmul %27, %25, %cst_20 {dimension_numbers = #tpu.dot_dimension_numbers<[1], [0], [0], [1], [0, 0, 1, 1], [], []>} : vector<64x64xf32>, vector<64x256xf32>, vector<64x256xf32> -> vector<64x256xf32>
    %c0_21 = arith.constant 0 : index
    %c0_22 = arith.constant 0 : index
    %29 = vector.load %arg8[%c0_21, %c0_22] : memref<64x1xf32, #tpu.memory_space<vmem>>, vector<64x1xf32>
    %30 = vector.broadcast %29 : vector<64x1xf32> to vector<64x256xf32>
    %31 = arith.addf %28, %30 : vector<64x256xf32>
    %cst_23 = arith.constant 0.000000e+00 : f32
    %32 = vector.broadcast %cst_23 : f32 to vector<64x256xf32>
    %33 = arith.cmpf oge, %31, %32 : vector<64x256xf32>
    %cst_24 = arith.constant 2.000000e-01 : f32
    %34 = vector.broadcast %cst_24 : f32 to vector<64x256xf32>
    %35 = arith.mulf %34, %31 : vector<64x256xf32>
    %36 = arith.select %33, %31, %35 : vector<64x256xi1>, vector<64x256xf32>
    %37 = math.tanh %36 : vector<64x256xf32>
    %c0_25 = arith.constant 0 : index
    %c0_26 = arith.constant 0 : index
    %38 = vector.load %arg9[%c0_25, %c0_26] : memref<3x64xf32, #tpu.memory_space<vmem>>, vector<3x64xf32>
    %cst_27 = arith.constant dense<0.000000e+00> : vector<3x256xf32>
    %39 = tpu.matmul %38, %37, %cst_27 {dimension_numbers = #tpu.dot_dimension_numbers<[1], [0], [0], [1], [0, 0, 1, 1], [], []>} : vector<3x64xf32>, vector<64x256xf32>, vector<3x256xf32> -> vector<3x256xf32>
    %c0_28 = arith.constant 0 : index
    %c0_29 = arith.constant 0 : index
    %40 = vector.load %arg10[%c0_28, %c0_29] : memref<3x1xf32, #tpu.memory_space<vmem>>, vector<3x1xf32>
    %41 = vector.broadcast %40 : vector<3x1xf32> to vector<3x256xf32>
    %42 = arith.addf %39, %41 : vector<3x256xf32>
    %c0_30 = arith.constant 0 : index
    %c0_31 = arith.constant 0 : index
    %c0_32 = arith.constant 0 : index
    %43 = vector.load %arg11[%c0_30, %c0_31, %c0_32] : memref<1x3x256xf32, #tpu.memory_space<vmem>>, vector<1x3x256xf32>
    %44 = vector.shape_cast %43 : vector<1x3x256xf32> to vector<3x256xf32>
    %45 = vector.shape_cast %42 : vector<3x256xf32> to vector<1x3x256xf32>
    tpu.vector_store %arg11[%c0_30, %c0_31, %c0_32], %45 {strides = array<i32>} : memref<1x3x256xf32, #tpu.memory_space<vmem>>, vector<1x3x256xf32>,
    return
  }
  func.func @transform_0(%arg0: i32, %arg1: i32) -> (i32, i32, i32) {
    %c0_i32 = arith.constant 0 : i32
    %c0_i32_0 = arith.constant 0 : i32
    return %arg0, %arg1, %c0_i32 : i32, i32, i32
  }
  func.func @transform_1(%arg0: i32, %arg1: i32) -> (i32, i32, i32) {
    %c0_i32 = arith.constant 0 : i32
    %c0_i32_0 = arith.constant 0 : i32
    %c0_i32_1 = arith.constant 0 : i32
    return %arg0, %c0_i32, %c0_i32_0 : i32, i32, i32
  }
  func.func @transform_2(%arg0: i32, %arg1: i32) -> (i32, i32) {
    %c0_i32 = arith.constant 0 : i32
    %c0_i32_0 = arith.constant 0 : i32
    %c0_i32_1 = arith.constant 0 : i32
    return %c0_i32, %c0_i32_0 : i32, i32
  }
  func.func @transform_3(%arg0: i32, %arg1: i32) -> (i32, i32, i32) {
    %c0_i32 = arith.constant 0 : i32
    %c0_i32_0 = arith.constant 0 : i32
    %c0_i32_1 = arith.constant 0 : i32
    return %arg0, %c0_i32, %c0_i32_0 : i32, i32, i32
  }
  func.func @transform_4(%arg0: i32, %arg1: i32) -> (i32, i32) {
    %c0_i32 = arith.constant 0 : i32
    %c0_i32_0 = arith.constant 0 : i32
    %c0_i32_1 = arith.constant 0 : i32
    return %c0_i32, %c0_i32_0 : i32, i32
  }
  func.func @transform_5(%arg0: i32, %arg1: i32) -> (i32, i32, i32) {
    %c0_i32 = arith.constant 0 : i32
    %c0_i32_0 = arith.constant 0 : i32
    %c0_i32_1 = arith.constant 0 : i32
    return %arg0, %c0_i32, %c0_i32_0 : i32, i32, i32
  }
  func.func @transform_6(%arg0: i32, %arg1: i32) -> (i32, i32) {
    %c0_i32 = arith.constant 0 : i32
    %c0_i32_0 = arith.constant 0 : i32
    %c0_i32_1 = arith.constant 0 : i32
    return %c0_i32, %c0_i32_0 : i32, i32
  }
  func.func @transform_7(%arg0: i32, %arg1: i32) -> (i32, i32) {
    %c0_i32 = arith.constant 0 : i32
    %c0_i32_0 = arith.constant 0 : i32
    %c0_i32_1 = arith.constant 0 : i32
    return %c0_i32, %c0_i32_0 : i32, i32
  }
  func.func @transform_8(%arg0: i32, %arg1: i32) -> (i32, i32) {
    %c0_i32 = arith.constant 0 : i32
    %c0_i32_0 = arith.constant 0 : i32
    %c0_i32_1 = arith.constant 0 : i32
    return %c0_i32, %c0_i32_0 : i32, i32
  }
  func.func @transform_9(%arg0: i32, %arg1: i32) -> (i32, i32, i32) {
    %c0_i32 = arith.constant 0 : i32
    %c0_i32_0 = arith.constant 0 : i32
    return %arg0, %c0_i32, %arg1 : i32, i32, i32
  }
}

</mosaic_0001>

<bundles_post_ra>
// kernel: style_residual_forward.3
= control target key start
LH: loop header
LB: loop body
LE: loop exit
PB: predicated region body
PF: predicated region fallthrough
CT: control target
= control target key end

     0   :  { %s1758_s30 = smov 0   ;;  %s1760_s10 = smov 0   ;;  %s2155_s0 = inlined_call_operand.vmem [shape: f32[2,512,16], index: 0, kind: input, shape index: {}]   ;;  %s2156_s1 = inlined_call_operand.vmem [shape: f32[2,64,16], index: 1, kind: input, shape index: {}]   ;;  %s2157_s2 = inlined_call_operand.vmem [shape: f32[64,1], index: 2, kind: input, shape index: {}]   ;;  %s2158_s3 = inlined_call_operand.vmem [shape: f32[2,64,64], index: 3, kind: input, shape index: {}]   ;;  %s2159_s4 = inlined_call_operand.vmem [shape: f32[64,1], index: 4, kind: input, shape index: {}]   ;;  %s2160_s5 = inlined_call_operand.vmem [shape: f32[2,64,64], index: 5, kind: input, shape index: {}]   ;;  %s2161_s6 = inlined_call_operand.vmem [shape: f32[64,1], index: 6, kind: input, shape index: {}]   ;;  %s2162_s7 = inlined_call_operand.vmem [shape: f32[3,64], index: 7, kind: input, shape index: {}]   ;;  %s2163_s8 = inlined_call_operand.vmem [shape: f32[3,1], index: 8, kind: input, shape index: {}]   ;;  %s2164_s9 = inlined_call_operand.vmem [shape: f32[2,3,512], index: 9, kind: output, shape index: {}]  }
   0x1   :  { %s1762_s11 = smov 0   ;;  %s1764_s12 = smov 0  }
   0x2   :  { %s1766_s13 = smov 0  }
   0x3 LB: > { %s28_s14 = sadd.s32 1, %s1697_s11  ;;  %s31_s15 = sadd.s32 1, %s1701_s12  ;;  %s1705_s13 = sphi %s1766_s13, %s19_s13   ;;  %s1701_s12 = sphi %s1764_s12, %s2168_s12   ;;  %s1697_s11 = sphi %s1762_s11, %s2167_s11   ;;  %s1693_s10 = sphi %s1760_s10, %s2166_s10   ;;  %s1689_s30 = sphi %s1758_s30, %s2165_s30  }
   0x4   : > { %p29_p0 = scmp.ge.s32.totalorder %s28_s14, 2  ;;  %p1427_p1 = scmp.ge.s32.totalorder %s1705_s13, 1 }
   0x5   : > { %p338_p2 = scmp.lt.s32.totalorder %s1705_s13, 5 }
   0x6   : > { %s2170_s14 = smov (%p29_p0, %s28_s14), 0  ;;  %s2172_s15 = smov (!%p29_p0, %s31_s15), %s1701_s12 }
   0x7   : > { %p339_p3 = pnand %p1427_p1, %p338_p2  ;;  %p33_p4 = scmp.ge.s32.totalorder %s2172_s15, 2 }
   0x8   : > { %s1428_s16 = sshll.u32 (!%p339_p3), %s1689_s30, 5  ;;  %p398_p5 = scmp.lt.s32.totalorder (!%p339_p3), %s1693_s10, 1 }
   0x9   : > { %s2174_s15 = smov (%p33_p4, %s2172_s15), 0  ;;  %342 = sbr.rel (%p339_p3) target bundleno = 855 (0x357), region = 56 }
   0xa   : > { %p400_p6 = scmp.lt.s32.totalorder (!%p339_p3), %s1428_s16, 63  ;;  %s1437_s20 = sshll.u32 (!%p339_p3), %s1689_s30, 1 }
   0xb   : > { %p425_p7 = scmp.lt.s32.totalorder (!%p339_p3), %s1437_s20, 3 }
   0xe   : > { %s2176_s10 = smov (!%p398_p5, %s1693_s10), 1  ;;  %s2178_s16 = smov (!%p400_p6, %s1428_s16), 63  ;;  %vm520_vm0 = vcmask 130048   ;;  %v477_v14 = vld [vmem:[%s2157_s2 + $0x28] sm:$0xff]  ;;  %v479_v15 = vld [vmem:[%s2157_s2 + $0x38] sm:$0xff]  ;;  %v1707_v18 = vmov 0  }
   0xf   : > { %s1794_s17 = sshll.u32 %s2176_s10, 6  ;;  %1569 = vset.pattern.permute.xlu1 %v1707_v18  ;;  %1568 = vset.pattern.permute.xlu0 %v1707_v18  ;;  %v476_v21 = vld [vmem:[%s2157_s2 + $0x20] sm:$0xff]  ;;  %v478_v22 = vld [vmem:[%s2157_s2 + $0x30] sm:$0xff]  ;;  %v473_v28 = vld [vmem:[%s2157_s2 + $0x8] sm:$0xff]  ;;  %s2180_s20 = smov (!%p425_p7, %s1437_s20), 3 }
  0x10   : > { %s403_s18 = sadd.s32 %s1794_s17, %s2178_s16  ;;  %507 = vperm.xlu1 %1569, %v477_v14   ;;  %517 = vperm.xlu0 %1568, %v479_v15   ;;  %v472_v27 = vld [vmem:[%s2157_s2] sm:$0xff]  ;;  %v801_v33 = vld [vmem:[%s2159_s4 + $0x30] sm:$0xff]  ;;  %v798_v38 = vld [vmem:[%s2159_s4 + $0x18] sm:$0xff]  ;;  %s1892_s29 = scalar_lea.vmem %s2156_s1, %s1794_s17 }
  0x11   : > { %s1430_s19 = sshll.u32 %s403_s18, 3  ;;  %1570 = vset.pattern.permute.xlu2 %v1707_v18  ;;  %v464_v41 = vld [vmem:[%s1892_s29] sm:$0xff]  ;;  %v800_v42 = vld [vmem:[%s2159_s4 + $0x28] sm:$0xff]  ;;  %v475_v43 = vld [vmem:[%s2157_s2 + $0x18] sm:$0xff]  ;;  %s2008_s28 = scalar_lea.vmem %s2158_s3, %s1794_s17 }
  0x12   : > { %s1800_s22 = scalar_lea.vmem %s2155_s0, %s1430_s19  ;;  %v795_v44 = vld [vmem:[%s2159_s4] sm:$0xff]  ;;  %497 = vperm.xlu2 %1570, %v475_v43   ;;  %v465_v45 = vld [vmem:[%s1892_s29 + $0x8] sm:$0xff]  ;;  %v797_v46 = vld [vmem:[%s2159_s4 + $0x10] sm:$0xff]  ;;  %s1438_s21 = sshll.u32 %s2176_s10, 2 }
  0x13   : > { %v447_v0 = vld [vmem:[%s1800_s22 + $0x78] sm:$0xff]  ;;  %v446_v2 = vld [vmem:[%s1800_s22 + $0x70] sm:$0xff]  ;;  %v445_v4 = vld [vmem:[%s1800_s22 + $0x68] sm:$0xff]  ;;  %s428_s23 = sadd.s32 %s1438_s21, %s2180_s20 }
  0x14   : > { %v463_v1 = vld [vmem:[%s1800_s22 + $0xf8] sm:$0xff]  ;;  %1440 = vmatpush.xpose.msk.msra.mxu0 %vm520_vm0, %v447_v0  ;;  %v462_v3 = vld [vmem:[%s1800_s22 + $0xf0] sm:$0xff]  ;;  %v461_v5 = vld [vmem:[%s1800_s22 + $0xe8] sm:$0xff]  ;;  %s1439_s24 = sshll.u32 %s428_s23, 2 }
  0x15   : > { %1464 = vmatpush.xpose.msk.msra.mxu1 %vm520_vm0, %v463_v1  ;;  %v444_v6 = vld [vmem:[%s1800_s22 + $0x60] sm:$0xff]  ;;  %v443_v8 = vld [vmem:[%s1800_s22 + $0x58] sm:$0xff]  ;;  %v442_v10 = vld [vmem:[%s1800_s22 + $0x50] sm:$0xff] }
  0x16   : > { %v460_v7 = vld [vmem:[%s1800_s22 + $0xe0] sm:$0xff]  ;;  %v459_v9 = vld [vmem:[%s1800_s22 + $0xd8] sm:$0xff]  ;;  %v458_v11 = vld [vmem:[%s1800_s22 + $0xd0] sm:$0xff] }
  0x17   : > { %v441_v12 = vld [vmem:[%s1800_s22 + $0x48] sm:$0xff]  ;;  %v440_v16 = vld [vmem:[%s1800_s22 + $0x40] sm:$0xff]  ;;  %v439_v19 = vld [vmem:[%s1800_s22 + $0x38] sm:$0xff] }
  0x18   : > { %1441 = vmatpush.xpose.msk.msra.mxu0 %vm520_vm0, %v446_v2  ;;  %v457_v13 = vld [vmem:[%s1800_s22 + $0xc8] sm:$0xff]  ;;  %v456_v17 = vld [vmem:[%s1800_s22 + $0xc0] sm:$0xff]  ;;  %v455_v20 = vld [vmem:[%s1800_s22 + $0xb8] sm:$0xff]  ;;  %502 = vperm.xlu1 %1569, %v476_v21  }
  0x19   : > { %1465 = vmatpush.xpose.msk.msra.mxu1 %vm520_vm0, %v462_v3  ;;  %v438_v23 = vld [vmem:[%s1800_s22 + $0x30] sm:$0xff]  ;;  %512 = vperm.xlu0 %1568, %v478_v22   ;;  %v437_v25 = vld [vmem:[%s1800_s22 + $0x28] sm:$0xff]  ;;  %v436_v29 = vld [vmem:[%s1800_s22 + $0x20] sm:$0xff] }
  0x1a   : > { %v454_v24 = vld [vmem:[%s1800_s22 + $0xb0] sm:$0xff]  ;;  %v453_v26 = vld [vmem:[%s1800_s22 + $0xa8] sm:$0xff]  ;;  %v452_v30 = vld [vmem:[%s1800_s22 + $0xa0] sm:$0xff] }
  0x1b   : > { %v435_v31 = vld [vmem:[%s1800_s22 + $0x18] sm:$0xff]  ;;  %v434_v34 = vld [vmem:[%s1800_s22 + $0x10] sm:$0xff]  ;;  %v433_v36 = vld [vmem:[%s1800_s22 + $0x8] sm:$0xff] }
  0x1c   : > { %1442 = vmatpush.xpose.msk.msra.mxu0 %vm520_vm0, %v445_v4  ;;  %v451_v32 = vld [vmem:[%s1800_s22 + $0x98] sm:$0xff]  ;;  %v450_v35 = vld [vmem:[%s1800_s22 + $0x90] sm:$0xff]  ;;  %v449_v37 = vld [vmem:[%s1800_s22 + $0x88] sm:$0xff] }
  0x1d   : > { %1466 = vmatpush.xpose.msk.msra.mxu1 %vm520_vm0, %v461_v5  ;;  %v432_v39 = vld [vmem:[%s1800_s22] sm:$0xff]  ;;  %v474_v47 = vld [vmem:[%s2157_s2 + $0x10] sm:$0xff]  ;;  %v1027_v48 = vld [vmem:[%s2161_s6 + $0x28] sm:$0xff] }
  0x1e   : > { %v448_v40 = vld [vmem:[%s1800_s22 + $0x80] sm:$0xff]  ;;  %492 = vperm.xlu2 %1570, %v474_v47   ;;  %v466_v49 = vld [vmem:[%s1892_s29 + $0x10] sm:$0xff]  ;;  %v1029_v50 = vld [vmem:[%s2161_s6 + $0x38] sm:$0xff]  ;;  %s2071_s22 = scalar_lea.vmem %s2160_s5, %s1794_s17 }
  0x1f   : > { %v802_v51 = vld [vmem:[%s2159_s4 + $0x38] sm:$0xff]  ;;  %v1024_v52 = vld [vmem:[%s2161_s6 + $0x10] sm:$0xff]  ;;  %v1026_v54 = vld [vmem:[%s2161_s6 + $0x20] sm:$0xff] }
  0x20   : > { %1443 = vmatpush.xpose.msk.msra.mxu0 %vm520_vm0, %v444_v6  ;;  %482 = vperm.xlu1 %1569, %v472_v27   ;;  %v467_v53 = vld [vmem:[%s1892_s29 + $0x18] sm:$0xff]  ;;  %v799_v55 = vld [vmem:[%s2159_s4 + $0x20] sm:$0xff]  ;;  %v1023_v58 = vld [vmem:[%s2161_s6 + $0x8] sm:$0xff] }
  0x21   : > { %1467 = vmatpush.xpose.msk.msra.mxu1 %vm520_vm0, %v460_v7  ;;  %487 = vperm.xlu0 %1568, %v473_v28   ;;  %v1241_v56 = vld [vmem:[%s2163_s8] sm:$0x7]  ;;  %v796_v59 = vld [vmem:[%s2159_s4 + $0x8] sm:$0xff]  ;;  %v1028_v61 = vld [vmem:[%s2161_s6 + $0x30] sm:$0xff] }
  0x22   : > { %v468_v57 = vld [vmem:[%s1892_s29 + $0x20] sm:$0xff]  ;;  %v469_v60 = vld [vmem:[%s1892_s29 + $0x28] sm:$0xff]  ;;  %v470_v62 = vld [vmem:[%s1892_s29 + $0x30] sm:$0xff] }
  0x23   : > { %v1025_v63 = vld [vmem:[%s2161_s6 + $0x18] sm:$0xff]  ;;  %v1022_v1 = vld [vmem:[%s2161_s6] sm:$0xff] }
  0x24   : > { %1444 = vmatpush.xpose.msk.msra.mxu0 %vm520_vm0, %v443_v8  ;;  %v471_v0 = vld [vmem:[%s1892_s29 + $0x38] sm:$0xff]  ;;  %s430_s29 = scalar_lea.vmem %s2164_s9, %s1439_s24 }
  0x25   : > { %1468 = vmatpush.xpose.msk.msra.mxu1 %vm520_vm0, %v459_v9 }
  0x26   : > { %840 = vperm.xlu2 %1570, %v802_v51  }
  0x28   : > { %1445 = vmatpush.xpose.msk.msra.mxu0 %vm520_vm0, %v442_v10  ;;  %830 = vperm.xlu1 %1569, %v800_v42  }
  0x29   : > { %1469 = vmatpush.xpose.msk.msra.mxu1 %vm520_vm0, %v458_v11  ;;  %835 = vperm.xlu0 %1568, %v801_v33  }
  0x2c   : > { %1446 = vmatpush.xpose.msk.msra.mxu0 %vm520_vm0, %v441_v12 }
  0x2d   : > { %1470 = vmatpush.xpose.msk.msra.mxu1 %vm520_vm0, %v457_v13 }
  0x2e   : > { %825 = vperm.xlu2 %1570, %v799_v55  }
  0x30   : > { %1447 = vmatpush.xpose.msk.msra.mxu0 %vm520_vm0, %v440_v16  ;;  %815 = vperm.xlu1 %1569, %v797_v46  }
  0x31   : > { %1471 = vmatpush.xpose.msk.msra.mxu1 %vm520_vm0, %v456_v17  ;;  %820 = vperm.xlu0 %1568, %v798_v38  }
  0x34   : > { %1448 = vmatpush.xpose.msk.msra.mxu0 %vm520_vm0, %v439_v19 }
  0x35   : > { %1472 = vmatpush.xpose.msk.msra.mxu1 %vm520_vm0, %v455_v20 }
  0x36   : > { %810 = vperm.xlu2 %1570, %v796_v59  }
  0x38   : > { %1449 = vmatpush.xpose.msk.msra.mxu0 %vm520_vm0, %v438_v23  ;;  %1067 = vperm.xlu1 %1569, %v1029_v50  }
  0x39   : > { %1473 = vmatpush.xpose.msk.msra.mxu1 %vm520_vm0, %v454_v24  ;;  %805 = vperm.xlu0 %1568, %v795_v44  }
  0x3c   : > { %1450 = vmatpush.xpose.msk.msra.mxu0 %vm520_vm0, %v437_v25 }
  0x3d   : > { %1474 = vmatpush.xpose.msk.msra.mxu1 %vm520_vm0, %v453_v26 }
  0x3e   : > { %1062 = vperm.xlu2 %1570, %v1028_v61  }
  0x40   : > { %1451 = vmatpush.xpose.msk.msra.mxu0 %vm520_vm0, %v436_v29  ;;  %1052 = vperm.xlu1 %1569, %v1026_v54  }
  0x41   : > { %1475 = vmatpush.xpose.msk.msra.mxu1 %vm520_vm0, %v452_v30  ;;  %1057 = vperm.xlu0 %1568, %v1027_v48  }
  0x44   : > { %1452 = vmatpush.xpose.msk.msra.mxu0 %vm520_vm0, %v435_v31 }
  0x45   : > { %1476 = vmatpush.xpose.msk.msra.mxu1 %vm520_vm0, %v451_v32 }
  0x46   : > { %1047 = vperm.xlu2 %1570, %v1025_v63  }
  0x48   : > { %1453 = vmatpush.xpose.msk.msra.mxu0 %vm520_vm0, %v434_v34  ;;  %1037 = vperm.xlu1 %1569, %v1023_v58  }
  0x49   : > { %1477 = vmatpush.xpose.msk.msra.mxu1 %vm520_vm0, %v450_v35  ;;  %1042 = vperm.xlu0 %1568, %v1024_v52  }
  0x4c   : > { %1454 = vmatpush.xpose.msk.msra.mxu0 %vm520_vm0, %v433_v36 }
  0x4d   : > { %1478 = vmatpush.xpose.msk.msra.mxu1 %vm520_vm0, %v449_v37 }
  0x4e   : > { %1032 = vperm.xlu2 %1570, %v1022_v1  }
  0x50   : > { %1455 = vmatpush.xpose.msk.msra.mxu0 %vm520_vm0, %v432_v39 }
  0x51   : > { %1479 = vmatpush.xpose.msk.msra.mxu1 %vm520_vm0, %v448_v40  ;;  %1244 = vperm.xlu0 %1568, %v1241_v56  }
  0x53   : > { %1456 = vmatmul.msk.f32.vlgmr.msra.gmra.mxu0 %vm520_vm0, %v464_v41 }
  0x54   : > { %1480 = vmatmul.msk.f32.vlgmr.msra.gmra.mxu1 %vm520_vm0, %v464_v41 }
  0x5b   : > { %1457 = vmatmul.msk.f32.gmra.mxu0 %vm520_vm0, %v465_v45 }
  0x5c   : > { %1481 = vmatmul.msk.f32.gmra.mxu1 %vm520_vm0, %v465_v45 }
  0x63   : > { %1458 = vmatmul.msk.f32.gmra.mxu0 %vm520_vm0, %v466_v49 }
  0x64   : > { %1482 = vmatmul.msk.f32.gmra.mxu1 %vm520_vm0, %v466_v49 }
  0x6b   : > { %1459 = vmatmul.msk.f32.gmra.mxu0 %vm520_vm0, %v467_v53 }
  0x6c   : > { %1483 = vmatmul.msk.f32.gmra.mxu1 %vm520_vm0, %v467_v53  ;;  %v498_v18 = vpop.permute.xlu2 %497 }
  0x73   : > { %1460 = vmatmul.msk.f32.gmra.mxu0 %vm520_vm0, %v468_v57 }
  0x74   : > { %1484 = vmatmul.msk.f32.gmra.mxu1 %vm520_vm0, %v468_v57 }
  0x78   : > { %v493_v25 = vpop.permute.xlu2 %492 }
  0x7b   : > { %1461 = vmatmul.msk.f32.gmra.mxu0 %vm520_vm0, %v469_v60 }
  0x7c   : > { %1485 = vmatmul.msk.f32.gmra.mxu1 %vm520_vm0, %v469_v60 }
  0x82   : > { %v508_v10 = vpop.permute.xlu1 %507  ;;  %v518_v13 = vpop.permute.xlu0 %517 }
  0x83   : > { %1462 = vmatmul.msk.f32.gmra.mxu0 %vm520_vm0, %v470_v62 }
  0x84   : > { %1486 = vmatmul.msk.f32.gmra.mxu1 %vm520_vm0, %v470_v62 }
  0x8a   : > { %v503_v16 = vpop.permute.xlu1 %502 }
  0x8b   : > { %1463 = vmatmul.msk.f32.gmra.mxu0 %vm520_vm0, %v471_v0  ;;  %v513_v17 = vpop.permute.xlu0 %512 }
  0x8c   : > { %1487 = vmatmul.msk.f32.gmra.mxu1 %vm520_vm0, %v471_v0 }
  0x92   : > { %v483_v21 = vpop.permute.xlu1 %482 }
  0x93   : > { %v488_v24 = vpop.permute.xlu0 %487 }
  0xd0   : > { %v658_v2 = vpop.f32.mrf.mxu0 }
  0xd1   : > { %v699_v3 = vpop.f32.mrf.mxu1  ;;  %v1971_v23 = vadd.f32 %v658_v2, %v483_v21 }
  0xd2   : > { %v1973_v28 = vadd.f32 %v699_v3, %v483_v21 }
  0xd3   : > { %vm723_vm15 = vcmp.ge.f32.partialorder %v1971_v23, 0.0 }
  0xd4   : > { %vm724_vm0 = vcmp.ge.f32.partialorder %v1973_v28, 0.0 }
  0xd8   : > { %v661_v4 = vpop.f32.mrf.mxu0 }
  0xd9   : > { %v702_v5 = vpop.f32.mrf.mxu1  ;;  %v1975_v29 = vadd.f32 %v661_v4, %v488_v24  ;;  %v739_v4 = vmul.f32 0.2, %v1971_v23 }
  0xda   : > { %v1977_v30 = vadd.f32 %v702_v5, %v488_v24  ;;  %v787_v24 = vld [vmem:[%s2008_s28] sm:$0xff] }
  0xdb   : > { %v741_v62 = vmul.f32 0.2, %v1975_v29  ;;  %vm725_vm13 = vcmp.ge.f32.partialorder %v1975_v29, 0.0 }
  0xdc   : > { %v742_v1 = vmul.f32 0.2, %v1977_v30  ;;  %vm726_vm14 = vcmp.ge.f32.partialorder %v1977_v30, 0.0 }
  0xe0   : > { %v664_v6 = vpop.f32.mrf.mxu0 }
  0xe1   : > { %v705_v7 = vpop.f32.mrf.mxu1  ;;  %v665_v31 = vadd.f32 %v664_v6, %v493_v25 }
  0xe2   : > { %v1979_v32 = vadd.f32 %v705_v7, %v493_v25  ;;  %v740_v7 = vmul.f32 0.2, %v1973_v28 }
  0xe3   : > { %v743_v58 = vmul.f32 0.2, %v665_v31  ;;  %vm727_vm11 = vcmp.ge.f32.partialorder %v665_v31, 0.0 }
  0xe4   : > { %v744_v60 = vmul.f32 0.2, %v1979_v32  ;;  %vm728_vm12 = vcmp.ge.f32.partialorder %v1979_v32, 0.0 }
  0xe5   : > { %v759_v5 = vsel %vm727_vm11, %v665_v31, %v743_v58  ;;  %v792_v31 = vld [vmem:[%s2008_s28 + $0x28] sm:$0xff] }
  0xe8   : > { %v667_v8 = vpop.f32.mrf.mxu0 }
  0xe9   : > { %v708_v9 = vpop.f32.mrf.mxu1  ;;  %v668_v33 = vadd.f32 %v667_v8, %v498_v18  ;;  %v760_v8 = vsel %vm728_vm12, %v1979_v32, %v744_v60  ;;  %v793_v32 = vld [vmem:[%s2008_s28 + $0x30] sm:$0xff] }
  0xea   : > { %v709_v46 = vadd.f32 %v708_v9, %v498_v18 }
  0xeb   : > { %v745_v54 = vmul.f32 0.2, %v668_v33  ;;  %vm729_vm9 = vcmp.ge.f32.partialorder %v668_v33, 0.0 }
  0xec   : > { %v746_v56 = vmul.f32 0.2, %v709_v46  ;;  %vm730_vm10 = vcmp.ge.f32.partialorder %v709_v46, 0.0 }
  0xed   : > { %v761_v63 = vsel %vm729_vm9, %v668_v33, %v745_v54  ;;  %v794_v33 = vld [vmem:[%s2008_s28 + $0x38] sm:$0xff] }
  0xee   : > { %v762_v2 = vsel %vm730_vm10, %v709_v46, %v746_v56 }
  0xf0   : > { %v670_v11 = vpop.f32.mrf.mxu0 }
  0xf1   : > { %v711_v12 = vpop.f32.mrf.mxu1  ;;  %v671_v34 = vadd.f32 %v670_v11, %v503_v16 }
  0xf2   : > { %v712_v38 = vadd.f32 %v711_v12, %v503_v16  ;;  %v758_v12 = vsel %vm726_vm14, %v1977_v30, %v742_v1  ;;  %v756_v16 = vsel %vm724_vm0, %v1973_v28, %v740_v7  ;;  %v789_v28 = vld [vmem:[%s2008_s28 + $0x10] sm:$0xff]  ;;  %v791_v30 = vld [vmem:[%s2008_s28 + $0x20] sm:$0xff] }
  0xf3   : > { %v747_v47 = vmul.f32 0.2, %v671_v34  ;;  %vm731_vm7 = vcmp.ge.f32.partialorder %v671_v34, 0.0 }
  0xf4   : > { %v748_v52 = vmul.f32 0.2, %v712_v38  ;;  %vm732_vm8 = vcmp.ge.f32.partialorder %v712_v38, 0.0 }
  0xf5   : > { %v763_v59 = vsel %vm731_vm7, %v671_v34, %v747_v47 }
  0xf6   : > { %v764_v61 = vsel %vm732_vm8, %v712_v38, %v748_v52 }
  0xf8   : > { %v673_v14 = vpop.f32.mrf.mxu0 }
  0xf9   : > { %v714_v15 = vpop.f32.mrf.mxu1  ;;  %v674_v26 = vadd.f32 %v673_v14, %v508_v10  ;;  %v755_v14 = vsel %vm723_vm15, %v1971_v23, %v739_v4 }
  0xfa   : > { %v715_v35 = vadd.f32 %v714_v15, %v508_v10  ;;  %v757_v10 = vsel %vm725_vm13, %v1975_v29, %v741_v62  ;;  %v790_v29 = vld [vmem:[%s2008_s28 + $0x18] sm:$0xff] }
  0xfb   : > { %v749_v42 = vmul.f32 0.2, %v674_v26  ;;  %vm733_vm5 = vcmp.ge.f32.partialorder %v674_v26, 0.0 }
  0xfc   : > { %v750_v48 = vmul.f32 0.2, %v715_v35  ;;  %vm734_vm6 = vcmp.ge.f32.partialorder %v715_v35, 0.0 }
  0xfd   : > { %v765_v55 = vsel %vm733_vm5, %v674_v26, %v749_v42 }
  0xfe   : > { %v766_v57 = vsel %vm734_vm6, %v715_v35, %v750_v48 }
 0x100   : > { %v676_v19 = vpop.f32.mrf.mxu0 }
 0x101   : > { %v717_v20 = vpop.f32.mrf.mxu1  ;;  %v677_v22 = vadd.f32 %v676_v19, %v513_v17 }
 0x102   : > { %v718_v27 = vadd.f32 %v717_v20, %v513_v17 }
 0x103   : > { %v751_v39 = vmul.f32 0.2, %v677_v22  ;;  %vm735_vm1 = vcmp.ge.f32.partialorder %v677_v22, 0.0 }
 0x104   : > { %vm736_vm2 = vcmp.ge.f32.partialorder %v718_v27, 0.0  ;;  %v752_v43 = vmul.f32 0.2, %v718_v27 }
 0x105   : > { %v767_v49 = vsel %vm735_vm1, %v677_v22, %v751_v39  ;;  %vm843_vm1 = vcmask 523264  }
 0x106   : > { %v768_v53 = vsel %vm736_vm2, %v718_v27, %v752_v43  ;;  %v788_v27 = vld [vmem:[%s2008_s28 + $0x8] sm:$0xff]  ;;  %v836_v43 = vpop.permute.xlu0 %835 }
 0x108   : > { %v679_v36 = vpop.f32.mrf.mxu0 }
 0x109   : > { %v720_v37 = vpop.f32.mrf.mxu1  ;;  %v680_v40 = vadd.f32 %v679_v36, %v518_v13 }
 0x10a   : > { %v721_v41 = vadd.f32 %v720_v37, %v518_v13 }
 0x10b   : > { %v753_v44 = vmul.f32 0.2, %v680_v40  ;;  %vm737_vm3 = vcmp.ge.f32.partialorder %v680_v40, 0.0 }
 0x10c   : > { %v754_v45 = vmul.f32 0.2, %v721_v41  ;;  %vm738_vm4 = vcmp.ge.f32.partialorder %v721_v41, 0.0 }
 0x10d   : > { %v769_v50 = vsel %vm737_vm3, %v680_v40, %v753_v44 }
 0x10e   : > { %v770_v51 = vsel %vm738_vm4, %v721_v41, %v754_v45  ;;  %1571 = vtanh.f32 %v769_v50  ;;  %v841_v45 = vpop.permute.xlu2 %840  ;;  %v821_v48 = vpop.permute.xlu0 %820 }
 0x10f   : > { %1573 = vtanh.f32 %v770_v51  ;;  %v831_v50 = vpop.permute.xlu1 %830 }
 0x110   : > { %1575 = vtanh.f32 %v767_v49 }
 0x111   : > { %1577 = vtanh.f32 %v768_v53 }
 0x112   : > { %1579 = vtanh.f32 %v765_v55 }
 0x113   : > { %1581 = vtanh.f32 %v766_v57 }
 0x114   : > { %v1572_v0 = vpop.eup %1571  ;;  %1583 = vtanh.f32 %v763_v59 }
 0x115   : > { %v1574_v3 = vpop.eup %1573  ;;  %1585 = vtanh.f32 %v764_v61  ;;  %876 = vmatpush.msra.mxu2 %v1572_v0 }
 0x116   : > { %v1576_v6 = vpop.eup %1575  ;;  %1587 = vtanh.f32 %v761_v63  ;;  %917 = vmatpush.msra.mxu3 %v1574_v3  ;;  %v826_v49 = vpop.permute.xlu2 %825 }
 0x117   : > { %v1578_v9 = vpop.eup %1577  ;;  %1589 = vtanh.f32 %v762_v2  ;;  %877 = vmatpush.msra.mxu2 %v1576_v6  ;;  %v806_v53 = vpop.permute.xlu0 %805 }
 0x118   : > { %v1580_v11 = vpop.eup %1579  ;;  %1591 = vtanh.f32 %v759_v5  ;;  %918 = vmatpush.msra.mxu3 %v1578_v9  ;;  %v816_v59 = vpop.permute.xlu1 %815 }
 0x119   : > { %v1582_v13 = vpop.eup %1581  ;;  %1593 = vtanh.f32 %v760_v8  ;;  %878 = vmatpush.msra.mxu2 %v1580_v11 }
 0x11a   : > { %v1584_v15 = vpop.eup %1583  ;;  %1595 = vtanh.f32 %v757_v10  ;;  %919 = vmatpush.msra.mxu3 %v1582_v13 }
 0x11b   : > { %v1586_v17 = vpop.eup %1585  ;;  %1597 = vtanh.f32 %v758_v12  ;;  %879 = vmatpush.msra.mxu2 %v1584_v15 }
 0x11c   : > { %v1588_v18 = vpop.eup %1587  ;;  %1599 = vtanh.f32 %v755_v14  ;;  %920 = vmatpush.msra.mxu3 %v1586_v17 }
 0x11d   : > { %v1590_v19 = vpop.eup %1589  ;;  %1601 = vtanh.f32 %v756_v16  ;;  %880 = vmatpush.msra.mxu2 %v1588_v18 }
 0x11e   : > { %v1592_v20 = vpop.eup %1591  ;;  %921 = vmatpush.msra.mxu3 %v1590_v19  ;;  %v811_v55 = vpop.permute.xlu2 %810 }
 0x11f   : > { %v1594_v21 = vpop.eup %1593  ;;  %881 = vmatpush.msra.mxu2 %v1592_v20 }
 0x120   : > { %v1596_v22 = vpop.eup %1595  ;;  %922 = vmatpush.msra.mxu3 %v1594_v21 }
 0x121   : > { %v1598_v23 = vpop.eup %1597  ;;  %882 = vmatpush.msra.mxu2 %v1596_v22 }
 0x122   : > { %v1600_v25 = vpop.eup %1599  ;;  %923 = vmatpush.msra.mxu3 %v1598_v23 }
 0x123   : > { %v1602_v26 = vpop.eup %1601  ;;  %883 = vmatpush.msra.mxu2 %v1600_v25 }
 0x124   : > { %924 = vmatpush.msra.mxu3 %v1602_v26  ;;  %1488 = vmatmul.msk.f32.vlgmr.msra.gmra.mxu2 %vm843_vm1, %v787_v24 }
 0x125   : > { %1496 = vmatmul.msk.f32.vlgmr.msra.gmra.mxu3 %vm843_vm1, %v787_v24 }
 0x12c   : > { %1489 = vmatmul.msk.f32.gmra.mxu2 %vm843_vm1, %v788_v27 }
 0x12d   : > { %1497 = vmatmul.msk.f32.gmra.mxu3 %vm843_vm1, %v788_v27 }
 0x134   : > { %1490 = vmatmul.msk.f32.gmra.mxu2 %vm843_vm1, %v789_v28 }
 0x135   : > { %1498 = vmatmul.msk.f32.gmra.mxu3 %vm843_vm1, %v789_v28 }
 0x13c   : > { %1491 = vmatmul.msk.f32.gmra.mxu2 %vm843_vm1, %v790_v29 }
 0x13d   : > { %1499 = vmatmul.msk.f32.gmra.mxu3 %vm843_vm1, %v790_v29 }
 0x144   : > { %1492 = vmatmul.msk.f32.gmra.mxu2 %vm843_vm1, %v791_v30 }
 0x145   : > { %1500 = vmatmul.msk.f32.gmra.mxu3 %vm843_vm1, %v791_v30 }
 0x14c   : > { %1493 = vmatmul.msk.f32.gmra.mxu2 %vm843_vm1, %v792_v31 }
 0x14d   : > { %1501 = vmatmul.msk.f32.gmra.mxu3 %vm843_vm1, %v792_v31 }
 0x154   : > { %1494 = vmatmul.msk.f32.gmra.mxu2 %vm843_vm1, %v793_v32 }
 0x155   : > { %1502 = vmatmul.msk.f32.gmra.mxu3 %vm843_vm1, %v793_v32 }
 0x15c   : > { %1495 = vmatmul.msk.f32.gmra.mxu2 %vm843_vm1, %v794_v33 }
 0x15d   : > { %1503 = vmatmul.msk.f32.gmra.mxu3 %vm843_vm1, %v794_v33 }
 0x1a7   : > { %v885_v34 = vpop.f32.mrf.mxu2 }
 0x1a8   : > { %v926_v35 = vpop.f32.mrf.mxu3  ;;  %v2034_v56 = vadd.f32 %v885_v34, %v806_v53 }
 0x1a9   : > { %v2036_v60 = vadd.f32 %v926_v35, %v806_v53 }
 0x1aa   : > { %vm950_vm0 = vcmp.ge.f32.partialorder %v2034_v56, 0.0 }
 0x1af   : > { %v888_v36 = vpop.f32.mrf.mxu2 }
 0x1b0   : > { %v929_v37 = vpop.f32.mrf.mxu3  ;;  %v2038_v61 = vadd.f32 %v888_v36, %v811_v55  ;;  %v966_v36 = vmul.f32 0.2, %v2034_v56 }
 0x1b1   : > { %v2040_v62 = vadd.f32 %v929_v37, %v811_v55 }
 0x1b2   : > { %v968_v30 = vmul.f32 0.2, %v2038_v61  ;;  %vm952_vm14 = vcmp.ge.f32.partialorder %v2038_v61, 0.0 }
 0x1b3   : > { %v969_v33 = vmul.f32 0.2, %v2040_v62  ;;  %vm953_vm15 = vcmp.ge.f32.partialorder %v2040_v62, 0.0 }
 0x1b7   : > { %v891_v38 = vpop.f32.mrf.mxu2 }
 0x1b8   : > { %v932_v39 = vpop.f32.mrf.mxu3  ;;  %v892_v0 = vadd.f32 %v891_v38, %v816_v59 }
 0x1b9   : > { %v2042_v1 = vadd.f32 %v932_v39, %v816_v59  ;;  %v967_v39 = vmul.f32 0.2, %v2036_v60  ;;  %v1015_v59 = vld [vmem:[%s2071_s22 + $0x8] sm:$0xff] }
 0x1ba   : > { %v970_v26 = vmul.f32 0.2, %v892_v0  ;;  %vm954_vm12 = vcmp.ge.f32.partialorder %v892_v0, 0.0 }
 0x1bb   : > { %v971_v28 = vmul.f32 0.2, %v2042_v1  ;;  %vm955_vm13 = vcmp.ge.f32.partialorder %v2042_v1, 0.0 }
 0x1bc   : > { %v986_v37 = vsel %vm954_vm12, %v892_v0, %v970_v26  ;;  %v1020_v0 = vld [vmem:[%s2071_s22 + $0x30] sm:$0xff] }
 0x1bf   : > { %v894_v40 = vpop.f32.mrf.mxu2 }
 0x1c0   : > { %v935_v41 = vpop.f32.mrf.mxu3  ;;  %v895_v2 = vadd.f32 %v894_v40, %v821_v48  ;;  %v987_v40 = vsel %vm955_vm13, %v2042_v1, %v971_v28  ;;  %v1021_v1 = vld [vmem:[%s2071_s22 + $0x38] sm:$0xff] }
 0x1c1   : > { %v936_v5 = vadd.f32 %v935_v41, %v821_v48 }
 0x1c2   : > { %v972_v22 = vmul.f32 0.2, %v895_v2  ;;  %vm956_vm10 = vcmp.ge.f32.partialorder %v895_v2, 0.0 }
 0x1c3   : > { %v973_v24 = vmul.f32 0.2, %v936_v5  ;;  %vm957_vm11 = vcmp.ge.f32.partialorder %v936_v5, 0.0 }
 0x1c4   : > { %v988_v31 = vsel %vm956_vm10, %v895_v2, %v972_v22 }
 0x1c5   : > { %v989_v34 = vsel %vm957_vm11, %v936_v5, %v973_v24 }
 0x1c7   : > { %v897_v42 = vpop.f32.mrf.mxu2 }
 0x1c8   : > { %v938_v44 = vpop.f32.mrf.mxu3  ;;  %v898_v57 = vadd.f32 %v897_v42, %v826_v49  ;;  %v984_v42 = vsel %vm952_vm14, %v2038_v61, %v968_v30  ;;  %v1017_v61 = vld [vmem:[%s2071_s22 + $0x18] sm:$0xff] }
 0x1c9   : > { %v939_v6 = vadd.f32 %v938_v44, %v826_v49  ;;  %v985_v44 = vsel %vm953_vm15, %v2040_v62, %v969_v33  ;;  %v1018_v62 = vld [vmem:[%s2071_s22 + $0x20] sm:$0xff] }
 0x1ca   : > { %vm958_vm2 = vcmp.ge.f32.partialorder %v898_v57, 0.0  ;;  %v974_v16 = vmul.f32 0.2, %v898_v57 }
 0x1cb   : > { %v975_v19 = vmul.f32 0.2, %v939_v6  ;;  %vm959_vm9 = vcmp.ge.f32.partialorder %v939_v6, 0.0 }
 0x1cc   : > { %v990_v27 = vsel %vm958_vm2, %v898_v57, %v974_v16  ;;  %vm951_vm2 = vcmp.ge.f32.partialorder %v2036_v60, 0.0 }
 0x1cd   : > { %v991_v29 = vsel %vm959_vm9, %v939_v6, %v975_v19  ;;  %v983_v48 = vsel %vm951_vm2, %v2036_v60, %v967_v39  ;;  %v1016_v60 = vld [vmem:[%s2071_s22 + $0x10] sm:$0xff] }
 0x1cf   : > { %v900_v46 = vpop.f32.mrf.mxu2 }
 0x1d0   : > { %v941_v47 = vpop.f32.mrf.mxu3  ;;  %v901_v63 = vadd.f32 %v900_v46, %v831_v50  ;;  %v982_v46 = vsel %vm950_vm0, %v2034_v56, %v966_v36  ;;  %v1014_v56 = vld [vmem:[%s2071_s22] sm:$0xff] }
 0x1d1   : > { %v942_v3 = vadd.f32 %v941_v47, %v831_v50 }
 0x1d2   : > { %v976_v12 = vmul.f32 0.2, %v901_v63  ;;  %vm960_vm6 = vcmp.ge.f32.partialorder %v901_v63, 0.0 }
 0x1d3   : > { %v977_v14 = vmul.f32 0.2, %v942_v3  ;;  %vm961_vm8 = vcmp.ge.f32.partialorder %v942_v3, 0.0 }
 0x1d4   : > { %v992_v23 = vsel %vm960_vm6, %v901_v63, %v976_v12  ;;  %v1019_v63 = vld [vmem:[%s2071_s22 + $0x28] sm:$0xff] }
 0x1d5   : > { %v993_v25 = vsel %vm961_vm8, %v942_v3, %v977_v14 }
 0x1d7   : > { %v903_v51 = vpop.f32.mrf.mxu2 }
 0x1d8   : > { %v944_v52 = vpop.f32.mrf.mxu3  ;;  %v904_v54 = vadd.f32 %v903_v51, %v836_v43 }
 0x1d9   : > { %v945_v58 = vadd.f32 %v944_v52, %v836_v43 }
 0x1da   : > { %v978_v7 = vmul.f32 0.2, %v904_v54  ;;  %vm962_vm3 = vcmp.ge.f32.partialorder %v904_v54, 0.0 }
 0x1db   : > { %v979_v10 = vmul.f32 0.2, %v945_v58  ;;  %vm963_vm4 = vcmp.ge.f32.partialorder %v945_v58, 0.0 }
 0x1dc   : > { %v994_v17 = vsel %vm962_vm3, %v904_v54, %v978_v7 }
 0x1dd   : > { %v995_v20 = vsel %vm963_vm4, %v945_v58, %v979_v10 }
 0x1df   : > { %v906_v4 = vpop.f32.mrf.mxu2 }
 0x1e0   : > { %v907_v8 = vadd.f32 %v906_v4, %v841_v45  ;;  %v947_v9 = vpop.f32.mrf.mxu3 }
 0x1e1   : > { %v948_v11 = vadd.f32 %v947_v9, %v841_v45 }
 0x1e2   : > { %vm964_vm5 = vcmp.ge.f32.partialorder %v907_v8, 0.0  ;;  %v980_v13 = vmul.f32 0.2, %v907_v8 }
 0x1e3   : > { %vm965_vm7 = vcmp.ge.f32.partialorder %v948_v11, 0.0  ;;  %v981_v15 = vmul.f32 0.2, %v948_v11 }
 0x1e4   : > { %v996_v18 = vsel %vm964_vm5, %v907_v8, %v980_v13  ;;  %v1068_v13 = vpop.permute.xlu1 %1067 }
 0x1e5   : > { %1603 = vtanh.f32 %v996_v18  ;;  %v997_v21 = vsel %vm965_vm7, %v948_v11, %v981_v15  ;;  %v1063_v11 = vpop.permute.xlu2 %1062  ;;  %v1058_v18 = vpop.permute.xlu0 %1057 }
 0x1e6   : > { %1605 = vtanh.f32 %v997_v21 }
 0x1e7   : > { %1607 = vtanh.f32 %v994_v17 }
 0x1e8   : > { %1609 = vtanh.f32 %v995_v20 }
 0x1e9   : > { %1611 = vtanh.f32 %v992_v23 }
 0x1ea   : > { %1613 = vtanh.f32 %v993_v25 }
 0x1eb   : > { %v1604_v32 = vpop.eup %1603  ;;  %1615 = vtanh.f32 %v990_v27 }
 0x1ec   : > { %v1606_v35 = vpop.eup %1605  ;;  %1617 = vtanh.f32 %v991_v29  ;;  %1102 = vmatpush.msrb.mxu2 %v1604_v32  ;;  %v1053_v17 = vpop.permute.xlu1 %1052 }
 0x1ed   : > { %v1608_v38 = vpop.eup %1607  ;;  %1619 = vtanh.f32 %v988_v31  ;;  %1143 = vmatpush.msrb.mxu3 %v1606_v35  ;;  %v1048_v16 = vpop.permute.xlu2 %1047 }
 0x1ee   : > { %v1610_v41 = vpop.eup %1609  ;;  %1621 = vtanh.f32 %v989_v34  ;;  %1103 = vmatpush.msrb.mxu2 %v1608_v38  ;;  %v1043_v27 = vpop.permute.xlu0 %1042 }
 0x1ef   : > { %v1612_v43 = vpop.eup %1611  ;;  %1623 = vtanh.f32 %v986_v37  ;;  %1144 = vmatpush.msrb.mxu3 %v1610_v41 }
 0x1f0   : > { %v1614_v45 = vpop.eup %1613  ;;  %1625 = vtanh.f32 %v987_v40  ;;  %1104 = vmatpush.msrb.mxu2 %v1612_v43 }
 0x1f1   : > { %v1616_v47 = vpop.eup %1615  ;;  %1627 = vtanh.f32 %v984_v42  ;;  %1145 = vmatpush.msrb.mxu3 %v1614_v45 }
 0x1f2   : > { %v1618_v49 = vpop.eup %1617  ;;  %1629 = vtanh.f32 %v985_v44  ;;  %1105 = vmatpush.msrb.mxu2 %v1616_v47 }
 0x1f3   : > { %v1620_v50 = vpop.eup %1619  ;;  %1631 = vtanh.f32 %v982_v46  ;;  %1146 = vmatpush.msrb.mxu3 %v1618_v49 }
 0x1f4   : > { %v1622_v51 = vpop.eup %1621  ;;  %1633 = vtanh.f32 %v983_v48  ;;  %1106 = vmatpush.msrb.mxu2 %v1620_v50  ;;  %v1038_v23 = vpop.permute.xlu1 %1037 }
 0x1f5   : > { %v1624_v52 = vpop.eup %1623  ;;  %1147 = vmatpush.msrb.mxu3 %v1622_v51  ;;  %v1033_v21 = vpop.permute.xlu2 %1032 }
 0x1f6   : > { %v1626_v53 = vpop.eup %1625  ;;  %1107 = vmatpush.msrb.mxu2 %v1624_v52 }
 0x1f7   : > { %v1628_v54 = vpop.eup %1627  ;;  %1148 = vmatpush.msrb.mxu3 %v1626_v53 }
 0x1f8   : > { %v1630_v55 = vpop.eup %1629  ;;  %1108 = vmatpush.msrb.mxu2 %v1628_v54 }
 0x1f9   : > { %v1632_v57 = vpop.eup %1631  ;;  %1149 = vmatpush.msrb.mxu3 %v1630_v55 }
 0x1fa   : > { %v1634_v58 = vpop.eup %1633  ;;  %1109 = vmatpush.msrb.mxu2 %v1632_v57 }
 0x1fb   : > { %1150 = vmatpush.msrb.mxu3 %v1634_v58  ;;  %1504 = vmatmul.msk.f32.vlgmr.msrb.gmra.mxu2 %vm843_vm1, %v1014_v56 }
 0x1fc   : > { %1512 = vmatmul.msk.f32.vlgmr.msrb.gmra.mxu3 %vm843_vm1, %v1014_v56 }
 0x203   : > { %1505 = vmatmul.msk.f32.gmra.mxu2 %vm843_vm1, %v1015_v59 }
 0x204   : > { %1513 = vmatmul.msk.f32.gmra.mxu3 %vm843_vm1, %v1015_v59 }
 0x20b   : > { %1506 = vmatmul.msk.f32.gmra.mxu2 %vm843_vm1, %v1016_v60 }
 0x20c   : > { %1514 = vmatmul.msk.f32.gmra.mxu3 %vm843_vm1, %v1016_v60 }
 0x213   : > { %1507 = vmatmul.msk.f32.gmra.mxu2 %vm843_vm1, %v1017_v61 }
 0x214   : > { %1515 = vmatmul.msk.f32.gmra.mxu3 %vm843_vm1, %v1017_v61 }
 0x21b   : > { %1508 = vmatmul.msk.f32.gmra.mxu2 %vm843_vm1, %v1018_v62 }
 0x21c   : > { %1516 = vmatmul.msk.f32.gmra.mxu3 %vm843_vm1, %v1018_v62 }
 0x223   : > { %1509 = vmatmul.msk.f32.gmra.mxu2 %vm843_vm1, %v1019_v63 }
 0x224   : > { %1517 = vmatmul.msk.f32.gmra.mxu3 %vm843_vm1, %v1019_v63 }
 0x22b   : > { %1510 = vmatmul.msk.f32.gmra.mxu2 %vm843_vm1, %v1020_v0 }
 0x22c   : > { %1518 = vmatmul.msk.f32.gmra.mxu3 %vm843_vm1, %v1020_v0 }
 0x233   : > { %1511 = vmatmul.msk.f32.gmra.mxu2 %vm843_vm1, %v1021_v1 }
 0x234   : > { %1519 = vmatmul.msk.f32.gmra.mxu3 %vm843_vm1, %v1021_v1 }
 0x27e   : > { %v1111_v2 = vpop.f32.mrf.mxu2 }
 0x27f   : > { %v1152_v3 = vpop.f32.mrf.mxu3  ;;  %v2097_v24 = vadd.f32 %v1111_v2, %v1033_v21 }
 0x280   : > { %v2099_v28 = vadd.f32 %v1152_v3, %v1033_v21 }
 0x281   : > { %vm1176_vm2 = vcmp.ge.f32.partialorder %v2097_v24, 0.0 }
 0x286   : > { %v1114_v4 = vpop.f32.mrf.mxu2 }
 0x287   : > { %v1155_v5 = vpop.f32.mrf.mxu3  ;;  %v2101_v29 = vadd.f32 %v1114_v4, %v1038_v23  ;;  %v1192_v4 = vmul.f32 0.2, %v2097_v24 }
 0x288   : > { %v2103_v30 = vadd.f32 %v1155_v5, %v1038_v23 }
 0x289   : > { %v1194_v62 = vmul.f32 0.2, %v2101_v29  ;;  %vm1178_vm15 = vcmp.ge.f32.partialorder %v2101_v29, 0.0 }
 0x28a   : > { %v1195_v1 = vmul.f32 0.2, %v2103_v30  ;;  %vm1179_vm0 = vcmp.ge.f32.partialorder %v2103_v30, 0.0 }
 0x28e   : > { %v1117_v6 = vpop.f32.mrf.mxu2 }
 0x28f   : > { %v1158_v7 = vpop.f32.mrf.mxu3  ;;  %v1118_v32 = vadd.f32 %v1117_v6, %v1043_v27 }
 0x290   : > { %v2105_v33 = vadd.f32 %v1158_v7, %v1043_v27  ;;  %v1193_v7 = vmul.f32 0.2, %v2099_v28  ;;  %v1245_v27 = vpop.permute.xlu0 %1244 }
 0x291   : > { %v1196_v58 = vmul.f32 0.2, %v1118_v32  ;;  %vm1180_vm13 = vcmp.ge.f32.partialorder %v1118_v32, 0.0 }
 0x292   : > { %v1197_v60 = vmul.f32 0.2, %v2105_v33  ;;  %vm1181_vm14 = vcmp.ge.f32.partialorder %v2105_v33, 0.0 }
 0x293   : > { %v1212_v5 = vsel %vm1180_vm13, %v1118_v32, %v1196_v58 }
 0x296   : > { %v1120_v8 = vpop.f32.mrf.mxu2 }
 0x297   : > { %v1161_v9 = vpop.f32.mrf.mxu3  ;;  %v1121_v34 = vadd.f32 %v1120_v8, %v1048_v16  ;;  %v1213_v8 = vsel %vm1181_vm14, %v2105_v33, %v1197_v60 }
 0x298   : > { %v1162_v37 = vadd.f32 %v1161_v9, %v1048_v16 }
 0x299   : > { %v1198_v54 = vmul.f32 0.2, %v1121_v34  ;;  %vm1182_vm11 = vcmp.ge.f32.partialorder %v1121_v34, 0.0 }
 0x29a   : > { %v1199_v56 = vmul.f32 0.2, %v1162_v37  ;;  %vm1183_vm12 = vcmp.ge.f32.partialorder %v1162_v37, 0.0 }
 0x29b   : > { %v1214_v63 = vsel %vm1182_vm11, %v1121_v34, %v1198_v54 }
 0x29c   : > { %v1215_v2 = vsel %vm1183_vm12, %v1162_v37, %v1199_v56 }
 0x29e   : > { %v1123_v10 = vpop.f32.mrf.mxu2 }
 0x29f   : > { %v1164_v12 = vpop.f32.mrf.mxu3  ;;  %v1124_v25 = vadd.f32 %v1123_v10, %v1053_v17  ;;  %v1210_v10 = vsel %vm1178_vm15, %v2101_v29, %v1194_v62 }
 0x2a0   : > { %v1165_v38 = vadd.f32 %v1164_v12, %v1053_v17  ;;  %v1211_v12 = vsel %vm1179_vm0, %v2103_v30, %v1195_v1 }
 0x2a1   : > { %vm1184_vm3 = vcmp.ge.f32.partialorder %v1124_v25, 0.0  ;;  %v1200_v48 = vmul.f32 0.2, %v1124_v25 }
 0x2a2   : > { %v1201_v51 = vmul.f32 0.2, %v1165_v38  ;;  %vm1185_vm10 = vcmp.ge.f32.partialorder %v1165_v38, 0.0 }
 0x2a3   : > { %v1216_v59 = vsel %vm1184_vm3, %v1124_v25, %v1200_v48  ;;  %vm1177_vm3 = vcmp.ge.f32.partialorder %v2099_v28, 0.0 }
 0x2a4   : > { %v1217_v61 = vsel %vm1185_vm10, %v1165_v38, %v1201_v51  ;;  %v1209_v16 = vsel %vm1177_vm3, %v2099_v28, %v1193_v7 }
 0x2a6   : > { %v1126_v14 = vpop.f32.mrf.mxu2 }
 0x2a7   : > { %v1167_v15 = vpop.f32.mrf.mxu3  ;;  %v1127_v31 = vadd.f32 %v1126_v14, %v1058_v18  ;;  %v1208_v14 = vsel %vm1176_vm2, %v2097_v24, %v1192_v4  ;;  %v1240_v24 = vld [vmem:[%s2162_s7] sm:$0x7] }
 0x2a8   : > { %v1168_v35 = vadd.f32 %v1167_v15, %v1058_v18 }
 0x2a9   : > { %v1202_v44 = vmul.f32 0.2, %v1127_v31  ;;  %vm1186_vm7 = vcmp.ge.f32.partialorder %v1127_v31, 0.0 }
 0x2aa   : > { %v1203_v46 = vmul.f32 0.2, %v1168_v35  ;;  %vm1187_vm9 = vcmp.ge.f32.partialorder %v1168_v35, 0.0 }
 0x2ab   : > { %v1218_v55 = vsel %vm1186_vm7, %v1127_v31, %v1202_v44 }
 0x2ac   : > { %v1219_v57 = vsel %vm1187_vm9, %v1168_v35, %v1203_v46 }
 0x2ae   : > { %v1129_v19 = vpop.f32.mrf.mxu2 }
 0x2af   : > { %v1170_v20 = vpop.f32.mrf.mxu3  ;;  %v1130_v22 = vadd.f32 %v1129_v19, %v1063_v11 }
 0x2b0   : > { %v1171_v26 = vadd.f32 %v1170_v20, %v1063_v11 }
 0x2b1   : > { %v1204_v39 = vmul.f32 0.2, %v1130_v22  ;;  %vm1188_vm4 = vcmp.ge.f32.partialorder %v1130_v22, 0.0 }
 0x2b2   : > { %v1205_v42 = vmul.f32 0.2, %v1171_v26  ;;  %vm1189_vm5 = vcmp.ge.f32.partialorder %v1171_v26, 0.0 }
 0x2b3   : > { %v1220_v49 = vsel %vm1188_vm4, %v1130_v22, %v1204_v39  ;;  %vm1293_vm4 = vcmask 1043456  }
 0x2b4   : > { %v1221_v52 = vsel %vm1189_vm5, %v1171_v26, %v1205_v42 }
 0x2b6   : > { %v1132_v36 = vpop.f32.mrf.mxu2 }
 0x2b7   : > { %v1133_v40 = vadd.f32 %v1132_v36, %v1068_v13  ;;  %v1173_v41 = vpop.f32.mrf.mxu3 }
 0x2b8   : > { %v1174_v43 = vadd.f32 %v1173_v41, %v1068_v13 }
 0x2b9   : > { %vm1190_vm6 = vcmp.ge.f32.partialorder %v1133_v40, 0.0  ;;  %v1206_v45 = vmul.f32 0.2, %v1133_v40 }
 0x2ba   : > { %vm1191_vm8 = vcmp.ge.f32.partialorder %v1174_v43, 0.0  ;;  %v1207_v47 = vmul.f32 0.2, %v1174_v43 }
 0x2bb   : > { %v1222_v50 = vsel %vm1190_vm6, %v1133_v40, %v1206_v45 }
 0x2bc   : > { %1635 = vtanh.f32 %v1222_v50  ;;  %v1223_v53 = vsel %vm1191_vm8, %v1174_v43, %v1207_v47 }
 0x2bd   : > { %1637 = vtanh.f32 %v1223_v53 }
 0x2be   : > { %1639 = vtanh.f32 %v1220_v49 }
 0x2bf   : > { %1641 = vtanh.f32 %v1221_v52 }
 0x2c0   : > { %1643 = vtanh.f32 %v1218_v55 }
 0x2c1   : > { %1645 = vtanh.f32 %v1219_v57 }
 0x2c2   : > { %v1636_v0 = vpop.eup %1635  ;;  %1647 = vtanh.f32 %v1216_v59 }
 0x2c3   : > { %v1638_v3 = vpop.eup %1637  ;;  %1649 = vtanh.f32 %v1217_v61  ;;  %1258 = vmatpush.msrb.mxu0 %v1636_v0 }
 0x2c4   : > { %v1640_v6 = vpop.eup %1639  ;;  %1651 = vtanh.f32 %v1214_v63  ;;  %1278 = vmatpush.msrb.mxu1 %v1638_v3 }
 0x2c5   : > { %v1642_v9 = vpop.eup %1641  ;;  %1653 = vtanh.f32 %v1215_v2  ;;  %1259 = vmatpush.msrb.mxu0 %v1640_v6 }
 0x2c6   : > { %v1644_v11 = vpop.eup %1643  ;;  %1655 = vtanh.f32 %v1212_v5  ;;  %1279 = vmatpush.msrb.mxu1 %v1642_v9 }
 0x2c7   : > { %v1646_v13 = vpop.eup %1645  ;;  %1657 = vtanh.f32 %v1213_v8  ;;  %1260 = vmatpush.msrb.mxu0 %v1644_v11 }
 0x2c8   : > { %v1648_v15 = vpop.eup %1647  ;;  %1659 = vtanh.f32 %v1210_v10  ;;  %1280 = vmatpush.msrb.mxu1 %v1646_v13 }
 0x2c9   : > { %v1650_v17 = vpop.eup %1649  ;;  %1661 = vtanh.f32 %v1211_v12  ;;  %1261 = vmatpush.msrb.mxu0 %v1648_v15 }
 0x2ca   : > { %v1652_v18 = vpop.eup %1651  ;;  %1663 = vtanh.f32 %v1208_v14  ;;  %1281 = vmatpush.msrb.mxu1 %v1650_v17 }
 0x2cb   : > { %v1654_v19 = vpop.eup %1653  ;;  %1665 = vtanh.f32 %v1209_v16  ;;  %1262 = vmatpush.msrb.mxu0 %v1652_v18 }
 0x2cc   : > { %v1656_v20 = vpop.eup %1655  ;;  %1282 = vmatpush.msrb.mxu1 %v1654_v19 }
 0x2cd   : > { %v1658_v21 = vpop.eup %1657  ;;  %1263 = vmatpush.msrb.mxu0 %v1656_v20 }
 0x2ce   : > { %v1660_v22 = vpop.eup %1659  ;;  %1283 = vmatpush.msrb.mxu1 %v1658_v21 }
 0x2cf   : > { %v1662_v23 = vpop.eup %1661  ;;  %1264 = vmatpush.msrb.mxu0 %v1660_v22 }
 0x2d0   : > { %v1664_v25 = vpop.eup %1663  ;;  %1284 = vmatpush.msrb.mxu1 %v1662_v23 }
 0x2d1   : > { %v1666_v26 = vpop.eup %1665  ;;  %1265 = vmatpush.msrb.mxu0 %v1664_v25 }
 0x2d2   : > { %1285 = vmatpush.msrb.mxu1 %v1666_v26  ;;  %1520 = vmatmul.msk.f32.vlgmr.msrb.gmra.mxu0 %vm843_vm1, %v1240_v24 }
 0x2d3   : > { %1521 = vmatmul.msk.f32.vlgmr.msrb.gmra.mxu1 %vm843_vm1, %v1240_v24 }
 0x34f   : > { %v1267_v28 = vpop.f32.mrf.mxu0 }
 0x350   : > { %v1287_v29 = vpop.f32.mrf.mxu1  ;;  %v1268_v31 = vadd.f32 %v1267_v28, %v1245_v27 }
 0x351   : > { %v1288_v30 = vadd.f32 %v1287_v29, %v1245_v27 }
 0x353   : > { %v1292_v32 = vrot.slane %v1288_v30, 4 }
 0x355   : > { %v1294_v33 = vsel %vm1293_vm4, %v1268_v31, %v1292_v32 }
 0x356   : > { %1296 = vst [vmem:[%s430_s29] sm:$0x77] %v1294_v33 }
 0x357 PF: > { %s19_s13 = sadd.s32 1, %s1705_s13   ;;  %s2165_s30 = smov %s1697_s11 }
 0x358   : > { %p16_p8 = scmp.ge.s32.totalorder %s19_s13, 6   ;;  %s2166_s10 = smov %s1701_s12 }
 0x359   : > { %s2167_s11 = smov %s2170_s14  ;;  %s2168_s12 = smov %s2174_s15 }
 0x35a   :  { %18 = sbr.rel (!%p16_p8) target bundleno = 3 (0x3), region = 95 }

// kernel: style_residual_forward.2
= control target key start
LH: loop header
LB: loop body
LE: loop exit
PB: predicated region body
PF: predicated region fallthrough
CT: control target
= control target key end

     0   :  { %vm189_vm0 = vcmask 130048   ;;  %vm637_vm1 = vcmask 523264   ;;  %s2994_s1 = inlined_call_operand.vmem [shape: f32[16,512], index: 1, kind: input, shape index: {}]   ;;  %s2995_s0 = inlined_call_operand.vmem [shape: f32[2,512], index: 0, kind: input, shape index: {}]   ;;  %s2996_s4 = inlined_call_operand.vmem [shape: f32[64,512], index: 4, kind: input, shape index: {}]   ;;  %s2997_s2 = inlined_call_operand.vmem [shape: f32[1,16], index: 2, kind: input, shape index: {}]   ;;  %s2998_s7 = inlined_call_operand.vmem [shape: f32[64,512], index: 7, kind: input, shape index: {}]   ;;  %s2999_s5 = inlined_call_operand.vmem [shape: f32[1,64], index: 5, kind: input, shape index: {}]   ;;  %s3000_s8 = inlined_call_operand.vmem [shape: f32[1,64], index: 8, kind: input, shape index: {}]   ;;  %s3001_s3 = inlined_call_operand.vmem [shape: f32[64,16], index: 3, kind: input, shape index: {}]   ;;  %s3002_s6 = inlined_call_operand.vmem [shape: f32[64,64], index: 6, kind: input, shape index: {}]   ;;  %s3003_s9 = inlined_call_operand.vmem [shape: f32[64,64], index: 9, kind: input, shape index: {}]   ;;  %s3004_s10 = inlined_call_operand.vmem [shape: f32[2,64,16], index: 10, kind: output, shape index: {0}]   ;;  %s3005_s11 = inlined_call_operand.vmem [shape: f32[2,64,64], index: 11, kind: output, shape index: {1}]   ;;  %s3006_s12 = inlined_call_operand.vmem [shape: f32[2,64,64], index: 12, kind: output, shape index: {2}]  }
   0x1   :  { %v45_v0 = vld [vmem:[%s2994_s1 + $0x30] sm:$0xff]  ;;  %v46_v1 = vld [vmem:[%s2994_s1 + $0x38] sm:$0xff]  ;;  %v43_v2 = vld [vmem:[%s2994_s1 + $0x20] sm:$0xff] }
   0x2   :  { %111 = vmatpush.xpose.msra.mxu2 %v45_v0  ;;  %131 = vmatpush.xpose.msra.mxu3 %v46_v1  ;;  %v44_v3 = vld [vmem:[%s2994_s1 + $0x28] sm:$0xff]  ;;  %v41_v4 = vld [vmem:[%s2994_s1 + $0x10] sm:$0xff]  ;;  %v42_v5 = vld [vmem:[%s2994_s1 + $0x18] sm:$0xff] }
   0x3   :  { %71 = vmatpush.xpose.msra.mxu0 %v43_v2  ;;  %91 = vmatpush.xpose.msra.mxu1 %v44_v3  ;;  %v38_v6 = vld [vmem:[%s2995_s0] sm:$0xff]  ;;  %v40_v8 = vld [vmem:[%s2994_s1 + $0x8] sm:$0xff]  ;;  %v493_v9 = vld [vmem:[%s2996_s4 + $0xf0] sm:$0xff] }
   0x4   :  { %48 = vst [vmem:[#allocation1] ss:$4 sm:$0xff] %v38_v6  ;;  %v39_v7 = vld [vmem:[%s2994_s1] sm:$0xff]  ;;  %v494_v10 = vld [vmem:[%s2996_s4 + $0xf8] sm:$0xff]  ;;  %v492_v12 = vld [vmem:[%s2996_s4 + $0xe8] sm:$0xff] }
   0x5   :  { %v491_v11 = vld [vmem:[%s2996_s4 + $0xe0] sm:$0xff]  ;;  %v489_v13 = vld [vmem:[%s2996_s4 + $0xd0] sm:$0xff]  ;;  %v490_v14 = vld [vmem:[%s2996_s4 + $0xd8] sm:$0xff] }
   0x6   :  { %112 = vmatpush.xpose.msra.mxu2 %v41_v4  ;;  %132 = vmatpush.xpose.msra.mxu3 %v42_v5  ;;  %v487_v15 = vld [vmem:[%s2996_s4 + $0xc0] sm:$0xff]  ;;  %v488_v16 = vld [vmem:[%s2996_s4 + $0xc8] sm:$0xff]  ;;  %v485_v21 = vld [vmem:[%s2996_s4 + $0xb0] sm:$0xff] }
   0x7   :  { %72 = vmatpush.xpose.msra.mxu0 %v39_v7  ;;  %92 = vmatpush.xpose.msra.mxu1 %v40_v8  ;;  %v486_v22 = vld [vmem:[%s2996_s4 + $0xb8] sm:$0xff]  ;;  %v483_v23 = vld [vmem:[%s2996_s4 + $0xa0] sm:$0xff]  ;;  %v484_v24 = vld [vmem:[%s2996_s4 + $0xa8] sm:$0xff] }
   0x8   :  { %v481_v25 = vld [vmem:[%s2996_s4 + $0x90] sm:$0xff]  ;;  %v482_v26 = vld [vmem:[%s2996_s4 + $0x98] sm:$0xff]  ;;  %v479_v27 = vld [vmem:[%s2996_s4 + $0x80] sm:$0xff] }
   0x9   :  { %v480_v28 = vld [vmem:[%s2996_s4 + $0x88] sm:$0xff]  ;;  %v477_v33 = vld [vmem:[%s2996_s4 + $0x70] sm:$0xff]  ;;  %v478_v34 = vld [vmem:[%s2996_s4 + $0x78] sm:$0xff] }
   0xa   :  { %553 = vmatpush.xpose.msrb.mxu2 %v493_v9  ;;  %573 = vmatpush.xpose.msrb.mxu3 %v494_v10  ;;  %v475_v35 = vld [vmem:[%s2996_s4 + $0x60] sm:$0xff]  ;;  %v476_v36 = vld [vmem:[%s2996_s4 + $0x68] sm:$0xff]  ;;  %v473_v37 = vld [vmem:[%s2996_s4 + $0x50] sm:$0xff] }
   0xb   :  { %513 = vmatpush.xpose.msrb.mxu0 %v491_v11  ;;  %533 = vmatpush.xpose.msrb.mxu1 %v492_v12  ;;  %v51_v17 = vld.sshfl [vmem:[#allocation1 + $0x10] sm:$0xff pattern:$0x73625140]  ;;  %v52_v18 = vld.sshfl [vmem:[#allocation1 + $0x18] sm:$0xff pattern:$0x73625140] }
   0xc   :  { %113 = vmatmul.f32.vlgmr.msra.gmra.mxu2 %v51_v17  ;;  %133 = vmatmul.f32.vlgmr.msra.gmra.mxu3 %v52_v18  ;;  %v49_v19 = vld.sshfl [vmem:[#allocation1] sm:$0xff pattern:$0x73625140]  ;;  %v50_v20 = vld.sshfl [vmem:[#allocation1 + $0x8] sm:$0xff pattern:$0x73625140] }
   0xd   :  { %73 = vmatmul.f32.vlgmr.msra.gmra.mxu0 %v49_v19  ;;  %93 = vmatmul.f32.vlgmr.msra.gmra.mxu1 %v50_v20  ;;  %496 = vst [vmem:[#allocation1] ss:$4 sm:$0xff] %v38_v6  ;;  %v474_v38 = vld [vmem:[%s2996_s4 + $0x58] sm:$0xff]  ;;  %v471_v39 = vld [vmem:[%s2996_s4 + $0x40] sm:$0xff]  ;;  %v472_v40 = vld [vmem:[%s2996_s4 + $0x48] sm:$0xff] }
   0xe   :  { %554 = vmatpush.xpose.msrb.mxu2 %v489_v13  ;;  %574 = vmatpush.xpose.msrb.mxu3 %v490_v14  ;;  %v469_v41 = vld [vmem:[%s2996_s4 + $0x30] sm:$0xff]  ;;  %v470_v42 = vld [vmem:[%s2996_s4 + $0x38] sm:$0xff]  ;;  %v467_v43 = vld [vmem:[%s2996_s4 + $0x20] sm:$0xff] }
   0xf   :  { %514 = vmatpush.xpose.msrb.mxu0 %v487_v15  ;;  %534 = vmatpush.xpose.msrb.mxu1 %v488_v16  ;;  %v468_v44 = vld [vmem:[%s2996_s4 + $0x28] sm:$0xff]  ;;  %v465_v45 = vld [vmem:[%s2996_s4 + $0x10] sm:$0xff]  ;;  %v466_v46 = vld [vmem:[%s2996_s4 + $0x18] sm:$0xff] }
  0x10   :  { %v463_v47 = vld [vmem:[%s2996_s4] sm:$0xff]  ;;  %v464_v48 = vld [vmem:[%s2996_s4 + $0x8] sm:$0xff]  ;;  %v941_v49 = vld [vmem:[%s2998_s7 + $0xf0] sm:$0xff] }
  0x11   :  { %v942_v50 = vld [vmem:[%s2998_s7 + $0xf8] sm:$0xff]  ;;  %v939_v51 = vld [vmem:[%s2998_s7 + $0xe0] sm:$0xff]  ;;  %v940_v52 = vld [vmem:[%s2998_s7 + $0xe8] sm:$0xff] }
  0x12   :  { %555 = vmatpush.xpose.msrb.mxu2 %v485_v21  ;;  %575 = vmatpush.xpose.msrb.mxu3 %v486_v22  ;;  %v937_v53 = vld [vmem:[%s2998_s7 + $0xd0] sm:$0xff]  ;;  %v938_v54 = vld [vmem:[%s2998_s7 + $0xd8] sm:$0xff]  ;;  %v935_v55 = vld [vmem:[%s2998_s7 + $0xc0] sm:$0xff] }
  0x13   :  { %515 = vmatpush.xpose.msrb.mxu0 %v483_v23  ;;  %535 = vmatpush.xpose.msrb.mxu1 %v484_v24  ;;  %v936_v56 = vld [vmem:[%s2998_s7 + $0xc8] sm:$0xff]  ;;  %v933_v57 = vld [vmem:[%s2998_s7 + $0xb0] sm:$0xff]  ;;  %v934_v58 = vld [vmem:[%s2998_s7 + $0xb8] sm:$0xff] }
  0x14   :  { %v499_v29 = vld.sshfl [vmem:[#allocation1 + $0x10] sm:$0xff pattern:$0x73625140]  ;;  %v500_v30 = vld.sshfl [vmem:[#allocation1 + $0x18] sm:$0xff pattern:$0x73625140] }
  0x15   :  { %v497_v31 = vld.sshfl [vmem:[#allocation1] sm:$0xff pattern:$0x73625140]  ;;  %v498_v32 = vld.sshfl [vmem:[#allocation1 + $0x8] sm:$0xff pattern:$0x73625140] }
  0x16   :  { %556 = vmatpush.xpose.msrb.mxu2 %v481_v25  ;;  %576 = vmatpush.xpose.msrb.mxu3 %v482_v26  ;;  %944 = vst [vmem:[#allocation1] ss:$4 sm:$0xff] %v38_v6  ;;  %v931_v59 = vld [vmem:[%s2998_s7 + $0xa0] sm:$0xff]  ;;  %v932_v60 = vld [vmem:[%s2998_s7 + $0xa8] sm:$0xff]  ;;  %v929_v61 = vld [vmem:[%s2998_s7 + $0x90] sm:$0xff] }
  0x17   :  { %516 = vmatpush.xpose.msrb.mxu0 %v479_v27  ;;  %536 = vmatpush.xpose.msrb.mxu1 %v480_v28  ;;  %v930_v62 = vld [vmem:[%s2998_s7 + $0x98] sm:$0xff]  ;;  %v927_v63 = vld [vmem:[%s2998_s7 + $0x80] sm:$0xff]  ;;  %v928_v0 = vld [vmem:[%s2998_s7 + $0x88] sm:$0xff] }
  0x18   :  { %v925_v1 = vld [vmem:[%s2998_s7 + $0x70] sm:$0xff]  ;;  %v926_v2 = vld [vmem:[%s2998_s7 + $0x78] sm:$0xff]  ;;  %v923_v3 = vld [vmem:[%s2998_s7 + $0x60] sm:$0xff] }
  0x19   :  { %v924_v4 = vld [vmem:[%s2998_s7 + $0x68] sm:$0xff]  ;;  %v921_v5 = vld [vmem:[%s2998_s7 + $0x50] sm:$0xff]  ;;  %v922_v6 = vld [vmem:[%s2998_s7 + $0x58] sm:$0xff] }
  0x1a   :  { %557 = vmatpush.xpose.msrb.mxu2 %v477_v33  ;;  %577 = vmatpush.xpose.msrb.mxu3 %v478_v34  ;;  %v919_v7 = vld [vmem:[%s2998_s7 + $0x40] sm:$0xff]  ;;  %v920_v8 = vld [vmem:[%s2998_s7 + $0x48] sm:$0xff]  ;;  %v917_v9 = vld [vmem:[%s2998_s7 + $0x30] sm:$0xff] }
  0x1b   :  { %517 = vmatpush.xpose.msrb.mxu0 %v475_v35  ;;  %537 = vmatpush.xpose.msrb.mxu1 %v476_v36  ;;  %v918_v10 = vld [vmem:[%s2998_s7 + $0x38] sm:$0xff]  ;;  %v915_v11 = vld [vmem:[%s2998_s7 + $0x20] sm:$0xff]  ;;  %v916_v12 = vld [vmem:[%s2998_s7 + $0x28] sm:$0xff] }
  0x1c   :  { %v913_v13 = vld [vmem:[%s2998_s7 + $0x10] sm:$0xff]  ;;  %v914_v14 = vld [vmem:[%s2998_s7 + $0x18] sm:$0xff]  ;;  %v911_v16 = vld [vmem:[%s2998_s7] sm:$0xff] }
  0x1d   :  { %v947_v15 = vld.sshfl [vmem:[#allocation1 + $0x10] sm:$0xff pattern:$0x73625140]  ;;  %v912_v17 = vld [vmem:[%s2998_s7 + $0x8] sm:$0xff]  ;;  %v1369_v28 = vld [vmem:[%s2997_s2] ss:$0 sm:$0xff] }
  0x1e   :  { %558 = vmatpush.xpose.msrb.mxu2 %v473_v37  ;;  %578 = vmatpush.xpose.msrb.mxu3 %v474_v38  ;;  %v948_v18 = vld.sshfl [vmem:[#allocation1 + $0x18] sm:$0xff pattern:$0x73625140]  ;;  %v945_v19 = vld.sshfl [vmem:[#allocation1] sm:$0xff pattern:$0x73625140] }
  0x1f   :  { %518 = vmatpush.xpose.msrb.mxu0 %v471_v39  ;;  %538 = vmatpush.xpose.msrb.mxu1 %v472_v40  ;;  %v946_v20 = vld.sshfl [vmem:[#allocation1 + $0x8] sm:$0xff pattern:$0x73625140]  ;;  %v143_v33 = vld [vmem:[%s3001_s3] sm:$0xff]  ;;  %v146_v39 = vld [vmem:[%s3001_s3 + $0x18] sm:$0xff] }
  0x20   :  { %v148_v38 = vld [vmem:[%s3001_s3 + $0x28] sm:$0xff] }
  0x22   :  { %559 = vmatpush.xpose.msrb.mxu2 %v469_v41  ;;  %579 = vmatpush.xpose.msrb.mxu3 %v470_v42 }
  0x23   :  { %519 = vmatpush.xpose.msrb.mxu0 %v467_v43  ;;  %539 = vmatpush.xpose.msrb.mxu1 %v468_v44  ;;  %v144_v43 = vld [vmem:[%s3001_s3 + $0x8] sm:$0xff] }
  0x26   :  { %560 = vmatpush.xpose.msrb.mxu2 %v465_v45  ;;  %580 = vmatpush.xpose.msrb.mxu3 %v466_v46 }
  0x27   :  { %520 = vmatpush.xpose.msrb.mxu0 %v463_v47  ;;  %540 = vmatpush.xpose.msrb.mxu1 %v464_v48 }
  0x29   :  { %561 = vmatmul.f32.vlgmr.msrb.gmra.mxu2 %v499_v29  ;;  %581 = vmatmul.f32.vlgmr.msrb.gmra.mxu3 %v500_v30 }
  0x2a   :  { %1001 = vmatpush.xpose.msra.mxu2 %v941_v49  ;;  %1021 = vmatpush.xpose.msra.mxu3 %v942_v50 }
  0x2b   :  { %521 = vmatmul.f32.vlgmr.msrb.gmra.mxu0 %v497_v31  ;;  %541 = vmatmul.f32.vlgmr.msrb.gmra.mxu1 %v498_v32  ;;  %v1758_v31 = vld [vmem:[%s3001_s3 + $0x20] sm:$0xff]  ;;  %v145_v32 = vld [vmem:[%s3001_s3 + $0x10] sm:$0xff] }
  0x2c   :  { %961 = vmatpush.xpose.msra.mxu0 %v939_v51  ;;  %981 = vmatpush.xpose.msra.mxu1 %v940_v52 }
  0x2e   :  { %1002 = vmatpush.xpose.msra.mxu2 %v937_v53  ;;  %1022 = vmatpush.xpose.msra.mxu3 %v938_v54 }
  0x30   :  { %962 = vmatpush.xpose.msra.mxu0 %v935_v55  ;;  %982 = vmatpush.xpose.msra.mxu1 %v936_v56  ;;  %v150_v55 = vld [vmem:[%s3001_s3 + $0x38] sm:$0xff]  ;;  %v149_v56 = vld [vmem:[%s3001_s3 + $0x30] sm:$0xff] }
  0x32   :  { %1003 = vmatpush.xpose.msra.mxu2 %v933_v57  ;;  %1023 = vmatpush.xpose.msra.mxu3 %v934_v58 }
  0x34   :  { %963 = vmatpush.xpose.msra.mxu0 %v931_v59  ;;  %983 = vmatpush.xpose.msra.mxu1 %v932_v60 }
  0x36   :  { %1004 = vmatpush.xpose.msra.mxu2 %v929_v61  ;;  %1024 = vmatpush.xpose.msra.mxu3 %v930_v62 }
  0x38   :  { %964 = vmatpush.xpose.msra.mxu0 %v927_v63  ;;  %984 = vmatpush.xpose.msra.mxu1 %v928_v0 }
  0x3a   :  { %1005 = vmatpush.xpose.msra.mxu2 %v925_v1  ;;  %1025 = vmatpush.xpose.msra.mxu3 %v926_v2 }
  0x3c   :  { %965 = vmatpush.xpose.msra.mxu0 %v923_v3  ;;  %985 = vmatpush.xpose.msra.mxu1 %v924_v4 }
  0x3e   :  { %1006 = vmatpush.xpose.msra.mxu2 %v921_v5  ;;  %1026 = vmatpush.xpose.msra.mxu3 %v922_v6 }
  0x40   :  { %966 = vmatpush.xpose.msra.mxu0 %v919_v7  ;;  %986 = vmatpush.xpose.msra.mxu1 %v920_v8 }
  0x42   :  { %1007 = vmatpush.xpose.msra.mxu2 %v917_v9  ;;  %1027 = vmatpush.xpose.msra.mxu3 %v918_v10 }
  0x44   :  { %967 = vmatpush.xpose.msra.mxu0 %v915_v11  ;;  %987 = vmatpush.xpose.msra.mxu1 %v916_v12 }
  0x46   :  { %1008 = vmatpush.xpose.msra.mxu2 %v913_v13  ;;  %1028 = vmatpush.xpose.msra.mxu3 %v914_v14 }
  0x48   :  { %968 = vmatpush.xpose.msra.mxu0 %v911_v16  ;;  %988 = vmatpush.xpose.msra.mxu1 %v912_v17 }
  0x49   :  { %1009 = vmatmul.f32.vlgmr.msra.gmra.mxu2 %v947_v15  ;;  %1029 = vmatmul.f32.vlgmr.msra.gmra.mxu3 %v948_v18  ;;  %v1370_v15 = vld [vmem:[%s2999_s5] ss:$0 sm:$0xff] }
  0x4b   :  { %969 = vmatmul.f32.vlgmr.msra.gmra.mxu0 %v945_v19  ;;  %989 = vmatmul.f32.vlgmr.msra.gmra.mxu1 %v946_v20 }
  0x8a   :  { %v74_v21 = vpop.f32.mrf.mxu0  ;;  %v94_v22 = vpop.f32.mrf.mxu1 }
  0x8b   :  { %v95_v23 = vadd.f32 %v94_v22, %v74_v21 }
  0x8f   :  { %v114_v24 = vpop.f32.mrf.mxu2  ;;  %v134_v25 = vpop.f32.mrf.mxu3 }
  0x90   :  { %v115_v26 = vadd.f32 %v114_v24, %v95_v23 }
  0x92   :  { %v135_v27 = vadd.f32 %v134_v25, %v115_v26 }
  0x94   :  { %v137_v29 = vmul.f32 0.044194173, %v135_v27 }
  0x96   :  { %v142_v30 = vadd.f32 %v1369_v28, %v137_v29  ;;  %v1867_v28 = vld [vmem:[%s3002_s6] sm:$0xff]  ;;  %v592_v29 = vld [vmem:[%s3002_s6 + $0x8] sm:$0xff] }
  0x98   :  { %v153_v34 = vperm.slane %v142_v30, 0  ;;  %v152_v44 = vrot.slane %v142_v30, 1 }
  0x9a   :  { %v1767_v35 = vmul.f32 %v153_v34, %v1758_v31  ;;  %v1769_v36 = vmul.f32 %v153_v34, %v145_v32  ;;  %v1771_v37 = vmul.f32 %v153_v34, %v143_v33  ;;  %v1788_v45 = vmul.f32 %v153_v34, %v148_v38 }
  0x9b   :  { %v1793_v49 = vmul.f32 %v153_v34, %v146_v39  ;;  %v1795_v50 = vmul.f32 %v153_v34, %v144_v43  ;;  %v1797_v51 = vperm.slane %v152_v44, 0  ;;  %v1813_v59 = vmul.f32 %v153_v34, %v150_v55 }
  0x9c   :  { %v177_v40 = vmul.f32 %v1767_v35, %v1767_v35  ;;  %v175_v41 = vmul.f32 %v1769_v36, %v1769_v36  ;;  %v173_v42 = vmul.f32 %v1771_v37, %v1771_v37  ;;  %v178_v52 = vmul.f32 %v1788_v45, %v1788_v45 }
  0x9d   :  { %v176_v53 = vmul.f32 %v1793_v49, %v1793_v49  ;;  %v174_v54 = vmul.f32 %v1795_v50, %v1795_v50  ;;  %v1816_v60 = vmul.f32 %v1797_v51, %v143_v33  ;;  %v1819_v62 = vmul.f32 %v153_v34, %v149_v56 }
  0x9e   :  { %v202_v46 = vsel %vm189_vm0, %v177_v40, 0.0  ;;  %v196_v47 = vsel %vm189_vm0, %v175_v41, 0.0  ;;  %v190_v48 = vsel %vm189_vm0, %v173_v42, 0.0  ;;  %v205_v57 = vsel %vm189_vm0, %v178_v52, 0.0  ;;  %v593_v52 = vld [vmem:[%s3002_s6 + $0x10] sm:$0xff] }
  0x9f   :  { %203 = vadd.xlane.f32.xlu2 %v202_v46  ;;  %197 = vadd.xlane.f32.xlu1 %v196_v47  ;;  %v199_v58 = vsel %vm189_vm0, %v176_v53, 0.0  ;;  %v193_v61 = vsel %vm189_vm0, %v174_v54, 0.0  ;;  %v180_v2 = vmul.f32 %v1813_v59, %v1813_v59  ;;  %v181_v3 = vmul.f32 %v1816_v60, %v1816_v60  ;;  %v594_v46 = vld [vmem:[%s3002_s6 + $0x18] sm:$0xff]  ;;  %v595_v47 = vld [vmem:[%s3002_s6 + $0x20] sm:$0xff] }
  0xa0   :  { %191 = vadd.xlane.f32.xlu0 %v190_v48  ;;  %v179_v4 = vmul.f32 %v1819_v62, %v1819_v62  ;;  %v1830_v10 = vmul.f32 %v1797_v51, %v145_v32  ;;  %v1833_v11 = vmul.f32 %v1797_v51, %v146_v39  ;;  %v1837_v13 = vmul.f32 %v1797_v51, %v144_v43 }
  0xa1   :  { %v211_v8 = vsel %vm189_vm0, %v180_v2, 0.0  ;;  %v214_v9 = vsel %vm189_vm0, %v181_v3, 0.0  ;;  %v1853_v23 = vmul.f32 %v1797_v51, %v148_v38  ;;  %v1856_v24 = vmul.f32 %v1797_v51, %v149_v56  ;;  %v598_v2 = vld [vmem:[%s3002_s6 + $0x38] sm:$0xff]  ;;  %v596_v3 = vld [vmem:[%s3002_s6 + $0x28] sm:$0xff] }
  0xa2   :  { %v208_v12 = vsel %vm189_vm0, %v179_v4, 0.0  ;;  %v183_v17 = vmul.f32 %v1830_v10, %v1830_v10  ;;  %v184_v18 = vmul.f32 %v1833_v11, %v1833_v11  ;;  %v182_v19 = vmul.f32 %v1837_v13, %v1837_v13 }
  0xa3   :  { %v1861_v26 = vmul.f32 %v1797_v51, %v1758_v31  ;;  %v186_v30 = vmul.f32 %v1853_v23, %v1853_v23  ;;  %v187_v32 = vmul.f32 %v1856_v24, %v1856_v24  ;;  %v1887_v41 = vmul.f32 %v1797_v51, %v150_v55 }
  0xa4   :  { %v220_v21 = vsel %vm189_vm0, %v183_v17, 0.0  ;;  %v223_v22 = vsel %vm189_vm0, %v184_v18, 0.0  ;;  %v217_v25 = vsel %vm189_vm0, %v182_v19, 0.0 }
  0xa5   :  { %v185_v31 = vmul.f32 %v1861_v26, %v1861_v26  ;;  %v229_v38 = vsel %vm189_vm0, %v186_v30, 0.0  ;;  %v232_v39 = vsel %vm189_vm0, %v187_v32, 0.0  ;;  %v188_v44 = vmul.f32 %v1887_v41, %v1887_v41 }
  0xa7   :  { %206 = vadd.xlane.f32.xlu2 %v205_v57  ;;  %200 = vadd.xlane.f32.xlu1 %v199_v58  ;;  %v226_v40 = vsel %vm189_vm0, %v185_v31, 0.0  ;;  %v235_v55 = vsel %vm189_vm0, %v188_v44, 0.0 }
  0xa8   :  { %v522_v63 = vpop.f32.mrf.mxu0  ;;  %v542_v0 = vpop.f32.mrf.mxu1  ;;  %194 = vadd.xlane.f32.xlu0 %v193_v61 }
  0xa9   :  { %v543_v1 = vadd.f32 %v542_v0, %v522_v63 }
  0xac   :  { %v562_v5 = vpop.f32.mrf.mxu2  ;;  %v582_v6 = vpop.f32.mrf.mxu3 }
  0xad   :  { %v563_v7 = vadd.f32 %v562_v5, %v543_v1  ;;  %v597_v1 = vld [vmem:[%s3002_s6 + $0x30] sm:$0xff] }
  0xaf   :  { %212 = vadd.xlane.f32.xlu1 %v211_v8  ;;  %215 = vadd.xlane.f32.xlu2 %v214_v9  ;;  %v583_v14 = vadd.f32 %v582_v6, %v563_v7 }
  0xb0   :  { %209 = vadd.xlane.f32.xlu0 %v208_v12 }
  0xb1   :  { %v585_v16 = vmul.f32 0.044194173, %v583_v14 }
  0xb3   :  { %v1848_v20 = vadd.f32 %v1370_v15, %v585_v16 }
  0xb5   :  { %v601_v27 = vperm.slane %v1848_v20, 0  ;;  %v600_v5 = vrot.slane %v1848_v20, 1 }
  0xb7   :  { %221 = vadd.xlane.f32.xlu1 %v220_v21  ;;  %224 = vadd.xlane.f32.xlu2 %v223_v22  ;;  %v1879_v33 = vmul.f32 %v601_v27, %v1867_v28  ;;  %v1881_v34 = vmul.f32 %v601_v27, %v592_v29  ;;  %v1906_v53 = vmul.f32 %v601_v27, %v594_v46  ;;  %v602_v18 = vperm.slane %v600_v5, 0 }
  0xb8   :  { %218 = vadd.xlane.f32.xlu0 %v217_v25  ;;  %v1908_v54 = vmul.f32 %v601_v27, %v595_v47  ;;  %v1911_v56 = vmul.f32 %v601_v27, %v593_v52  ;;  %v1931_v9 = vmul.f32 %v601_v27, %v597_v1  ;;  %v1933_v12 = vmul.f32 %v601_v27, %v598_v2 }
  0xb9   :  { %v621_v42 = vmul.f32 %v1879_v33, %v1879_v33  ;;  %v622_v43 = vmul.f32 %v1881_v34, %v1881_v34  ;;  %v624_v61 = vmul.f32 %v1906_v53, %v1906_v53  ;;  %v1936_v15 = vmul.f32 %v601_v27, %v596_v3 }
  0xba   :  { %v625_v63 = vmul.f32 %v1908_v54, %v1908_v54  ;;  %v623_v0 = vmul.f32 %v1911_v56, %v1911_v56  ;;  %v627_v19 = vmul.f32 %v1931_v9, %v1931_v9  ;;  %v628_v20 = vmul.f32 %v1933_v12, %v1933_v12 }
  0xbb   :  { %v638_v48 = vsel %vm637_vm1, %v621_v42, 0.0  ;;  %v641_v51 = vsel %vm637_vm1, %v622_v43, 0.0  ;;  %v647_v7 = vsel %vm637_vm1, %v624_v61, 0.0  ;;  %v626_v21 = vmul.f32 %v1936_v15, %v1936_v15  ;;  %v1039_v61 = vld [vmem:[%s3003_s9] sm:$0xff] }
  0xbc   :  { %v650_v8 = vsel %vm637_vm1, %v625_v63, 0.0  ;;  %v644_v14 = vsel %vm637_vm1, %v623_v0, 0.0  ;;  %v656_v25 = vsel %vm637_vm1, %v627_v19, 0.0  ;;  %v659_v30 = vsel %vm637_vm1, %v628_v20, 0.0 }
  0xbd   :  { %v1946_v27 = vmul.f32 %v602_v18, %v592_v29  ;;  %v1948_v32 = vmul.f32 %v602_v18, %v593_v52  ;;  %v653_v31 = vsel %vm637_vm1, %v626_v21, 0.0  ;;  %v1967_v52 = vmul.f32 %v602_v18, %v596_v3 }
  0xbe   :  { %v1985_v5 = vmul.f32 %v602_v18, %v598_v2  ;;  %v1041_v2 = vld [vmem:[%s3003_s9 + $0x10] sm:$0xff] }
  0xbf   :  { %230 = vadd.xlane.f32.xlu1 %v229_v38  ;;  %233 = vadd.xlane.f32.xlu2 %v232_v39  ;;  %v1952_v38 = vmul.f32 %v602_v18, %v1867_v28  ;;  %v630_v42 = vmul.f32 %v1946_v27, %v1946_v27  ;;  %v631_v29 = vmul.f32 %v1948_v32, %v1948_v32 }
  0xc0   :  { %227 = vadd.xlane.f32.xlu0 %v226_v40  ;;  %v1371_v40 = vld [vmem:[%s3000_s8] ss:$0 sm:$0xff] }
  0xc1   :  { %v629_v43 = vmul.f32 %v1952_v38, %v1952_v38  ;;  %v668_v28 = vsel %vm637_vm1, %v631_v29, 0.0  ;;  %v1043_v29 = vld [vmem:[%s3003_s9 + $0x20] sm:$0xff] }
  0xc7   :  { %639 = vadd.xlane.f32.xlu1 %v638_v48  ;;  %642 = vadd.xlane.f32.xlu2 %v641_v51  ;;  %v665_v48 = vsel %vm637_vm1, %v630_v42, 0.0  ;;  %v1965_v51 = vmul.f32 %v602_v18, %v595_v47  ;;  %v634_v47 = vmul.f32 %v1967_v52, %v1967_v52  ;;  %v1045_v42 = vld [vmem:[%s3003_s9 + $0x30] sm:$0xff] }
  0xc8   :  { %236 = vadd.xlane.f32.xlu0 %v235_v55  ;;  %v970_v57 = vpop.f32.mrf.mxu0  ;;  %v990_v58 = vpop.f32.mrf.mxu1  ;;  %v662_v55 = vsel %vm637_vm1, %v629_v43, 0.0 }
  0xc9   :  { %v991_v4 = vadd.f32 %v990_v58, %v970_v57  ;;  %v1970_v57 = vmul.f32 %v602_v18, %v594_v46  ;;  %v633_v63 = vmul.f32 %v1965_v51, %v1965_v51 }
  0xcb   :  { %v632_v0 = vmul.f32 %v1970_v57, %v1970_v57  ;;  %v674_v46 = vsel %vm637_vm1, %v633_v63, 0.0 }
  0xcc   :  { %v1010_v6 = vpop.f32.mrf.mxu2  ;;  %v1030_v17 = vpop.f32.mrf.mxu3 }
  0xcd   :  { %v1011_v16 = vadd.f32 %v1010_v6, %v991_v4  ;;  %v677_v4 = vsel %vm637_vm1, %v634_v47, 0.0  ;;  %v671_v6 = vsel %vm637_vm1, %v632_v0, 0.0 }
  0xcf   :  { %648 = vadd.xlane.f32.xlu1 %v647_v7  ;;  %651 = vadd.xlane.f32.xlu2 %v650_v8  ;;  %v1031_v22 = vadd.f32 %v1030_v17, %v1011_v16  ;;  %v1988_v7 = vmul.f32 %v602_v18, %v597_v1  ;;  %v1042_v17 = vld [vmem:[%s3003_s9 + $0x18] sm:$0xff]  ;;  %v1040_v18 = vld [vmem:[%s3003_s9 + $0x8] sm:$0xff] }
  0xd0   :  { %645 = vadd.xlane.f32.xlu0 %v644_v14  ;;  %v636_v14 = vmul.f32 %v1985_v5, %v1985_v5 }
  0xd1   :  { %v1033_v39 = vmul.f32 0.044194173, %v1031_v22  ;;  %v635_v16 = vmul.f32 %v1988_v7, %v1988_v7 }
  0xd2   :  { %v683_v19 = vsel %vm637_vm1, %v636_v14, 0.0 }
  0xd3   :  { %v1038_v44 = vadd.f32 %v1371_v40, %v1033_v39  ;;  %v680_v22 = vsel %vm637_vm1, %v635_v16, 0.0  ;;  %v1044_v40 = vld [vmem:[%s3003_s9 + $0x28] sm:$0xff] }
  0xd5   :  { %v1049_v58 = vperm.slane %v1038_v44, 0  ;;  %v1048_v43 = vrot.slane %v1038_v44, 1 }
  0xd7   :  { %657 = vadd.xlane.f32.xlu1 %v656_v25  ;;  %660 = vadd.xlane.f32.xlu2 %v659_v30  ;;  %v1981_v3 = vmul.f32 %v1049_v58, %v1039_v61  ;;  %v2007_v20 = vmul.f32 %v1049_v58, %v1041_v2  ;;  %v2009_v21 = vmul.f32 %v1049_v58, %v1042_v17 }
  0xd8   :  { %654 = vadd.xlane.f32.xlu0 %v653_v31  ;;  %v2012_v25 = vmul.f32 %v1049_v58, %v1040_v18  ;;  %v2033_v63 = vmul.f32 %v1049_v58, %v1045_v42  ;;  %v2036_v0 = vmul.f32 %v1049_v58, %v1043_v29 }
  0xd9   :  { %v1069_v8 = vmul.f32 %v1981_v3, %v1981_v3  ;;  %3020 = vst [vmem:[#allocation2_spill] sm:$0xff] %v2009_v21  ;;  %v1071_v30 = vmul.f32 %v2007_v20, %v2007_v20  ;;  %v1072_v31 = vmul.f32 %v2009_v21, %v2009_v21 }
  0xda   :  { %v1070_v39 = vmul.f32 %v2012_v25, %v2012_v25  ;;  %3022 = vst [vmem:[#allocation4_spill] sm:$0xff] %v2033_v63  ;;  %v1075_v44 = vmul.f32 %v2033_v63, %v2033_v63 }
  0xdb   :  { %v1085_v1 = vsel %vm637_vm1, %v1069_v8, 0.0  ;;  %3023 = vst [vmem:[#allocation5_spill] sm:$0xff] %v2036_v0  ;;  %v1046_v8 = vld [vmem:[%s3003_s9 + $0x38] sm:$0xff] }
  0xdc   :  { %v1088_v47 = vsel %vm637_vm1, %v1070_v39, 0.0  ;;  %v1103_v16 = vsel %vm637_vm1, %v1075_v44, 0.0 }
  0xdf   :  { %666 = vadd.xlane.f32.xlu1 %v665_v48  ;;  %669 = vadd.xlane.f32.xlu2 %v668_v28  ;;  %v1091_v48 = vsel %vm637_vm1, %v1071_v30, 0.0  ;;  %v1094_v28 = vsel %vm637_vm1, %v1072_v31, 0.0  ;;  %v2054_v30 = vmul.f32 %v1049_v58, %v1046_v8 }
  0xe0   :  { %663 = vadd.xlane.f32.xlu0 %v662_v55  ;;  %v2031_v55 = vmul.f32 %v1049_v58, %v1044_v40 }
  0xe1   :  { %3026 = vst [vmem:[#allocation8_spill] sm:$0xff] %v2054_v30 }
  0xe2   :  { %3021 = vst [vmem:[#allocation3_spill] sm:$0xff] %v2031_v55 }
  0xe7   :  { %675 = vadd.xlane.f32.xlu1 %v674_v46  ;;  %678 = vadd.xlane.f32.xlu2 %v677_v4  ;;  %v1050_v46 = vperm.slane %v1048_v43, 0  ;;  %v1074_v4 = vmul.f32 %v2031_v55, %v2031_v55  ;;  %v1076_v43 = vmul.f32 %v2054_v30, %v2054_v30 }
  0xe8   :  { %672 = vadd.xlane.f32.xlu0 %v671_v6  ;;  %v1073_v6 = vmul.f32 %v2036_v0, %v2036_v0 }
  0xe9   :  { %v1100_v14 = vsel %vm637_vm1, %v1074_v4, 0.0  ;;  %v1106_v58 = vsel %vm637_vm1, %v1076_v43, 0.0 }
  0xef   :  { %684 = vadd.xlane.f32.xlu1 %v683_v19  ;;  %1086 = vadd.xlane.f32.xlu2 %v1085_v1  ;;  %v2049_v1 = vmul.f32 %v1050_v46, %v1039_v61  ;;  %v2051_v19 = vmul.f32 %v1050_v46, %v1040_v18 }
  0xf0   :  { %681 = vadd.xlane.f32.xlu0 %v680_v22  ;;  %v1097_v22 = vsel %vm637_vm1, %v1073_v6, 0.0 }
  0xf1   :  { %3024 = vst [vmem:[#allocation6_spill] sm:$0xff] %v2049_v1  ;;  %v1077_v31 = vmul.f32 %v2049_v1, %v2049_v1  ;;  %v1078_v39 = vmul.f32 %v2051_v19, %v2051_v19 }
  0xf2   :  { %3025 = vst [vmem:[#allocation7_spill] sm:$0xff] %v2051_v19 }
  0xf3   :  { %v1109_v61 = vsel %vm637_vm1, %v1077_v31, 0.0  ;;  %v1112_v18 = vsel %vm637_vm1, %v1078_v39, 0.0 }
  0xf7   :  { %1092 = vadd.xlane.f32.xlu1 %v1091_v48  ;;  %1095 = vadd.xlane.f32.xlu2 %v1094_v28  ;;  %v2064_v48 = vmul.f32 %v1050_v46, %v1042_v17  ;;  %v2066_v28 = vmul.f32 %v1050_v46, %v1043_v29 }
  0xf8   :  { %1089 = vadd.xlane.f32.xlu0 %v1088_v47  ;;  %v2069_v47 = vmul.f32 %v1050_v46, %v1041_v2 }
  0xf9   :  { %3027 = vst [vmem:[#allocation9_spill] sm:$0xff] %v2064_v48  ;;  %v1080_v4 = vmul.f32 %v2064_v48, %v2064_v48  ;;  %v1081_v44 = vmul.f32 %v2066_v28, %v2066_v28 }
  0xfa   :  { %3028 = vst [vmem:[#allocation10_spill] sm:$0xff] %v2066_v28  ;;  %v1079_v6 = vmul.f32 %v2069_v47, %v2069_v47 }
  0xfb   :  { %3029 = vst [vmem:[#allocation11_spill] sm:$0xff] %v2069_v47  ;;  %v1118_v17 = vsel %vm637_vm1, %v1080_v4, 0.0  ;;  %v1121_v29 = vsel %vm637_vm1, %v1081_v44, 0.0 }
  0xfc   :  { %v1115_v2 = vsel %vm637_vm1, %v1079_v6, 0.0 }
  0xff   :  { %1101 = vadd.xlane.f32.xlu1 %v1100_v14  ;;  %1104 = vadd.xlane.f32.xlu2 %v1103_v16  ;;  %v2079_v14 = vmul.f32 %v1050_v46, %v1045_v42  ;;  %v2081_v16 = vmul.f32 %v1050_v46, %v1046_v8 }
 0x100   :  { %1098 = vadd.xlane.f32.xlu0 %v1097_v22  ;;  %v2084_v22 = vmul.f32 %v1050_v46, %v1044_v40 }
 0x101   :  { %3030 = vst [vmem:[#allocation12_spill] sm:$0xff] %v2079_v14  ;;  %v1083_v43 = vmul.f32 %v2079_v14, %v2079_v14 }
 0x102   :  { %3031 = vst [vmem:[#allocation13_spill] sm:$0xff] %v2081_v16  ;;  %v1082_v8 = vmul.f32 %v2084_v22, %v2084_v22 }
 0x103   :  { %3032 = vst [vmem:[#allocation14_spill] sm:$0xff] %v2084_v22  ;;  %v1127_v40 = vsel %vm637_vm1, %v1083_v43, 0.0 }
 0x104   :  { %v1124_v44 = vsel %vm637_vm1, %v1082_v8, 0.0 }
 0x107   :  { %1110 = vadd.xlane.f32.xlu1 %v1109_v61  ;;  %1113 = vadd.xlane.f32.xlu2 %v1112_v18  ;;  %v1084_v61 = vmul.f32 %v2081_v16, %v2081_v16 }
 0x108   :  { %1107 = vadd.xlane.f32.xlu0 %v1106_v58 }
 0x109   :  { %v1130_v46 = vsel %vm637_vm1, %v1084_v61, 0.0 }
 0x10f   :  { %1119 = vadd.xlane.f32.xlu1 %v1118_v17  ;;  %1122 = vadd.xlane.f32.xlu2 %v1121_v29 }
 0x110   :  { %1116 = vadd.xlane.f32.xlu0 %v1115_v2 }
 0x112   :  { %v204_v31 = vpop.xlane.xlu2 %203  ;;  %v198_v39 = vpop.xlane.xlu1 %197 }
 0x113   :  { %v242_v18 = vadd.f32 1e-08, %v204_v31  ;;  %v240_v42 = vadd.f32 1e-08, %v198_v39  ;;  %v192_v58 = vpop.xlane.xlu0 %191 }
 0x114   :  { %v2092_v4 = vadd.f32 1e-08, %v192_v58 }
 0x115   :  { %1372 = vrsqrt.f32 %v242_v18  ;;  %vm300_vm2 = vweird.f32 %v242_v18  ;;  %vm280_vm4 = vweird.f32 %v240_v42 }
 0x116   :  { %1374 = vrsqrt.f32 %v240_v42  ;;  %vm260_vm6 = vweird.f32 %v2092_v4 }
 0x117   :  { %1376 = vrsqrt.f32 %v2092_v4  ;;  %1128 = vadd.xlane.f32.xlu1 %v1127_v40  ;;  %1131 = vadd.xlane.f32.xlu2 %v1130_v46 }
 0x118   :  { %1125 = vadd.xlane.f32.xlu0 %v1124_v44 }
 0x11a   :  { %v207_v6 = vpop.xlane.xlu2 %206  ;;  %v201_v17 = vpop.xlane.xlu1 %200 }
 0x11b   :  { %v1373_v29 = vpop.eup %1372  ;;  %v2098_v2 = vadd.f32 1e-08, %v207_v6  ;;  %v2100_v31 = vadd.f32 1e-08, %v201_v17  ;;  %v195_v39 = vpop.xlane.xlu0 %194 }
 0x11c   :  { %v1375_v58 = vpop.eup %1374  ;;  %v295_v16 = vmul.f32 %v1373_v29, %v242_v18  ;;  %v2102_v43 = vadd.f32 1e-08, %v195_v39  ;;  %vm301_vm3 = vweird.f32 %v1373_v29 }
 0x11d   :  { %v1377_v61 = vpop.eup %1376  ;;  %v275_v22 = vmul.f32 %v1375_v58, %v240_v42  ;;  %1378 = vrsqrt.f32 %v2098_v2  ;;  %vm281_vm5 = vweird.f32 %v1375_v58  ;;  %vm310_vm8 = vweird.f32 %v2098_v2  ;;  %vm302_vm9 = vmor %vm300_vm2, %vm301_vm3 }
 0x11e   :  { %v296_v40 = vmul.f32 %v1373_v29, %v295_v16  ;;  %v255_v8 = vmul.f32 %v1377_v61, %v2092_v4  ;;  %1380 = vrsqrt.f32 %v2100_v31  ;;  %vm261_vm7 = vweird.f32 %v1377_v61  ;;  %vm282_vm11 = vmor %vm280_vm4, %vm281_vm5 }
 0x11f   :  { %v276_v46 = vmul.f32 %v1375_v58, %v275_v22  ;;  %1382 = vrsqrt.f32 %v2102_v43  ;;  %vm290_vm10 = vweird.f32 %v2100_v31  ;;  %vm262_vm12 = vmor %vm260_vm6, %vm261_vm7  ;;  %vm270_vm3 = vweird.f32 %v2102_v43 }
 0x120   :  { %v297_v44 = vmul.f32 0.5, %v296_v40  ;;  %v256_v6 = vmul.f32 %v1377_v61, %v255_v8 }
 0x121   :  { %v277_v17 = vmul.f32 0.5, %v276_v46 }
 0x122   :  { %v298_v14 = vsub.f32 1.5, %v297_v44  ;;  %v257_v39 = vmul.f32 0.5, %v256_v6  ;;  %v213_v28 = vpop.xlane.xlu1 %212  ;;  %v216_v47 = vpop.xlane.xlu2 %215 }
 0x123   :  { %v2108_v48 = vpop.eup %1378  ;;  %v278_v16 = vsub.f32 1.5, %v277_v17  ;;  %v2111_v19 = vadd.f32 1e-08, %v213_v28  ;;  %v210_v22 = vpop.xlane.xlu0 %209  ;;  %v2136_v0 = vadd.f32 1e-08, %v216_v47 }
 0x124   :  { %v2113_v30 = vpop.eup %1380  ;;  %v299_v40 = vmul.f32 %v1373_v29, %v298_v14  ;;  %v258_v8 = vsub.f32 1.5, %v257_v39  ;;  %v305_v46 = vmul.f32 %v2108_v48, %v2098_v2  ;;  %vm311_vm13 = vweird.f32 %v2108_v48 }
 0x125   :  { %v2118_v44 = vpop.eup %1382  ;;  %v279_v6 = vmul.f32 %v1375_v58, %v278_v16  ;;  %v285_v28 = vmul.f32 %v2113_v30, %v2100_v31  ;;  %1384 = vrsqrt.f32 %v2111_v19  ;;  %vm291_vm14 = vweird.f32 %v2113_v30  ;;  %vm312_vm2 = vmor %vm310_vm8, %vm311_vm13 }
 0x126   :  { %v303_v14 = vsel %vm302_vm9, %v1373_v29, %v299_v40  ;;  %v259_v17 = vmul.f32 %v1377_v61, %v258_v8  ;;  %v306_v39 = vmul.f32 %v2108_v48, %v305_v46  ;;  %v265_v1 = vmul.f32 %v2118_v44, %v2102_v43  ;;  %vm292_vm4 = vmor %vm290_vm10, %vm291_vm14 }
 0x127   :  { %v418_v18 = vmul.f32 %v303_v14, %v1767_v35  ;;  %v283_v16 = vsel %vm282_vm11, %v1375_v58, %v279_v6  ;;  %v286_v63 = vmul.f32 %v2113_v30, %v285_v28  ;;  %v2142_v14 = vadd.f32 1e-08, %v210_v22 }
 0x128   :  { %v416_v42 = vmul.f32 %v283_v16, %v1769_v36  ;;  %v263_v29 = vsel %vm262_vm12, %v1377_v61, %v259_v17  ;;  %v307_v40 = vmul.f32 0.5, %v306_v39  ;;  %v266_v8 = vmul.f32 %v2118_v44, %v265_v1 }
 0x129   :  { %v434_v46 = vmul.f32 1.4142135, %v418_v18  ;;  %v414_v55 = vmul.f32 %v263_v29, %v1771_v37  ;;  %v287_v35 = vmul.f32 0.5, %v286_v63  ;;  %1386 = vrsqrt.f32 %v2136_v0 }
 0x12a   :  { %v432_v58 = vmul.f32 1.4142135, %v416_v42  ;;  %v308_v6 = vsub.f32 1.5, %v307_v40  ;;  %v267_v4 = vmul.f32 0.5, %v266_v8  ;;  %v222_v28 = vpop.xlane.xlu1 %221  ;;  %v225_v47 = vpop.xlane.xlu2 %224  ;;  %vm271_vm15 = vweird.f32 %v2118_v44 }
 0x12b   :  { %v2144_v21 = vpop.eup %1384  ;;  %450 = vst.msk [vmem:[%s3004_s10 + $0x20] sm:$0xff] %vm189_vm0, %v434_v46  ;;  %v430_v36 = vmul.f32 1.4142135, %v414_v55  ;;  %v288_v1 = vsub.f32 1.5, %v287_v35  ;;  %v219_v37 = vpop.xlane.xlu0 %218  ;;  %1388 = vrsqrt.f32 %v2142_v14  ;;  %v2171_v17 = vadd.f32 1e-08, %v222_v28  ;;  %vm272_vm5 = vmor %vm270_vm3, %vm271_vm15 }
 0x12c   :  { %448 = vst.msk [vmem:[%s3004_s10 + $0x10] sm:$0xff] %vm189_vm0, %v432_v58  ;;  %v309_v63 = vmul.f32 %v2108_v48, %v308_v6  ;;  %v268_v61 = vsub.f32 1.5, %v267_v4  ;;  %v325_v22 = vmul.f32 %v2144_v21, %v2111_v19  ;;  %v2180_v16 = vadd.f32 1e-08, %v219_v37 }
 0x12d   :  { %446 = vst.msk [vmem:[%s3004_s10] sm:$0xff] %vm189_vm0, %v430_v36  ;;  %v289_v55 = vmul.f32 %v2113_v30, %v288_v1  ;;  %1390 = vrsqrt.f32 %v2171_v17  ;;  %vm331_vm6 = vweird.f32 %v2144_v21  ;;  %vm330_vm7 = vweird.f32 %v2111_v19 }
 0x12e   :  { %v313_v39 = vsel %vm312_vm2, %v2108_v48, %v309_v63  ;;  %v269_v18 = vmul.f32 %v2118_v44, %v268_v61  ;;  %v326_v2 = vmul.f32 %v2144_v21, %v325_v22  ;;  %1392 = vrsqrt.f32 %v2180_v16  ;;  %vm332_vm9 = vmor %vm330_vm7, %vm331_vm6 }
 0x12f   :  { %v419_v42 = vmul.f32 %v313_v39, %v1788_v45  ;;  %v293_v43 = vsel %vm292_vm4, %v2113_v30, %v289_v55  ;;  %v2190_v40 = vpop.eup %1386  ;;  %v2193_v45 = vadd.f32 1e-08, %v225_v47  ;;  %vm340_vm8 = vweird.f32 %v2136_v0 }
 0x130   :  { %v417_v48 = vmul.f32 %v293_v43, %v1793_v49  ;;  %v273_v31 = vsel %vm272_vm5, %v2118_v44, %v269_v18  ;;  %v327_v29 = vmul.f32 0.5, %v326_v2  ;;  %v335_v58 = vmul.f32 %v2190_v40, %v2136_v0 }
 0x131   :  { %v435_v8 = vmul.f32 1.4142135, %v419_v42  ;;  %v415_v46 = vmul.f32 %v273_v31, %v1795_v50  ;;  %v2198_v44 = vpop.eup %1388  ;;  %1394 = vrsqrt.f32 %v2193_v45  ;;  %vm320_vm10 = vweird.f32 %v2142_v14 }
 0x132   :  { %v433_v30 = vmul.f32 1.4142135, %v417_v48  ;;  %v328_v35 = vsub.f32 1.5, %v327_v29  ;;  %v231_v49 = vpop.xlane.xlu1 %230  ;;  %v234_v6 = vpop.xlane.xlu2 %233  ;;  %v315_v36 = vmul.f32 %v2198_v44, %v2142_v14  ;;  %v336_v1 = vmul.f32 %v2190_v40, %v335_v58 }
 0x133   :  { %451 = vst.msk [vmem:[%s3004_s10 + $0x28] sm:$0xff] %vm189_vm0, %v435_v8  ;;  %v431_v4 = vmul.f32 1.4142135, %v415_v46  ;;  %v2206_v50 = vadd.f32 1e-08, %v231_v49  ;;  %v228_v28 = vpop.xlane.xlu0 %227  ;;  %v2217_v19 = vpop.eup %1390  ;;  %vm360_vm11 = vweird.f32 %v2171_v17  ;;  %vm341_vm12 = vweird.f32 %v2190_v40 }
 0x134   :  { %449 = vst.msk [vmem:[%s3004_s10 + $0x18] sm:$0xff] %vm189_vm0, %v433_v30  ;;  %v329_v47 = vmul.f32 %v2144_v21, %v328_v35  ;;  %v2227_v37 = vadd.f32 1e-08, %v228_v28  ;;  %v2229_v63 = vadd.f32 1e-08, %v234_v6  ;;  %v2231_v61 = vpop.eup %1392  ;;  %v316_v55 = vmul.f32 %v2198_v44, %v315_v36  ;;  %vm342_vm15 = vmor %vm340_vm8, %vm341_vm12 }
 0x135   :  { %447 = vst.msk [vmem:[%s3004_s10 + $0x8] sm:$0xff] %vm189_vm0, %v431_v4  ;;  %1396 = vrsqrt.f32 %v2206_v50  ;;  %v337_v39 = vmul.f32 0.5, %v336_v1  ;;  %v355_v18 = vmul.f32 %v2217_v19, %v2171_v17  ;;  %v345_v42 = vmul.f32 %v2231_v61, %v2180_v16 }
 0x136   :  { %v333_v22 = vsel %vm332_vm9, %v2144_v21, %v329_v47  ;;  %vm350_vm13 = vweird.f32 %v2180_v16  ;;  %v317_v43 = vmul.f32 0.5, %v316_v55  ;;  %1398 = vrsqrt.f32 %v2227_v37 }
 0x137   :  { %v421_v2 = vmul.f32 %v333_v22, %v1813_v59  ;;  %v338_v48 = vsub.f32 1.5, %v337_v39  ;;  %v356_v21 = vmul.f32 %v2217_v19, %v355_v18  ;;  %v2245_v31 = vpop.eup %1394  ;;  %vm321_vm14 = vweird.f32 %v2198_v44 }
 0x138   :  { %v346_v59 = vmul.f32 %v2231_v61, %v345_v42  ;;  %1400 = vrsqrt.f32 %v2229_v63  ;;  %v318_v8 = vsub.f32 1.5, %v317_v43  ;;  %v365_v35 = vmul.f32 %v2245_v31, %v2193_v45  ;;  %vm322_vm4 = vmor %vm320_vm10, %vm321_vm14 }
 0x139   :  { %v437_v29 = vmul.f32 1.4142135, %v421_v2  ;;  %v339_v46 = vmul.f32 %v2190_v40, %v338_v48  ;;  %v357_v30 = vmul.f32 0.5, %v356_v21  ;;  %vm361_vm2 = vweird.f32 %v2217_v19 }
 0x13a   :  { %v640_v58 = vpop.xlane.xlu1 %639  ;;  %v2253_v49 = vpop.xlane.xlu2 %642  ;;  %v347_v4 = vmul.f32 0.5, %v346_v59  ;;  %vm370_vm3 = vweird.f32 %v2193_v45  ;;  %v319_v36 = vmul.f32 %v2198_v44, %v318_v8  ;;  %v366_v55 = vmul.f32 %v2245_v31, %v365_v35  ;;  %vm362_vm7 = vmor %vm360_vm11, %vm361_vm2 }
 0x13b   :  { %v2255_v6 = vpop.eup %1396  ;;  %453 = vst.msk [vmem:[%s3004_s10 + $0x38] sm:$0xff] %vm189_vm0, %v437_v29  ;;  %v2267_v28 = vadd.f32 1e-08, %v640_v58  ;;  %v237_v47 = vpop.xlane.xlu0 %236  ;;  %v343_v1 = vsel %vm342_vm15, %v2190_v40, %v339_v46  ;;  %v358_v22 = vsub.f32 1.5, %v357_v30  ;;  %vm351_vm5 = vweird.f32 %v2231_v61 }
 0x13c   :  { %v422_v0 = vmul.f32 %v343_v1, %v1816_v60  ;;  %v348_v39 = vsub.f32 1.5, %v347_v4  ;;  %v385_v18 = vmul.f32 %v2255_v6, %v2206_v50  ;;  %vm390_vm6 = vweird.f32 %v2206_v50  ;;  %v2281_v2 = vpop.eup %1398  ;;  %vm352_vm8 = vmor %vm350_vm13, %vm351_vm5 }
 0x13d   :  { %v323_v40 = vsel %vm322_vm4, %v2198_v44, %v319_v36  ;;  %v359_v42 = vmul.f32 %v2217_v19, %v358_v22  ;;  %v367_v43 = vmul.f32 0.5, %v366_v55  ;;  %1402 = vrsqrt.f32 %v2267_v28 }
 0x13e   :  { %v2286_v14 = vpop.eup %1400  ;;  %v420_v60 = vmul.f32 %v323_v40, %v1819_v62  ;;  %v438_v48 = vmul.f32 1.4142135, %v422_v0  ;;  %v349_v21 = vmul.f32 %v2231_v61, %v348_v39  ;;  %v386_v29 = vmul.f32 %v2255_v6, %v385_v18 }
 0x13f   :  { %v363_v44 = vsel %vm362_vm7, %v2217_v19, %v359_v42  ;;  %v368_v59 = vsub.f32 1.5, %v367_v43  ;;  %vm371_vm9 = vweird.f32 %v2245_v31  ;;  %v375_v62 = vmul.f32 %v2281_v2, %v2227_v37 }
 0x140   :  { %v436_v8 = vmul.f32 1.4142135, %v420_v60  ;;  %454 = vst.msk [vmem:[%s3004_s10 + $0x40] sm:$0xff] %vm189_vm0, %v438_v48  ;;  %v424_v17 = vmul.f32 %v363_v44, %v1830_v10  ;;  %v353_v19 = vsel %vm352_vm8, %v2231_v61, %v349_v21  ;;  %v387_v46 = vmul.f32 0.5, %v386_v29  ;;  %vm372_vm10 = vmor %vm370_vm3, %vm371_vm9 }
 0x141   :  { %v423_v16 = vmul.f32 %v353_v19, %v1837_v13  ;;  %v369_v30 = vmul.f32 %v2245_v31, %v368_v59  ;;  %v376_v35 = vmul.f32 %v2281_v2, %v375_v62  ;;  %v395_v58 = vmul.f32 %v2286_v14, %v2229_v63 }
 0x142   :  { %v649_v4 = vpop.xlane.xlu1 %648  ;;  %v652_v36 = vpop.xlane.xlu2 %651  ;;  %452 = vst.msk [vmem:[%s3004_s10 + $0x30] sm:$0xff] %vm189_vm0, %v436_v8  ;;  %v440_v10 = vmul.f32 1.4142135, %v424_v17  ;;  %v388_v13 = vsub.f32 1.5, %v387_v46  ;;  %vm391_vm11 = vweird.f32 %v2255_v6  ;;  %vm380_vm12 = vweird.f32 %v2227_v37 }
 0x143   :  { %v646_v61 = vpop.xlane.xlu0 %645  ;;  %v1403_v1 = vpop.eup %1402  ;;  %v439_v22 = vmul.f32 1.4142135, %v423_v16  ;;  %v373_v55 = vsel %vm372_vm10, %v2245_v31, %v369_v30  ;;  %v377_v0 = vmul.f32 0.5, %v376_v35  ;;  %v396_v39 = vmul.f32 %v2286_v14, %v395_v58  ;;  %vm392_vm14 = vmor %vm390_vm6, %vm391_vm11 }
 0x144   :  { %456 = vst.msk [vmem:[%s3004_s10 + $0x50] sm:$0xff] %vm189_vm0, %v440_v10  ;;  %v425_v45 = vmul.f32 %v373_v55, %v1833_v11  ;;  %v389_v18 = vmul.f32 %v2255_v6, %v388_v13  ;;  %vm381_vm13 = vweird.f32 %v2281_v2  ;;  %v703_v40 = vmul.f32 %v1403_v1, %v2267_v28 }
 0x145   :  { %455 = vst.msk [vmem:[%s3004_s10 + $0x48] sm:$0xff] %vm189_vm0, %v439_v22  ;;  %v378_v31 = vsub.f32 1.5, %v377_v0  ;;  %v397_v42 = vmul.f32 0.5, %v396_v39  ;;  %vm401_vm15 = vweird.f32 %v2286_v14  ;;  %v2341_v43 = vadd.f32 1e-08, %v237_v47  ;;  %vm382_vm2 = vmor %vm380_vm12, %vm381_vm13 }
 0x146   :  { %v441_v11 = vmul.f32 1.4142135, %v425_v45  ;;  %v393_v60 = vsel %vm392_vm14, %v2255_v6, %v389_v18  ;;  %v704_v48 = vmul.f32 %v1403_v1, %v703_v40  ;;  %v2345_v21 = vadd.f32 1e-08, %v2253_v49 }
 0x147   :  { %v427_v29 = vmul.f32 %v393_v60, %v1853_v23  ;;  %v379_v44 = vmul.f32 %v2281_v2, %v378_v31  ;;  %v398_v59 = vsub.f32 1.5, %v397_v42  ;;  %1404 = vrsqrt.f32 %v2341_v43 }
 0x148   :  { %457 = vst.msk [vmem:[%s3004_s10 + $0x58] sm:$0xff] %vm189_vm0, %v441_v11  ;;  %vm400_vm3 = vweird.f32 %v2229_v63  ;;  %v705_v50 = vmul.f32 0.5, %v704_v48  ;;  %vm709_vm4 = vweird.f32 %v1403_v1  ;;  %1406 = vrsqrt.f32 %v2345_v21 }
 0x149   :  { %v443_v23 = vmul.f32 1.4142135, %v427_v29  ;;  %v383_v49 = vsel %vm382_vm2, %v2281_v2, %v379_v44  ;;  %v399_v6 = vmul.f32 %v2286_v14, %v398_v59  ;;  %v2362_v47 = vadd.f32 1e-08, %v649_v4  ;;  %vm402_vm5 = vmor %vm400_vm3, %vm401_vm15 }
 0x14a   :  { %v658_v62 = vpop.xlane.xlu1 %657  ;;  %v661_v8 = vpop.xlane.xlu2 %660  ;;  %v426_v17 = vmul.f32 %v383_v49, %v1861_v26  ;;  %v706_v37 = vsub.f32 1.5, %v705_v50  ;;  %v2367_v63 = vadd.f32 1e-08, %v646_v61  ;;  %v2369_v19 = vadd.f32 1e-08, %v652_v36 }
 0x14b   :  { %v655_v46 = vpop.xlane.xlu0 %654  ;;  %459 = vst.msk [vmem:[%s3004_s10 + $0x68] sm:$0xff] %vm189_vm0, %v443_v23  ;;  %v403_v2 = vsel %vm402_vm5, %v2286_v14, %v399_v6  ;;  %vm708_vm6 = vweird.f32 %v2267_v28  ;;  %1408 = vrsqrt.f32 %v2362_v47  ;;  %v2378_v26 = vadd.f32 1e-08, %v658_v62 }
 0x14c   :  { %v442_v16 = vmul.f32 1.4142135, %v426_v17  ;;  %v428_v30 = vmul.f32 %v403_v2, %v1856_v24  ;;  %v707_v35 = vmul.f32 %v1403_v1, %v706_v37  ;;  %1410 = vrsqrt.f32 %v2367_v63  ;;  %vm710_vm7 = vmor %vm708_vm6, %vm709_vm4 }
 0x14d   :  { %v2382_v58 = vpop.eup %1404  ;;  %1412 = vrsqrt.f32 %v2369_v19  ;;  %vm410_vm8 = vweird.f32 %v2341_v43  ;;  %v2404_v61 = vadd.f32 1e-08, %v655_v46  ;;  %vm718_vm9 = vweird.f32 %v2345_v21 }
 0x14e   :  { %v2386_v4 = vpop.eup %1406  ;;  %458 = vst.msk [vmem:[%s3004_s10 + $0x60] sm:$0xff] %vm189_vm0, %v442_v16  ;;  %v444_v28 = vmul.f32 1.4142135, %v428_v30  ;;  %v711_v14 = vsel %vm710_vm7, %v1403_v1, %v707_v35  ;;  %v405_v24 = vmul.f32 %v2382_v58, %v2341_v43  ;;  %1414 = vrsqrt.f32 %v2378_v26 }
 0x14f   :  { %v862_v36 = vmul.f32 %v711_v14, %v1879_v33  ;;  %v713_v10 = vmul.f32 %v2386_v4, %v2345_v21  ;;  %v2410_v55 = vadd.f32 1e-08, %v661_v8  ;;  %vm738_vm10 = vweird.f32 %v2362_v47 }
 0x150   :  { %460 = vst.msk [vmem:[%s3004_s10 + $0x70] sm:$0xff] %vm189_vm0, %v444_v28  ;;  %v406_v13 = vmul.f32 %v2382_v58, %v405_v24  ;;  %1416 = vrsqrt.f32 %v2404_v61  ;;  %vm411_vm11 = vweird.f32 %v2382_v58  ;;  %vm719_vm12 = vweird.f32 %v2386_v4 }
 0x151   :  { %v2406_v1 = vpop.eup %1408  ;;  %v878_v22 = vmul.f32 1.4142135, %v862_v36  ;;  %v714_v33 = vmul.f32 %v2386_v4, %v713_v10  ;;  %vm728_vm13 = vweird.f32 %v2367_v63  ;;  %vm748_vm15 = vweird.f32 %v2369_v19  ;;  %vm412_vm4 = vmor %vm410_vm8, %vm411_vm11 }
 0x152   :  { %v667_v0 = vpop.xlane.xlu1 %666  ;;  %v2412_v39 = vpop.eup %1410  ;;  %v407_v45 = vmul.f32 0.5, %v406_v13  ;;  %v733_v18 = vmul.f32 %v2406_v1, %v2362_v47  ;;  %vm739_vm14 = vweird.f32 %v2406_v1  ;;  %1418 = vrsqrt.f32 %v2410_v55  ;;  %vm720_vm7 = vmor %vm718_vm9, %vm719_vm12 }
 0x153   :  { %v2418_v40 = vpop.xlane.xlu0 %663  ;;  %v2420_v31 = vpop.xlane.xlu2 %669  ;;  %894 = vst.msk [vmem:[%s3005_s11] sm:$0xff] %vm637_vm1, %v878_v22  ;;  %v715_v11 = vmul.f32 0.5, %v714_v33  ;;  %v723_v60 = vmul.f32 %v2412_v39, %v2367_v63  ;;  %vm729_vm2 = vweird.f32 %v2412_v39  ;;  %vm768_vm3 = vweird.f32 %v2378_v26  ;;  %vm740_vm8 = vmor %vm738_vm10, %vm739_vm14 }
 0x154   :  { %v2422_v42 = vpop.eup %1412  ;;  %v408_v48 = vsub.f32 1.5, %v407_v45  ;;  %v734_v29 = vmul.f32 %v2406_v1, %v733_v18  ;;  %v2477_v18 = vadd.f32 1e-08, %v667_v0  ;;  %vm730_vm9 = vmor %vm728_vm13, %vm729_vm2  ;;  %vm758_vm12 = vweird.f32 %v2404_v61 }
 0x155   :  { %v743_v44 = vmul.f32 %v2422_v42, %v2369_v19  ;;  %v2438_v59 = vpop.eup %1414  ;;  %v716_v50 = vsub.f32 1.5, %v715_v11  ;;  %v724_v23 = vmul.f32 %v2412_v39, %v723_v60  ;;  %vm749_vm5 = vweird.f32 %v2422_v42 }
 0x156   :  { %v409_v49 = vmul.f32 %v2382_v58, %v408_v48  ;;  %v735_v6 = vmul.f32 0.5, %v734_v29  ;;  %v763_v8 = vmul.f32 %v2438_v59, %v2378_v26  ;;  %vm769_vm6 = vweird.f32 %v2438_v59  ;;  %v2455_v46 = vpop.eup %1416  ;;  %vm750_vm10 = vmor %vm748_vm15, %vm749_vm5 }
 0x157   :  { %v744_v62 = vmul.f32 %v2422_v42, %v743_v44  ;;  %v717_v17 = vmul.f32 %v2386_v4, %v716_v50  ;;  %v725_v37 = vmul.f32 0.5, %v724_v23  ;;  %v753_v24 = vmul.f32 %v2455_v46, %v2404_v61  ;;  %vm770_vm11 = vmor %vm768_vm3, %vm769_vm6 }
 0x158   :  { %v413_v2 = vsel %vm412_vm4, %v2382_v58, %v409_v49  ;;  %v736_v16 = vsub.f32 1.5, %v735_v6  ;;  %v764_v43 = vmul.f32 %v2438_v59, %v763_v8  ;;  %v2469_v33 = vpop.eup %1418  ;;  %1420 = vrsqrt.f32 %v2477_v18 }
 0x159   :  { %v745_v30 = vmul.f32 0.5, %v744_v62  ;;  %v429_v35 = vmul.f32 %v413_v2, %v1887_v41  ;;  %v721_v28 = vsel %vm720_vm7, %v2386_v4, %v717_v17  ;;  %v726_v14 = vsub.f32 1.5, %v725_v37 }
 0x15a   :  { %v676_v36 = vpop.xlane.xlu1 %675  ;;  %v863_v58 = vmul.f32 %v721_v28, %v1881_v34  ;;  %v737_v10 = vmul.f32 %v2406_v1, %v736_v16  ;;  %v765_v21 = vmul.f32 0.5, %v764_v43  ;;  %v754_v4 = vmul.f32 %v2455_v46, %v753_v24 }
 0x15b   :  { %v746_v13 = vsub.f32 1.5, %v745_v30  ;;  %v673_v22 = vpop.xlane.xlu0 %672  ;;  %v445_v45 = vmul.f32 1.4142135, %v429_v35  ;;  %v727_v41 = vmul.f32 %v2412_v39, %v726_v14  ;;  %v679_v29 = vpop.xlane.xlu2 %678  ;;  %vm779_vm14 = vweird.f32 %v2469_v33 }
 0x15c   :  { %v879_v34 = vmul.f32 1.4142135, %v863_v58  ;;  %v741_v11 = vsel %vm740_vm8, %v2406_v1, %v737_v10  ;;  %v766_v48 = vsub.f32 1.5, %v765_v21  ;;  %v755_v63 = vmul.f32 0.5, %v754_v4 }
 0x15d   :  { %v747_v60 = vmul.f32 %v2422_v42, %v746_v13  ;;  %461 = vst.msk [vmem:[%s3004_s10 + $0x78] sm:$0xff] %vm189_vm0, %v445_v45  ;;  %v865_v47 = vmul.f32 %v741_v11, %v1906_v53  ;;  %v731_v0 = vsel %vm730_vm9, %v2412_v39, %v727_v41  ;;  %v773_v1 = vmul.f32 %v2469_v33, %v2410_v55 }
 0x15e   :  { %895 = vst.msk [vmem:[%s3005_s11 + $0x8] sm:$0xff] %vm637_vm1, %v879_v34  ;;  %v864_v44 = vmul.f32 %v731_v0, %v1911_v56  ;;  %v767_v39 = vmul.f32 %v2438_v59, %v766_v48  ;;  %vm759_vm0 = vweird.f32 %v2455_v46  ;;  %v756_v23 = vsub.f32 1.5, %v755_v63 }
 0x15f   :  { %v751_v53 = vsel %vm750_vm10, %v2422_v42, %v747_v60  ;;  %v881_v50 = vmul.f32 1.4142135, %v865_v47  ;;  %v774_v49 = vmul.f32 %v2469_v33, %v773_v1  ;;  %vm760_vm13 = vmor %vm758_vm12, %vm759_vm0  ;;  %v2528_v61 = vadd.f32 1e-08, %v2418_v40 }
 0x160   :  { %v866_v19 = vmul.f32 %v751_v53, %v1908_v54  ;;  %v880_v6 = vmul.f32 1.4142135, %v864_v44  ;;  %v771_v56 = vsel %vm770_vm11, %v2438_v59, %v767_v39  ;;  %v757_v26 = vmul.f32 %v2455_v46, %v756_v23 }
 0x161   :  { %897 = vst.msk [vmem:[%s3005_s11 + $0x18] sm:$0xff] %vm637_vm1, %v881_v50  ;;  %v868_v42 = vmul.f32 %v771_v56, %v1931_v9  ;;  %v775_v62 = vmul.f32 0.5, %v774_v49  ;;  %v2531_v59 = vadd.f32 1e-08, %v2420_v31  ;;  %v2538_v16 = vadd.f32 1e-08, %v676_v36 }
 0x162   :  { %v882_v54 = vmul.f32 1.4142135, %v866_v19  ;;  %v685_v8 = vpop.xlane.xlu1 %684  ;;  %896 = vst.msk [vmem:[%s3005_s11 + $0x10] sm:$0xff] %vm637_vm1, %v880_v6  ;;  %v761_v37 = vsel %vm760_vm13, %v2455_v46, %v757_v26  ;;  %1422 = vrsqrt.f32 %v2528_v61  ;;  %vm778_vm15 = vweird.f32 %v2410_v55  ;;  %v2551_v46 = vpop.eup %1420 }
 0x163   :  { %v682_v9 = vpop.xlane.xlu0 %681  ;;  %v884_v17 = vmul.f32 1.4142135, %v868_v42  ;;  %v776_v2 = vsub.f32 1.5, %v775_v62  ;;  %v867_v30 = vmul.f32 %v761_v37, %v1936_v15  ;;  %1424 = vrsqrt.f32 %v2531_v59  ;;  %vm780_vm2 = vmor %vm778_vm15, %vm779_vm14  ;;  %v1087_v28 = vpop.xlane.xlu2 %1086 }
 0x164   :  { %898 = vst.msk [vmem:[%s3005_s11 + $0x20] sm:$0xff] %vm637_vm1, %v882_v54  ;;  %v2549_v31 = vadd.f32 1e-08, %v673_v22  ;;  %1426 = vrsqrt.f32 %v2538_v16  ;;  %v2556_v15 = vadd.f32 1e-08, %v679_v29  ;;  %v793_v55 = vmul.f32 %v2551_v46, %v2477_v18 }
 0x165   :  { %900 = vst.msk [vmem:[%s3005_s11 + $0x30] sm:$0xff] %vm637_vm1, %v884_v17  ;;  %v777_v40 = vmul.f32 %v2469_v33, %v776_v2  ;;  %v883_v43 = vmul.f32 1.4142135, %v867_v30  ;;  %v2558_v35 = vadd.f32 1e-08, %v685_v8  ;;  %vm798_vm3 = vweird.f32 %v2477_v18 }
 0x166   :  { %1428 = vrsqrt.f32 %v2549_v31  ;;  %v794_v36 = vmul.f32 %v2551_v46, %v793_v55  ;;  %v2572_v58 = vadd.f32 1e-08, %v682_v9  ;;  %v2577_v22 = vadd.f32 1e-08, %v1087_v28 }
 0x167   :  { %v781_v14 = vsel %vm780_vm2, %v2469_v33, %v777_v40  ;;  %899 = vst.msk [vmem:[%s3005_s11 + $0x28] sm:$0xff] %vm637_vm1, %v883_v43  ;;  %1430 = vrsqrt.f32 %v2556_v15  ;;  %vm799_vm4 = vweird.f32 %v2551_v46  ;;  %vm788_vm5 = vweird.f32 %v2528_v61 }
 0x168   :  { %v869_v24 = vmul.f32 %v781_v14, %v1933_v12  ;;  %1432 = vrsqrt.f32 %v2558_v35  ;;  %v2574_v13 = vpop.eup %1422  ;;  %v795_v45 = vmul.f32 0.5, %v794_v36  ;;  %vm808_vm7 = vweird.f32 %v2531_v59  ;;  %vm800_vm13 = vmor %vm798_vm3, %vm799_vm4 }
 0x169   :  { %v2579_v33 = vpop.eup %1424  ;;  %v783_v12 = vmul.f32 %v2574_v13, %v2528_v61  ;;  %vm789_vm6 = vweird.f32 %v2574_v13  ;;  %1434 = vrsqrt.f32 %v2572_v58  ;;  %vm828_vm9 = vweird.f32 %v2538_v16 }
 0x16a   :  { %v1093_v10 = vpop.xlane.xlu1 %1092  ;;  %v885_v21 = vmul.f32 1.4142135, %v869_v24  ;;  %v2589_v34 = vpop.eup %1426  ;;  %v803_v11 = vmul.f32 %v2579_v33, %v2531_v59  ;;  %vm809_vm8 = vweird.f32 %v2579_v33  ;;  %v796_v48 = vsub.f32 1.5, %v795_v45  ;;  %vm790_vm3 = vmor %vm788_vm5, %vm789_vm6 }
 0x16b   :  { %v2585_v41 = vadd.f32 1e-08, %v1093_v10  ;;  %v2587_v4 = vpop.xlane.xlu0 %1089  ;;  %v784_v29 = vmul.f32 %v2574_v13, %v783_v12  ;;  %v823_v47 = vmul.f32 %v2589_v34, %v2538_v16  ;;  %1436 = vrsqrt.f32 %v2577_v22  ;;  %v2632_v56 = vpop.xlane.xlu2 %1095  ;;  %vm810_vm4 = vmor %vm808_vm7, %vm809_vm8 }
 0x16c   :  { %901 = vst.msk [vmem:[%s3005_s11 + $0x38] sm:$0xff] %vm637_vm1, %v885_v21  ;;  %v2601_v60 = vpop.eup %1428  ;;  %v804_v63 = vmul.f32 %v2579_v33, %v803_v11  ;;  %vm829_vm10 = vweird.f32 %v2589_v34  ;;  %vm818_vm0 = vweird.f32 %v2549_v31  ;;  %v797_v53 = vmul.f32 %v2551_v46, %v796_v48 }
 0x16d   :  { %v2608_v0 = vpop.eup %1430  ;;  %v813_v1 = vmul.f32 %v2601_v60, %v2549_v31  ;;  %vm819_vm11 = vweird.f32 %v2601_v60  ;;  %v785_v39 = vmul.f32 0.5, %v784_v29  ;;  %v824_v50 = vmul.f32 %v2589_v34, %v823_v47  ;;  %vm830_vm5 = vmor %vm828_vm9, %vm829_vm10 }
 0x16e   :  { %v2616_v44 = vpop.eup %1432  ;;  %v833_v19 = vmul.f32 %v2608_v0, %v2556_v15  ;;  %vm838_vm12 = vweird.f32 %v2556_v15  ;;  %v805_v23 = vmul.f32 0.5, %v804_v63  ;;  %vm839_vm14 = vweird.f32 %v2608_v0  ;;  %vm820_vm6 = vmor %vm818_vm0, %vm819_vm11 }
 0x16f   :  { %v814_v49 = vmul.f32 %v2601_v60, %v813_v1  ;;  %v853_v6 = vmul.f32 %v2616_v44, %v2558_v35  ;;  %vm858_vm15 = vweird.f32 %v2558_v35  ;;  %v801_v54 = vsel %vm800_vm13, %v2551_v46, %v797_v53  ;;  %v2636_v18 = vpop.eup %1434  ;;  %vm840_vm7 = vmor %vm838_vm12, %vm839_vm14 }
 0x170   :  { %v786_v42 = vsub.f32 1.5, %v785_v39  ;;  %v825_v26 = vmul.f32 0.5, %v824_v50  ;;  %v834_v62 = vmul.f32 %v2608_v0, %v833_v19  ;;  %v871_v8 = vmul.f32 %v801_v54, %v1946_v27 }
 0x171   :  { %v806_v9 = vsub.f32 1.5, %v805_v23  ;;  %v815_v17 = vmul.f32 0.5, %v814_v49  ;;  %v854_v37 = vmul.f32 %v2616_v44, %v853_v6  ;;  %v2640_v2 = vpop.eup %1436  ;;  %vm859_vm2 = vweird.f32 %v2616_v44 }
 0x172   :  { %v787_v30 = vmul.f32 %v2574_v13, %v786_v42  ;;  %v826_v40 = vsub.f32 1.5, %v825_v26  ;;  %v835_v43 = vmul.f32 0.5, %v834_v62  ;;  %v887_v46 = vmul.f32 1.4142135, %v871_v8  ;;  %v1102_v21 = vpop.xlane.xlu1 %1101  ;;  %vm860_vm8 = vmor %vm858_vm15, %vm859_vm2 }
 0x173   :  { %v807_v27 = vmul.f32 %v2579_v33, %v806_v9  ;;  %v816_v28 = vsub.f32 1.5, %v815_v17  ;;  %v855_v14 = vmul.f32 0.5, %v854_v37  ;;  %v843_v10 = vmul.f32 %v2636_v18, %v2572_v58  ;;  %v1099_v61 = vpop.xlane.xlu0 %1098 }
 0x174   :  { %v791_v55 = vsel %vm790_vm3, %v2574_v13, %v787_v30  ;;  %v827_v24 = vmul.f32 %v2589_v34, %v826_v40  ;;  %v836_v36 = vsub.f32 1.5, %v835_v43  ;;  %903 = vst.msk [vmem:[%s3005_s11 + $0x48] sm:$0xff] %vm637_vm1, %v887_v46  ;;  %vm849_vm9 = vweird.f32 %v2636_v18 }
 0x175   :  { %v870_v13 = vmul.f32 %v791_v55, %v1952_v38  ;;  %v811_v45 = vsel %vm810_vm4, %v2579_v33, %v807_v27  ;;  %v817_v59 = vmul.f32 %v2601_v60, %v816_v28  ;;  %v856_v12 = vsub.f32 1.5, %v855_v14 }
 0x176   :  { %v872_v11 = vmul.f32 %v811_v45, %v1948_v32  ;;  %v831_v48 = vsel %vm830_vm5, %v2589_v34, %v827_v24  ;;  %v837_v38 = vmul.f32 %v2608_v0, %v836_v36  ;;  %v844_v33 = vmul.f32 %v2636_v18, %v843_v10 }
 0x177   :  { %v886_v29 = vmul.f32 1.4142135, %v870_v13  ;;  %v874_v16 = vmul.f32 %v831_v48, %v1965_v51  ;;  %v821_v47 = vsel %vm820_vm6, %v2601_v60, %v817_v59  ;;  %v857_v32 = vmul.f32 %v2616_v44, %v856_v12 }
 0x178   :  { %v888_v34 = vmul.f32 1.4142135, %v872_v11  ;;  %v873_v31 = vmul.f32 %v821_v47, %v1970_v57  ;;  %v841_v63 = vsel %vm840_vm7, %v2608_v0, %v837_v38  ;;  %v845_v51 = vmul.f32 0.5, %v844_v33  ;;  %v1105_v57 = vpop.xlane.xlu2 %1104 }
 0x179   :  { %902 = vst.msk [vmem:[%s3005_s11 + $0x40] sm:$0xff] %vm637_vm1, %v886_v29  ;;  %v890_v15 = vmul.f32 1.4142135, %v874_v16  ;;  %v875_v60 = vmul.f32 %v841_v63, %v1967_v52  ;;  %v861_v1 = vsel %vm860_vm8, %v2616_v44, %v857_v32  ;;  %v1150_v39 = vmul.f32 %v2640_v2, %v2577_v22 }
 0x17a   :  { %904 = vst.msk [vmem:[%s3005_s11 + $0x50] sm:$0xff] %vm637_vm1, %v888_v34  ;;  %v889_v35 = vmul.f32 1.4142135, %v873_v31  ;;  %v877_v0 = vmul.f32 %v861_v1, %v1985_v5  ;;  %v846_v53 = vsub.f32 1.5, %v845_v51  ;;  %vm848_vm10 = vweird.f32 %v2572_v58  ;;  %v1111_v6 = vpop.xlane.xlu1 %1110 }
 0x17b   :  { %906 = vst.msk [vmem:[%s3005_s11 + $0x60] sm:$0xff] %vm637_vm1, %v890_v15  ;;  %v891_v52 = vmul.f32 1.4142135, %v875_v60  ;;  %1438 = vrsqrt.f32 %v2585_v41  ;;  %v1151_v50 = vmul.f32 %v2640_v2, %v1150_v39  ;;  %v2716_v19 = vadd.f32 1e-08, %v2587_v4  ;;  %vm850_vm0 = vmor %vm848_vm10, %vm849_vm9  ;;  %v1108_v54 = vpop.xlane.xlu0 %1107 }
 0x17c   :  { %905 = vst.msk [vmem:[%s3005_s11 + $0x58] sm:$0xff] %vm637_vm1, %v889_v35  ;;  %v893_v5 = vmul.f32 1.4142135, %v877_v0  ;;  %v847_v44 = vmul.f32 %v2636_v18, %v846_v53  ;;  %v2725_v58 = vadd.f32 1e-08, %v2632_v56  ;;  %vm1156_vm11 = vweird.f32 %v2640_v2 }
 0x17d   :  { %907 = vst.msk [vmem:[%s3005_s11 + $0x68] sm:$0xff] %vm637_vm1, %v891_v52  ;;  %v2727_v23 = vadd.f32 1e-08, %v1102_v21  ;;  %v1152_v49 = vmul.f32 0.5, %v1151_v50  ;;  %1440 = vrsqrt.f32 %v2716_v19  ;;  %v2739_v26 = vadd.f32 1e-08, %v1099_v61 }
 0x17e   :  { %909 = vst.msk [vmem:[%s3005_s11 + $0x78] sm:$0xff] %vm637_vm1, %v893_v5  ;;  %v851_v4 = vsel %vm850_vm0, %v2636_v18, %v847_v44  ;;  %1442 = vrsqrt.f32 %v2725_v58  ;;  %v2741_v62 = vadd.f32 1e-08, %v1105_v57  ;;  %v2745_v9 = vadd.f32 1e-08, %v1111_v6 }
 0x17f   :  { %v876_v42 = vmul.f32 %v851_v4, %v1988_v7  ;;  %v1153_v56 = vsub.f32 1.5, %v1152_v49  ;;  %1444 = vrsqrt.f32 %v2727_v23  ;;  %v2747_v17 = vadd.f32 1e-08, %v1108_v54 }
 0x180   :  { %vm1155_vm12 = vweird.f32 %v2577_v22  ;;  %1446 = vrsqrt.f32 %v2739_v26  ;;  %v1114_v30 = vpop.xlane.xlu2 %1113  ;;  %vm1175_vm14 = vweird.f32 %v2585_v41  ;;  %vm1165_vm2 = vweird.f32 %v2716_v19 }
 0x181   :  { %v2743_v8 = vpop.eup %1438  ;;  %v892_v18 = vmul.f32 1.4142135, %v876_v42  ;;  %v1154_v7 = vmul.f32 %v2640_v2, %v1153_v56  ;;  %vm1157_vm13 = vmor %vm1155_vm12, %vm1156_vm11  ;;  %1448 = vrsqrt.f32 %v2741_v62  ;;  %vm1185_vm4 = vweird.f32 %v2725_v58 }
 0x182   :  { %v1170_v37 = vmul.f32 %v2743_v8, %v2585_v41  ;;  %1450 = vrsqrt.f32 %v2745_v9  ;;  %vm1176_vm15 = vweird.f32 %v2743_v8  ;;  %vm1205_vm6 = vweird.f32 %v2727_v23  ;;  %v1120_v60 = vpop.xlane.xlu1 %1119 }
 0x183   :  { %908 = vst.msk [vmem:[%s3005_s11 + $0x70] sm:$0xff] %vm637_vm1, %v892_v18  ;;  %v2761_v40 = vpop.eup %1440  ;;  %v1158_v22 = vsel %vm1157_vm13, %v2640_v2, %v1154_v7  ;;  %1452 = vrsqrt.f32 %v2747_v17  ;;  %vm1195_vm8 = vweird.f32 %v2739_v26  ;;  %vm1215_vm10 = vweird.f32 %v2741_v62  ;;  %vm1177_vm11 = vmor %vm1175_vm14, %vm1176_vm15 }
 0x184   :  { %v1171_v43 = vmul.f32 %v2743_v8, %v1170_v37  ;;  %v2767_v46 = vpop.eup %1442  ;;  %v1309_v27 = vmul.f32 %v1158_v22, %v1981_v3  ;;  %v1160_v28 = vmul.f32 %v2761_v40, %v2716_v19  ;;  %vm1166_vm3 = vweird.f32 %v2761_v40 }
 0x185   :  { %v2775_v2 = vpop.eup %1444  ;;  %v1180_v55 = vmul.f32 %v2767_v46, %v2725_v58  ;;  %v2781_v3 = vadd.f32 1e-08, %v1114_v30  ;;  %vm1186_vm5 = vweird.f32 %v2767_v46  ;;  %vm1167_vm13 = vmor %vm1165_vm2, %vm1166_vm3  ;;  %v3033_v58 = vld [vmem:[#allocation2_spill] sm:$0xff]  ;;  %v3034_v30 = vld [vmem:[#allocation3_spill] sm:$0xff] }
 0x186   :  { %v1172_v14 = vmul.f32 0.5, %v1171_v43  ;;  %v1325_v24 = vmul.f32 1.4142135, %v1309_v27  ;;  %v1161_v36 = vmul.f32 %v2761_v40, %v1160_v28  ;;  %v1200_v10 = vmul.f32 %v2775_v2, %v2727_v23  ;;  %v2788_v21 = vpop.eup %1446  ;;  %vm1187_vm14 = vmor %vm1185_vm4, %vm1186_vm5  ;;  %v3035_v28 = vld [vmem:[#allocation5_spill] sm:$0xff] }
 0x187   :  { %v1181_v13 = vmul.f32 %v2767_v46, %v1180_v55  ;;  %vm1206_vm7 = vweird.f32 %v2775_v2  ;;  %1454 = vrsqrt.f32 %v2781_v3  ;;  %v2793_v45 = vpop.eup %1448  ;;  %v1190_v11 = vmul.f32 %v2788_v21, %v2739_v26 }
 0x188   :  { %v1173_v61 = vsub.f32 1.5, %v1172_v14  ;;  %1341 = vst.msk [vmem:[%s3006_s12] sm:$0xff] %vm637_vm1, %v1325_v24  ;;  %v1162_v59 = vmul.f32 0.5, %v1161_v36  ;;  %v1201_v12 = vmul.f32 %v2775_v2, %v1200_v10  ;;  %vm1196_vm9 = vweird.f32 %v2788_v21  ;;  %v2804_v48 = vpop.eup %1450  ;;  %v1123_v49 = vpop.xlane.xlu2 %1122  ;;  %vm1207_vm15 = vmor %vm1205_vm6, %vm1206_vm7 }
 0x189   :  { %v1182_v33 = vmul.f32 0.5, %v1181_v13  ;;  %v1210_v29 = vmul.f32 %v2793_v45, %v2741_v62  ;;  %vm1216_vm0 = vweird.f32 %v2793_v45  ;;  %v2811_v16 = vpop.eup %1452  ;;  %v1191_v34 = vmul.f32 %v2788_v21, %v1190_v11  ;;  %vm1197_vm2 = vmor %vm1195_vm8, %vm1196_vm9  ;;  %v3036_v62 = vld [vmem:[#allocation4_spill] sm:$0xff] }
 0x18a   :  { %v1174_v38 = vmul.f32 %v2743_v8, %v1173_v61  ;;  %v1163_v47 = vsub.f32 1.5, %v1162_v59  ;;  %v1202_v32 = vmul.f32 0.5, %v1201_v12  ;;  %v1230_v31 = vmul.f32 %v2804_v48, %v2745_v9  ;;  %vm1217_vm3 = vmor %vm1215_vm10, %vm1216_vm0  ;;  %v1129_v13 = vpop.xlane.xlu1 %1128  ;;  %v3037_v59 = vld [vmem:[#allocation6_spill] sm:$0xff] }
 0x18b   :  { %v1183_v51 = vsub.f32 1.5, %v1182_v33  ;;  %v1211_v15 = vmul.f32 %v2793_v45, %v1210_v29  ;;  %vm1236_vm12 = vweird.f32 %v2804_v48  ;;  %v1192_v35 = vmul.f32 0.5, %v1191_v34 }
 0x18c   :  { %v1178_v63 = vsel %vm1177_vm11, %v2743_v8, %v1174_v38  ;;  %v1164_v41 = vmul.f32 %v2761_v40, %v1163_v47  ;;  %v1203_v57 = vsub.f32 1.5, %v1202_v32  ;;  %v1231_v52 = vmul.f32 %v2804_v48, %v1230_v31 }
 0x18d   :  { %v1311_v1 = vmul.f32 %v1178_v63, %v2007_v20  ;;  %v2825_v0 = vpop.eup %1454  ;;  %v1184_v53 = vmul.f32 %v2767_v46, %v1183_v51  ;;  %v1212_v39 = vmul.f32 0.5, %v1211_v15  ;;  %v1220_v5 = vmul.f32 %v2811_v16, %v2747_v17  ;;  %v1117_v20 = vpop.xlane.xlu0 %1116  ;;  %v3038_v63 = vld [vmem:[#allocation8_spill] sm:$0xff] }
 0x18e   :  { %v1168_v50 = vsel %vm1167_vm13, %v2761_v40, %v1164_v41  ;;  %v1204_v19 = vmul.f32 %v2775_v2, %v1203_v57  ;;  %v1193_v4 = vsub.f32 1.5, %v1192_v35  ;;  %v1232_v56 = vmul.f32 0.5, %v1231_v52  ;;  %v3039_v52 = vld [vmem:[#allocation7_spill] sm:$0xff] }
 0x18f   :  { %v1327_v44 = vmul.f32 1.4142135, %v1311_v1  ;;  %v1310_v6 = vmul.f32 %v1168_v50, %v2012_v25  ;;  %v1188_v54 = vsel %vm1187_vm14, %v2767_v46, %v1184_v53  ;;  %v1213_v42 = vsub.f32 1.5, %v1212_v39 }
 0x190   :  { %v1312_v8 = vmul.f32 %v1188_v54, %v3033_v58  ;;  %v1208_v18 = vsel %vm1207_vm15, %v2775_v2, %v1204_v19  ;;  %v1194_v25 = vmul.f32 %v2788_v21, %v1193_v4  ;;  %v1221_v7 = vmul.f32 %v2811_v16, %v1220_v5  ;;  %v1132_v31 = vpop.xlane.xlu2 %1131 }
 0x191   :  { %1343 = vst.msk [vmem:[%s3006_s12 + $0x10] sm:$0xff] %vm637_vm1, %v1327_v44  ;;  %v1326_v37 = vmul.f32 1.4142135, %v1310_v6  ;;  %v1314_v40 = vmul.f32 %v1208_v18, %v3034_v30  ;;  %v1214_v23 = vmul.f32 %v2793_v45, %v1213_v42  ;;  %v1233_v22 = vsub.f32 1.5, %v1232_v56 }
 0x192   :  { %v1328_v43 = vmul.f32 1.4142135, %v1312_v8  ;;  %v1198_v46 = vsel %vm1197_vm2, %v2788_v21, %v1194_v25  ;;  %vm1235_vm4 = vweird.f32 %v2745_v9  ;;  %v1222_v27 = vmul.f32 0.5, %v1221_v7 }
 0x193   :  { %1342 = vst.msk [vmem:[%s3006_s12 + $0x8] sm:$0xff] %vm637_vm1, %v1326_v37  ;;  %v1330_v26 = vmul.f32 1.4142135, %v1314_v40  ;;  %v1313_v2 = vmul.f32 %v1198_v46, %v3035_v28  ;;  %v1218_v14 = vsel %vm1217_vm3, %v2793_v45, %v1214_v23  ;;  %v1234_v55 = vmul.f32 %v2804_v48, %v1233_v22  ;;  %vm1237_vm5 = vmor %vm1235_vm4, %vm1236_vm12 }
 0x194   :  { %1344 = vst.msk [vmem:[%s3006_s12 + $0x18] sm:$0xff] %vm637_vm1, %v1328_v43  ;;  %v1315_v9 = vmul.f32 %v1218_v14, %v3036_v62  ;;  %v1223_v24 = vsub.f32 1.5, %v1222_v27  ;;  %vm1226_vm6 = vweird.f32 %v2811_v16  ;;  %v1240_v36 = vmul.f32 %v2825_v0, %v2781_v3 }
 0x195   :  { %1346 = vst.msk [vmem:[%s3006_s12 + $0x28] sm:$0xff] %vm637_vm1, %v1330_v26  ;;  %v1329_v10 = vmul.f32 1.4142135, %v1313_v2  ;;  %v1238_v21 = vsel %vm1237_vm5, %v2804_v48, %v1234_v55  ;;  %vm1225_vm7 = vweird.f32 %v2747_v17  ;;  %v2890_v61 = vadd.f32 1e-08, %v1120_v60  ;;  %v1126_v33 = vpop.xlane.xlu0 %1125  ;;  %v3040_v55 = vld [vmem:[#allocation9_spill] sm:$0xff] }
 0x196   :  { %v1331_v45 = vmul.f32 1.4142135, %v1315_v9  ;;  %v1317_v12 = vmul.f32 %v1238_v21, %v3037_v59  ;;  %v1224_v11 = vmul.f32 %v2811_v16, %v1223_v24  ;;  %v1241_v38 = vmul.f32 %v2825_v0, %v1240_v36  ;;  %vm1227_vm8 = vmor %vm1225_vm7, %vm1226_vm6 }
 0x197   :  { %1345 = vst.msk [vmem:[%s3006_s12 + $0x20] sm:$0xff] %vm637_vm1, %v1329_v10  ;;  %1456 = vrsqrt.f32 %v2890_v61  ;;  %v2900_v48 = vadd.f32 1e-08, %v1117_v20  ;;  %v2902_v17 = vadd.f32 1e-08, %v1123_v49  ;;  %vm1246_vm9 = vweird.f32 %v2825_v0 }
 0x198   :  { %1347 = vst.msk [vmem:[%s3006_s12 + $0x30] sm:$0xff] %vm637_vm1, %v1331_v45  ;;  %v1333_v29 = vmul.f32 1.4142135, %v1317_v12  ;;  %v1228_v47 = vsel %vm1227_vm8, %v2811_v16, %v1224_v11  ;;  %v1242_v32 = vmul.f32 0.5, %v1241_v38  ;;  %v2909_v34 = vadd.f32 1e-08, %v1129_v13 }
 0x199   :  { %v1316_v51 = vmul.f32 %v1228_v47, %v3038_v63  ;;  %1458 = vrsqrt.f32 %v2900_v48  ;;  %v2919_v60 = vadd.f32 1e-08, %v1126_v33  ;;  %v2922_v1 = vadd.f32 1e-08, %v1132_v31  ;;  %v3041_v13 = vld [vmem:[#allocation11_spill] sm:$0xff]  ;;  %v3042_v11 = vld [vmem:[#allocation10_spill] sm:$0xff] }
 0x19a   :  { %1349 = vst.msk [vmem:[%s3006_s12 + $0x40] sm:$0xff] %vm637_vm1, %v1333_v29  ;;  %v1243_v15 = vsub.f32 1.5, %v1242_v32  ;;  %1460 = vrsqrt.f32 %v2902_v17  ;;  %vm1245_vm10 = vweird.f32 %v2781_v3  ;;  %vm1265_vm11 = vweird.f32 %v2890_v61  ;;  %v3043_v29 = vld [vmem:[#allocation12_spill] sm:$0xff]  ;;  %v3044_v31 = vld [vmem:[#allocation14_spill] sm:$0xff] }
 0x19b   :  { %v1332_v16 = vmul.f32 1.4142135, %v1316_v51  ;;  %1462 = vrsqrt.f32 %v2909_v34  ;;  %vm1247_vm0 = vmor %vm1245_vm10, %vm1246_vm9  ;;  %vm1255_vm12 = vweird.f32 %v2900_v48  ;;  %vm1275_vm13 = vweird.f32 %v2902_v17 }
 0x19c   :  { %v1244_v41 = vmul.f32 %v2825_v0, %v1243_v15  ;;  %1464 = vrsqrt.f32 %v2919_v60  ;;  %vm1295_vm15 = vweird.f32 %v2909_v34  ;;  %vm1285_vm3 = vweird.f32 %v2919_v60 }
 0x19d   :  { %v1457_v57 = vpop.eup %1456  ;;  %1348 = vst.msk [vmem:[%s3006_s12 + $0x38] sm:$0xff] %vm637_vm1, %v1332_v16  ;;  %1466 = vrsqrt.f32 %v2922_v1 }
 0x19e   :  { %v1248_v35 = vsel %vm1247_vm0, %v2825_v0, %v1244_v41  ;;  %v1260_v53 = vmul.f32 %v1457_v57, %v2890_v61  ;;  %vm1266_vm14 = vweird.f32 %v1457_v57 }
 0x19f   :  { %v1459_v39 = vpop.eup %1458  ;;  %v1318_v5 = vmul.f32 %v1248_v35, %v3039_v52  ;;  %vm1267_vm4 = vmor %vm1265_vm11, %vm1266_vm14 }
 0x1a0   :  { %v1461_v20 = vpop.eup %1460  ;;  %v1261_v3 = vmul.f32 %v1457_v57, %v1260_v53  ;;  %v1250_v44 = vmul.f32 %v1459_v39, %v2900_v48  ;;  %vm1256_vm2 = vweird.f32 %v1459_v39 }
 0x1a1   :  { %v1463_v50 = vpop.eup %1462  ;;  %v1334_v19 = vmul.f32 1.4142135, %v1318_v5  ;;  %v1270_v4 = vmul.f32 %v1461_v20, %v2902_v17  ;;  %vm1276_vm5 = vweird.f32 %v1461_v20  ;;  %vm1257_vm7 = vmor %vm1255_vm12, %vm1256_vm2  ;;  %vm1305_vm12 = vweird.f32 %v2922_v1 }
 0x1a2   :  { %v1465_v49 = vpop.eup %1464  ;;  %v1262_v6 = vmul.f32 0.5, %v1261_v3  ;;  %v1251_v0 = vmul.f32 %v1459_v39, %v1250_v44  ;;  %v1290_v54 = vmul.f32 %v1463_v50, %v2909_v34  ;;  %vm1296_vm6 = vweird.f32 %v1463_v50  ;;  %vm1277_vm9 = vmor %vm1275_vm13, %vm1276_vm5 }
 0x1a3   :  { %v1467_v42 = vpop.eup %1466  ;;  %1350 = vst.msk [vmem:[%s3006_s12 + $0x48] sm:$0xff] %vm637_vm1, %v1334_v19  ;;  %v1271_v56 = vmul.f32 %v1461_v20, %v1270_v4  ;;  %v1280_v58 = vmul.f32 %v1465_v49, %v2919_v60  ;;  %vm1286_vm8 = vweird.f32 %v1465_v49  ;;  %vm1297_vm0 = vmor %vm1295_vm15, %vm1296_vm6  ;;  %v3045_v60 = vld [vmem:[#allocation13_spill] sm:$0xff] }
 0x1a4   :  { %v1263_v8 = vsub.f32 1.5, %v1262_v6  ;;  %v1252_v18 = vmul.f32 0.5, %v1251_v0  ;;  %v1291_v25 = vmul.f32 %v1463_v50, %v1290_v54  ;;  %v1300_v7 = vmul.f32 %v1467_v42, %v2922_v1  ;;  %vm1287_vm11 = vmor %vm1285_vm3, %vm1286_vm8 }
 0x1a5   :  { %v1272_v37 = vmul.f32 0.5, %v1271_v56  ;;  %v1281_v30 = vmul.f32 %v1465_v49, %v1280_v58  ;;  %vm1306_vm10 = vweird.f32 %v1467_v42 }
 0x1a6   :  { %v1264_v40 = vmul.f32 %v1457_v57, %v1263_v8  ;;  %v1253_v23 = vsub.f32 1.5, %v1252_v18  ;;  %v1292_v22 = vmul.f32 0.5, %v1291_v25  ;;  %v1301_v43 = vmul.f32 %v1467_v42, %v1300_v7  ;;  %vm1307_vm13 = vmor %vm1305_vm12, %vm1306_vm10 }
 0x1a7   :  { %v1273_v46 = vsub.f32 1.5, %v1272_v37  ;;  %v1282_v27 = vmul.f32 0.5, %v1281_v30 }
 0x1a8   :  { %v1268_v26 = vsel %vm1267_vm4, %v1457_v57, %v1264_v40  ;;  %v1254_v28 = vmul.f32 %v1459_v39, %v1253_v23  ;;  %v1293_v2 = vsub.f32 1.5, %v1292_v22  ;;  %v1302_v14 = vmul.f32 0.5, %v1301_v43 }
 0x1a9   :  { %v1320_v62 = vmul.f32 %v1268_v26, %v3040_v55  ;;  %v1274_v9 = vmul.f32 %v1461_v20, %v1273_v46  ;;  %v1283_v24 = vsub.f32 1.5, %v1282_v27 }
 0x1aa   :  { %v1258_v36 = vsel %vm1257_vm7, %v1459_v39, %v1254_v28  ;;  %v1294_v10 = vmul.f32 %v1463_v50, %v1293_v2  ;;  %v1303_v21 = vsub.f32 1.5, %v1302_v14 }
 0x1ab   :  { %v1336_v61 = vmul.f32 1.4142135, %v1320_v62  ;;  %v1319_v45 = vmul.f32 %v1258_v36, %v3041_v13  ;;  %v1278_v59 = vsel %vm1277_vm9, %v1461_v20, %v1274_v9  ;;  %v1284_v12 = vmul.f32 %v1465_v49, %v1283_v24 }
 0x1ac   :  { %v1321_v38 = vmul.f32 %v1278_v59, %v3042_v11  ;;  %v1298_v48 = vsel %vm1297_vm0, %v1463_v50, %v1294_v10  ;;  %v1304_v17 = vmul.f32 %v1467_v42, %v1303_v21 }
 0x1ad   :  { %1352 = vst.msk [vmem:[%s3006_s12 + $0x58] sm:$0xff] %vm637_vm1, %v1336_v61  ;;  %v1335_v33 = vmul.f32 1.4142135, %v1319_v45  ;;  %v1323_v47 = vmul.f32 %v1298_v48, %v3043_v29  ;;  %v1288_v32 = vsel %vm1287_vm11, %v1465_v49, %v1284_v12 }
 0x1ae   :  { %v1337_v34 = vmul.f32 1.4142135, %v1321_v38  ;;  %v1322_v63 = vmul.f32 %v1288_v32, %v3044_v31  ;;  %v1308_v51 = vsel %vm1307_vm13, %v1467_v42, %v1304_v17 }
 0x1af   :  { %1351 = vst.msk [vmem:[%s3006_s12 + $0x50] sm:$0xff] %vm637_vm1, %v1335_v33  ;;  %v1339_v15 = vmul.f32 1.4142135, %v1323_v47  ;;  %v1324_v16 = vmul.f32 %v1308_v51, %v3045_v60 }
 0x1b0   :  { %1353 = vst.msk [vmem:[%s3006_s12 + $0x60] sm:$0xff] %vm637_vm1, %v1337_v34  ;;  %v1338_v1 = vmul.f32 1.4142135, %v1322_v63 }
 0x1b1   :  { %1355 = vst.msk [vmem:[%s3006_s12 + $0x70] sm:$0xff] %vm637_vm1, %v1339_v15  ;;  %v1340_v41 = vmul.f32 1.4142135, %v1324_v16 }
 0x1b2   :  { %1354 = vst.msk [vmem:[%s3006_s12 + $0x68] sm:$0xff] %vm637_vm1, %v1338_v1 }
 0x1b3   :  { %1356 = vst.msk [vmem:[%s3006_s12 + $0x78] sm:$0xff] %vm637_vm1, %v1340_v41 }

</bundles_post_ra>
